<compile_context>
chip_gen: v6e
topology: v6e:2x2x1
jax: 0.10.0
libtpu: 0.0.40
codegen_flags: <defaults>
</compile_context>

<pallas_src>
import jax
import jax.numpy as jnp
from jax.experimental import pallas as pl
from jax.experimental.pallas import tpu as pltpu


def _round_up(x, m):
    return (x + m - 1) // m * m


# ----------------------------------------------------------------------------- #
# Kernel: one batch-block (B samples) end-to-end, fully VMEM-resident.
# Internal activation layout is flat position-major: row = position * B + sample.
# ----------------------------------------------------------------------------- #
def generator_kernel(
    zi_ref,                               # (B, P)          packed [z | info], zero-padded
    ws_ref, ss_ref, bs_ref,               # (4, P, C1), (1, C1), (1, C1)   fused stems
    w1_ref, s1_ref, b1_ref,               # (4, C1, C2), (1, C2), (1, C2)  main layer 1
    w2_ref, s2_ref, b2_ref,               # (4, C2, C3), ...               main layer 2
    w3_ref, s3_ref, b3_ref,               # (4, C3, C4), ...               main layer 3
    w4_ref,                               # (4, C4, C5)                    main layer 4
    out_ref,                              # (64*B, C5)      position-major, lane-dense
):
    f32 = jnp.float32
    B = zi_ref.shape[0]                   # samples per grid step (multiple of 8)

    def mm(a, b):
        return jnp.dot(a, b, preferred_element_type=f32)

    def bn_relu(y, s_ref, b_ref):
        # Eval-mode BatchNorm folded to scale/shift, fused with ReLU (f32 VPU).
        return jnp.maximum(y * s_ref[...] + b_ref[...], 0.0)

    # --- fused stems (noise & info branches packed along channels) ----------- #
    # ConvTranspose1d(k=4, s=1, p=0) on a length-1 input: position l = zi @ W_l.
    zi = zi_ref[...]
    x = jnp.concatenate([mm(zi, ws_ref[l]) for l in range(4)], axis=0)   # (4B, C1)
    x = bn_relu(x, ss_ref, bs_ref)

    def up_block(x, L, w_ref):
        # ConvTranspose1d(k=4, s=2, p=1): L positions -> 2L positions.
        #   out[2j]   = x[j] @ W_tap1 + x[j-1] @ W_tap3
        #   out[2j+1] = x[j] @ W_tap2 + x[j+1] @ W_tap0
        # Position-major layout: neighbour shift == shift by B rows (sublane
        # slice + concat with a zero block; B % 8 == 0 so no relayout).
        M, cin = x.shape                   # M = L * B
        cout = w_ref.shape[2]
        zero = jnp.zeros((B, cin), f32)
        x_prev = jnp.concatenate([zero, x[:M - B]], axis=0)   # x[j-1] (0 at j=0)
        x_next = jnp.concatenate([x[B:], zero], axis=0)       # x[j+1] (0 at j=L-1)
        even = mm(x, w_ref[1]) + mm(x_prev, w_ref[3])          # (M, cout)
        odd = mm(x, w_ref[2]) + mm(x_next, w_ref[0])           # (M, cout)
        # Interleave even/odd per position in blocks of B rows (position-major).
        y = jnp.concatenate([even.reshape(L, B, cout),
                             odd.reshape(L, B, cout)], axis=1)  # (L, 2B, cout)
        return y.reshape(2 * L * B, cout)

    x = bn_relu(up_block(x, 4, w1_ref), s1_ref, b1_ref)     # (8B,  C2)
    x = bn_relu(up_block(x, 8, w2_ref), s2_ref, b2_ref)     # (16B, C3)
    x = bn_relu(up_block(x, 16, w3_ref), s3_ref, b3_ref)    # (32B, C4)
    y = up_block(x, 32, w4_ref)                              # (64B, C5)

    out_ref[...] = jnp.tanh(y)            # lane-dense (C5 is a multiple of 128)


# ----------------------------------------------------------------------------- #
# Wrapper
# ----------------------------------------------------------------------------- #
def generator_forward(noise, info, params, *, batch_block=32):
    """noise: (N, noise_dim, 1); info: (N, seq_len, 1). Returns (N, input_dim, 64)."""
    assert noise.shape[2] == 1 and info.shape[2] == 1, "DCGAN stems expect length-1 inputs"
    f32 = jnp.float32
    LANE = 128

    N, noise_dim = noise.shape[0], noise.shape[1]
    seq_len = info.shape[1]
    ngf4 = params["w_noise"].shape[1]
    ngf8 = 2 * ngf4
    ngf2 = params["w2"].shape[1]
    ngf = params["w3"].shape[1]
    input_dim = params["w4"].shape[1]

    # Batch block (multiple of 8 for clean sublane tiling) and grid sizing.
    B = max(8, _round_up(min(batch_block, max(N, 1)), 8))
    N_pad = _round_up(N, B)
    G = N_pad // B

    # Channel widths padded to lane multiples: unmasked vector ops everywhere,
    # and Cout padding is free on the MXU (it is >=128 wide per pass anyway).
    P = _round_up(noise_dim + seq_len, LANE)
    C1 = _round_up(ngf8, LANE)
    C2 = _round_up(ngf4, LANE)
    C3 = _round_up(ngf2, LANE)
    C4 = _round_up(ngf, LANE)
    C5 = _round_up(input_dim, LANE)

    def fold_bn_raw(p, eps=1e-5):
        gamma, beta, mean, var = p
        scale = (gamma / jnp.sqrt(var + eps)).astype(f32)
        shift = (beta - mean * scale).astype(f32)
        return scale, shift

    def fold_bn(p, cout_p):
        s, b = fold_bn_raw(p)
        c = s.shape[0]
        return (jnp.zeros((1, cout_p), f32).at[0, :c].set(s),
                jnp.zeros((1, cout_p), f32).at[0, :c].set(b))

    def pack_up_weight(w, cin_p, cout_p):
        # torch ConvTranspose1d weight (Cin, Cout, K) -> (K, Cin_p, Cout_p), zero-padded.
        cin, cout, K = w.shape
        out = jnp.zeros((K, cin_p, cout_p), f32)
        return out.at[:, :cin, :cout].set(jnp.transpose(w, (2, 0, 1)).astype(f32))

    # Fused stem weight: block-diagonal [noise | info] along Cin, channel order
    # matches torch.cat([x1, x2], dim=1) (noise channels first), padded to (P, C1).
    wn = jnp.transpose(params["w_noise"], (2, 0, 1)).astype(f32)   # (4, noise_dim, ngf4)
    wi = jnp.transpose(params["w_info"], (2, 0, 1)).astype(f32)    # (4, seq_len,  ngf4)
    ws = jnp.zeros((4, P, C1), f32)
    ws = ws.at[:, :noise_dim, :ngf4].set(wn)
    ws = ws.at[:, noise_dim:noise_dim + seq_len, ngf4:ngf8].set(wi)

    sn_s, sn_b = fold_bn_raw(params["bn_noise"])
    si_s, si_b = fold_bn_raw(params["bn_info"])
    ss = jnp.zeros((1, C1), f32).at[0, :ngf8].set(jnp.concatenate([sn_s, si_s]))
    bs = jnp.zeros((1, C1), f32).at[0, :ngf8].set(jnp.concatenate([sn_b, si_b]))

    w1 = pack_up_weight(params["w1"], C1, C2)
    w2 = pack_up_weight(params["w2"], C2, C3)
    w3 = pack_up_weight(params["w3"], C3, C4)
    w4 = pack_up_weight(params["w4"], C4, C5)
    s1, b1 = fold_bn(params["bn1"], C2)
    s2, b2 = fold_bn(params["bn2"], C3)
    s3, b3 = fold_bn(params["bn3"], C4)

    # Pack z | info into one padded, lane-aligned input slab (single DMA per step).
    zi = jnp.zeros((N_pad, P), f32)
    zi = zi.at[:N, :noise_dim].set(noise[:, :, 0].astype(f32))
    zi = zi.at[:N, noise_dim:noise_dim + seq_len].set(info[:, :, 0].astype(f32))

    weights = [ws, ss, bs, w1, s1, b1, w2, s2, b2, w3, s3, b3, w4]

    def resident(a):  # whole array, same block every grid step (weights/scales)
        nd = a.ndim
        return pl.BlockSpec(a.shape, lambda n, nd=nd: (0,) * nd)

    out = pl.pallas_call(
        generator_kernel,
        out_shape=jax.ShapeDtypeStruct((N_pad * 64, C5), f32),
        grid=(G,),
        in_specs=[pl.BlockSpec((B, P), lambda n: (n, 0))] + [resident(a) for a in weights],
        out_specs=pl.BlockSpec((64 * B, C5), lambda n: (n, 0)),
        compiler_params=pltpu.CompilerParams(dimension_semantics=("parallel",)),
    )(zi, *weights)

    # Kernel writes a position-major, channel-padded slab; present PyTorch layout
    # (N, input_dim, 64) with a cheap XLA reshuffle on the (small) output.
    out = out.reshape(G, 64, B, C5).transpose(0, 2, 3, 1).reshape(N_pad, C5, 64)
    return out[:N, :input_dim, :]


# ----------------------------------------------------------------------------- #
# Pure-JAX reference (mirrors torch ConvTranspose1d / eval-mode BN semantics)
# ----------------------------------------------------------------------------- #
def _convT1d(x, w, stride, padding):
    # x: (N, Cin, L); w: (Cin, Cout, K)
    N, Cin, L = x.shape
    _, Cout, K = w.shape
    full = (L - 1) * stride + K
    out = jnp.zeros((N, Cout, full), jnp.float32)
    for l in range(L):
        contrib = jnp.einsum("nc,cok->nok", x[:, :, l], w,
                             precision=jax.lax.Precision.HIGHEST)
        out = out.at[:, :, l * stride:l * stride + K].add(contrib)
    return out[:, :, padding:full - padding]


def _bn_eval(x, p, eps=1e-5):
    gamma, beta, mean, var = p
    inv = gamma / jnp.sqrt(var + eps)
    return (x - mean[None, :, None]) * inv[None, :, None] + beta[None, :, None]


def generator_reference(noise, info, params):
    x1 = jax.nn.relu(_bn_eval(_convT1d(noise, params["w_noise"], 1, 0), params["bn_noise"]))
    x2 = jax.nn.relu(_bn_eval(_convT1d(info, params["w_info"], 1, 0), params["bn_info"]))
    x = jnp.concatenate([x1, x2], axis=1)
    x = jax.nn.relu(_bn_eval(_convT1d(x, params["w1"], 2, 1), params["bn1"]))
    x = jax.nn.relu(_bn_eval(_convT1d(x, params["w2"], 2, 1), params["bn2"]))
    x = jax.nn.relu(_bn_eval(_convT1d(x, params["w3"], 2, 1), params["bn3"]))
    return jnp.tanh(_convT1d(x, params["w4"], 2, 1))


# ----------------------------------------------------------------------------- #
# Demo / self-check
# ----------------------------------------------------------------------------- #
if __name__ == "__main__":
    N, noise_dim, seq_len, ngf, input_dim = 16, 8, 8, 16, 4
    ngf2, ngf4, ngf8 = ngf * 2, ngf * 4, ngf * 8

    key = jax.random.PRNGKey(0)
    ks = iter(jax.random.split(key, 32))

    def w_init(k, shape):
        return 0.1 * jax.random.normal(k, shape, dtype=jnp.float32)

    def bn_init(k, c):
        k1, k2, k3, k4 = jax.random.split(k, 4)
        gamma = 1.0 + 0.1 * jax.random.normal(k1, (c,), dtype=jnp.float32)
        beta = 0.1 * jax.random.normal(k2, (c,), dtype=jnp.float32)
        mean = 0.1 * jax.random.normal(k3, (c,), dtype=jnp.float32)
        var = jnp.abs(1.0 + 0.1 * jax.random.normal(k4, (c,), dtype=jnp.float32))
        return (gamma, beta, mean, var)

    params = dict(
        w_noise=w_init(next(ks), (noise_dim, ngf4, 4)),
        bn_noise=bn_init(next(ks), ngf4),
        w_info=w_init(next(ks), (seq_len, ngf4, 4)),
        bn_info=bn_init(next(ks), ngf4),
        w1=w_init(next(ks), (ngf8, ngf4, 4)),
        bn1=bn_init(next(ks), ngf4),
        w2=w_init(next(ks), (ngf4, ngf2, 4)),
        bn2=bn_init(next(ks), ngf2),
        w3=w_init(next(ks), (ngf2, ngf, 4)),
        bn3=bn_init(next(ks), ngf),
        w4=w_init(next(ks), (ngf, input_dim, 4)),
    )

    noise = jax.random.normal(next(ks), (N, noise_dim, 1), dtype=jnp.float32)
    info = jax.random.normal(next(ks), (N, seq_len, 1), dtype=jnp.float32)

    # batch_block=8 -> grid=(2,): keeps both TensorCores busy on multi-TC parts.
    out = generator_forward(noise, info, params, batch_block=8)
    out = jax.block_until_ready(out)
    ref = generator_reference(noise, info, params)

    assert out.shape == (N, input_dim, 64), out.shape
    err = float(jnp.max(jnp.abs(out - ref)))
    assert jnp.allclose(out, ref, atol=5e-4, rtol=5e-4), err

    print("KERNEL_OK")
</pallas_src>

<mosaic_0001>
module attributes {stable_mosaic.version = 11 : i64} {
  func.func @generator_kernel(%arg0: i32, %arg1: memref<8x128xf32, #tpu.memory_space<vmem>>, %arg2: memref<4x128x128xf32, #tpu.memory_space<vmem>>, %arg3: memref<1x128xf32, #tpu.memory_space<vmem>>, %arg4: memref<1x128xf32, #tpu.memory_space<vmem>>, %arg5: memref<4x128x128xf32, #tpu.memory_space<vmem>>, %arg6: memref<1x128xf32, #tpu.memory_space<vmem>>, %arg7: memref<1x128xf32, #tpu.memory_space<vmem>>, %arg8: memref<4x128x128xf32, #tpu.memory_space<vmem>>, %arg9: memref<1x128xf32, #tpu.memory_space<vmem>>, %arg10: memref<1x128xf32, #tpu.memory_space<vmem>>, %arg11: memref<4x128x128xf32, #tpu.memory_space<vmem>>, %arg12: memref<1x128xf32, #tpu.memory_space<vmem>>, %arg13: memref<1x128xf32, #tpu.memory_space<vmem>>, %arg14: memref<4x128x128xf32, #tpu.memory_space<vmem>>, %arg15: memref<512x128xf32, #tpu.memory_space<vmem>>) attributes {dimension_semantics = [#tpu.dimension_semantics<parallel>], iteration_bounds = array<i64: 2>, scalar_prefetch = 0 : i64, scratch_operands = 0 : i64, tpu.core_type = #tpu.core_type<tc>, window_params = [{transform_indices = @transform_0, window_bounds = array<i64: 8, 128>}, {pipeline_mode = #tpu.pipeline_mode<synchronous>, transform_indices = @transform_1, window_bounds = array<i64: 4, 128, 128>}, {pipeline_mode = #tpu.pipeline_mode<synchronous>, transform_indices = @transform_2, window_bounds = array<i64: 1, 128>}, {pipeline_mode = #tpu.pipeline_mode<synchronous>, transform_indices = @transform_3, window_bounds = array<i64: 1, 128>}, {pipeline_mode = #tpu.pipeline_mode<synchronous>, transform_indices = @transform_4, window_bounds = array<i64: 4, 128, 128>}, {pipeline_mode = #tpu.pipeline_mode<synchronous>, transform_indices = @transform_5, window_bounds = array<i64: 1, 128>}, {pipeline_mode = #tpu.pipeline_mode<synchronous>, transform_indices = @transform_6, window_bounds = array<i64: 1, 128>}, {pipeline_mode = #tpu.pipeline_mode<synchronous>, transform_indices = @transform_7, window_bounds = array<i64: 4, 128, 128>}, {pipeline_mode = #tpu.pipeline_mode<synchronous>, transform_indices = @transform_8, window_bounds = array<i64: 1, 128>}, {pipeline_mode = #tpu.pipeline_mode<synchronous>, transform_indices = @transform_9, window_bounds = array<i64: 1, 128>}, {pipeline_mode = #tpu.pipeline_mode<synchronous>, transform_indices = @transform_10, window_bounds = array<i64: 4, 128, 128>}, {pipeline_mode = #tpu.pipeline_mode<synchronous>, transform_indices = @transform_11, window_bounds = array<i64: 1, 128>}, {pipeline_mode = #tpu.pipeline_mode<synchronous>, transform_indices = @transform_12, window_bounds = array<i64: 1, 128>}, {pipeline_mode = #tpu.pipeline_mode<synchronous>, transform_indices = @transform_13, window_bounds = array<i64: 4, 128, 128>}, {transform_indices = @transform_14, window_bounds = array<i64: 512, 128>}]} {
    %c0 = arith.constant 0 : index
    %c0_0 = arith.constant 0 : index
    %0 = vector.load %arg1[%c0, %c0_0] : memref<8x128xf32, #tpu.memory_space<vmem>>, vector<8x128xf32>
    %c0_1 = arith.constant 0 : index
    %c0_2 = arith.constant 0 : index
    %c0_3 = arith.constant 0 : index
    %1 = vector.load %arg2[%c0_1, %c0_2, %c0_3] : memref<4x128x128xf32, #tpu.memory_space<vmem>>, vector<1x128x128xf32>
    %2 = vector.shape_cast %1 : vector<1x128x128xf32> to vector<128x128xf32>
    %cst = arith.constant dense<0.000000e+00> : vector<8x128xf32>
    %3 = tpu.matmul %0, %2, %cst {dimension_numbers = #tpu.dot_dimension_numbers<[1], [0], [0], [1], [0, 0, 1, 1], [], []>} : vector<8x128xf32>, vector<128x128xf32>, vector<8x128xf32> -> vector<8x128xf32>
    %c1 = arith.constant 1 : index
    %c0_4 = arith.constant 0 : index
    %c0_5 = arith.constant 0 : index
    %4 = vector.load %arg2[%c1, %c0_4, %c0_5] : memref<4x128x128xf32, #tpu.memory_space<vmem>>, vector<1x128x128xf32>
    %5 = vector.shape_cast %4 : vector<1x128x128xf32> to vector<128x128xf32>
    %cst_6 = arith.constant dense<0.000000e+00> : vector<8x128xf32>
    %6 = tpu.matmul %0, %5, %cst_6 {dimension_numbers = #tpu.dot_dimension_numbers<[1], [0], [0], [1], [0, 0, 1, 1], [], []>} : vector<8x128xf32>, vector<128x128xf32>, vector<8x128xf32> -> vector<8x128xf32>
    %c2 = arith.constant 2 : index
    %c0_7 = arith.constant 0 : index
    %c0_8 = arith.constant 0 : index
    %7 = vector.load %arg2[%c2, %c0_7, %c0_8] : memref<4x128x128xf32, #tpu.memory_space<vmem>>, vector<1x128x128xf32>
    %8 = vector.shape_cast %7 : vector<1x128x128xf32> to vector<128x128xf32>
    %cst_9 = arith.constant dense<0.000000e+00> : vector<8x128xf32>
    %9 = tpu.matmul %0, %8, %cst_9 {dimension_numbers = #tpu.dot_dimension_numbers<[1], [0], [0], [1], [0, 0, 1, 1], [], []>} : vector<8x128xf32>, vector<128x128xf32>, vector<8x128xf32> -> vector<8x128xf32>
    %c3 = arith.constant 3 : index
    %c0_10 = arith.constant 0 : index
    %c0_11 = arith.constant 0 : index
    %10 = vector.load %arg2[%c3, %c0_10, %c0_11] : memref<4x128x128xf32, #tpu.memory_space<vmem>>, vector<1x128x128xf32>
    %11 = vector.shape_cast %10 : vector<1x128x128xf32> to vector<128x128xf32>
    %cst_12 = arith.constant dense<0.000000e+00> : vector<8x128xf32>
    %12 = tpu.matmul %0, %11, %cst_12 {dimension_numbers = #tpu.dot_dimension_numbers<[1], [0], [0], [1], [0, 0, 1, 1], [], []>} : vector<8x128xf32>, vector<128x128xf32>, vector<8x128xf32> -> vector<8x128xf32>
    %13 = tpu.concatenate %3, %6, %9, %12 in 0 : vector<8x128xf32>, vector<8x128xf32>, vector<8x128xf32>, vector<8x128xf32> -> vector<32x128xf32>
    %c0_13 = arith.constant 0 : index
    %c0_14 = arith.constant 0 : index
    %14 = vector.load %arg3[%c0_13, %c0_14] : memref<1x128xf32, #tpu.memory_space<vmem>>, vector<1x128xf32>
    %15 = vector.broadcast %14 : vector<1x128xf32> to vector<32x128xf32>
    %16 = arith.mulf %13, %15 : vector<32x128xf32>
    %c0_15 = arith.constant 0 : index
    %c0_16 = arith.constant 0 : index
    %17 = vector.load %arg4[%c0_15, %c0_16] : memref<1x128xf32, #tpu.memory_space<vmem>>, vector<1x128xf32>
    %18 = vector.broadcast %17 : vector<1x128xf32> to vector<32x128xf32>
    %19 = arith.addf %16, %18 : vector<32x128xf32>
    %cst_17 = arith.constant 0.000000e+00 : f32
    %20 = vector.broadcast %cst_17 : f32 to vector<32x128xf32>
    %21 = arith.maximumf %19, %20 : vector<32x128xf32>
    %cst_18 = arith.constant 0.000000e+00 : f32
    %22 = vector.broadcast %cst_18 : f32 to vector<8x128xf32>
    %23 = vector.extract_strided_slice %21 {offsets = [0, 0], sizes = [24, 128], strides = [1, 1]} : vector<32x128xf32> to vector<24x128xf32>
    %24 = tpu.concatenate %22, %23 in 0 : vector<8x128xf32>, vector<24x128xf32> -> vector<32x128xf32>
    %25 = vector.extract_strided_slice %21 {offsets = [8, 0], sizes = [24, 128], strides = [1, 1]} : vector<32x128xf32> to vector<24x128xf32>
    %26 = tpu.concatenate %25, %22 in 0 : vector<24x128xf32>, vector<8x128xf32> -> vector<32x128xf32>
    %c1_19 = arith.constant 1 : index
    %c0_20 = arith.constant 0 : index
    %c0_21 = arith.constant 0 : index
    %27 = vector.load %arg5[%c1_19, %c0_20, %c0_21] : memref<4x128x128xf32, #tpu.memory_space<vmem>>, vector<1x128x128xf32>
    %28 = vector.shape_cast %27 : vector<1x128x128xf32> to vector<128x128xf32>
    %cst_22 = arith.constant dense<0.000000e+00> : vector<32x128xf32>
    %29 = tpu.matmul %21, %28, %cst_22 {dimension_numbers = #tpu.dot_dimension_numbers<[1], [0], [0], [1], [0, 0, 1, 1], [], []>} : vector<32x128xf32>, vector<128x128xf32>, vector<32x128xf32> -> vector<32x128xf32>
    %c3_23 = arith.constant 3 : index
    %c0_24 = arith.constant 0 : index
    %c0_25 = arith.constant 0 : index
    %30 = vector.load %arg5[%c3_23, %c0_24, %c0_25] : memref<4x128x128xf32, #tpu.memory_space<vmem>>, vector<1x128x128xf32>
    %31 = vector.shape_cast %30 : vector<1x128x128xf32> to vector<128x128xf32>
    %cst_26 = arith.constant dense<0.000000e+00> : vector<32x128xf32>
    %32 = tpu.matmul %24, %31, %cst_26 {dimension_numbers = #tpu.dot_dimension_numbers<[1], [0], [0], [1], [0, 0, 1, 1], [], []>} : vector<32x128xf32>, vector<128x128xf32>, vector<32x128xf32> -> vector<32x128xf32>
    %33 = arith.addf %29, %32 : vector<32x128xf32>
    %c2_27 = arith.constant 2 : index
    %c0_28 = arith.constant 0 : index
    %c0_29 = arith.constant 0 : index
    %34 = vector.load %arg5[%c2_27, %c0_28, %c0_29] : memref<4x128x128xf32, #tpu.memory_space<vmem>>, vector<1x128x128xf32>
    %35 = vector.shape_cast %34 : vector<1x128x128xf32> to vector<128x128xf32>
    %cst_30 = arith.constant dense<0.000000e+00> : vector<32x128xf32>
    %36 = tpu.matmul %21, %35, %cst_30 {dimension_numbers = #tpu.dot_dimension_numbers<[1], [0], [0], [1], [0, 0, 1, 1], [], []>} : vector<32x128xf32>, vector<128x128xf32>, vector<32x128xf32> -> vector<32x128xf32>
    %c0_31 = arith.constant 0 : index
    %c0_32 = arith.constant 0 : index
    %c0_33 = arith.constant 0 : index
    %37 = vector.load %arg5[%c0_31, %c0_32, %c0_33] : memref<4x128x128xf32, #tpu.memory_space<vmem>>, vector<1x128x128xf32>
    %38 = vector.shape_cast %37 : vector<1x128x128xf32> to vector<128x128xf32>
    %cst_34 = arith.constant dense<0.000000e+00> : vector<32x128xf32>
    %39 = tpu.matmul %26, %38, %cst_34 {dimension_numbers = #tpu.dot_dimension_numbers<[1], [0], [0], [1], [0, 0, 1, 1], [], []>} : vector<32x128xf32>, vector<128x128xf32>, vector<32x128xf32> -> vector<32x128xf32>
    %40 = arith.addf %36, %39 : vector<32x128xf32>
    %41 = vector.shape_cast %33 : vector<32x128xf32> to vector<4x8x128xf32>
    %42 = vector.shape_cast %40 : vector<32x128xf32> to vector<4x8x128xf32>
    %43 = tpu.concatenate %41, %42 in 1 : vector<4x8x128xf32>, vector<4x8x128xf32> -> vector<4x16x128xf32>
    %44 = vector.shape_cast %43 : vector<4x16x128xf32> to vector<64x128xf32>
    %c0_35 = arith.constant 0 : index
    %c0_36 = arith.constant 0 : index
    %45 = vector.load %arg6[%c0_35, %c0_36] : memref<1x128xf32, #tpu.memory_space<vmem>>, vector<1x128xf32>
    %46 = vector.broadcast %45 : vector<1x128xf32> to vector<64x128xf32>
    %47 = arith.mulf %44, %46 : vector<64x128xf32>
    %c0_37 = arith.constant 0 : index
    %c0_38 = arith.constant 0 : index
    %48 = vector.load %arg7[%c0_37, %c0_38] : memref<1x128xf32, #tpu.memory_space<vmem>>, vector<1x128xf32>
    %49 = vector.broadcast %48 : vector<1x128xf32> to vector<64x128xf32>
    %50 = arith.addf %47, %49 : vector<64x128xf32>
    %cst_39 = arith.constant 0.000000e+00 : f32
    %51 = vector.broadcast %cst_39 : f32 to vector<64x128xf32>
    %52 = arith.maximumf %50, %51 : vector<64x128xf32>
    %cst_40 = arith.constant 0.000000e+00 : f32
    %53 = vector.broadcast %cst_40 : f32 to vector<8x128xf32>
    %54 = vector.extract_strided_slice %52 {offsets = [0, 0], sizes = [56, 128], strides = [1, 1]} : vector<64x128xf32> to vector<56x128xf32>
    %55 = tpu.concatenate %53, %54 in 0 : vector<8x128xf32>, vector<56x128xf32> -> vector<64x128xf32>
    %56 = vector.extract_strided_slice %52 {offsets = [8, 0], sizes = [56, 128], strides = [1, 1]} : vector<64x128xf32> to vector<56x128xf32>
    %57 = tpu.concatenate %56, %53 in 0 : vector<56x128xf32>, vector<8x128xf32> -> vector<64x128xf32>
    %c1_41 = arith.constant 1 : index
    %c0_42 = arith.constant 0 : index
    %c0_43 = arith.constant 0 : index
    %58 = vector.load %arg8[%c1_41, %c0_42, %c0_43] : memref<4x128x128xf32, #tpu.memory_space<vmem>>, vector<1x128x128xf32>
    %59 = vector.shape_cast %58 : vector<1x128x128xf32> to vector<128x128xf32>
    %cst_44 = arith.constant dense<0.000000e+00> : vector<64x128xf32>
    %60 = tpu.matmul %52, %59, %cst_44 {dimension_numbers = #tpu.dot_dimension_numbers<[1], [0], [0], [1], [0, 0, 1, 1], [], []>} : vector<64x128xf32>, vector<128x128xf32>, vector<64x128xf32> -> vector<64x128xf32>
    %c3_45 = arith.constant 3 : index
    %c0_46 = arith.constant 0 : index
    %c0_47 = arith.constant 0 : index
    %61 = vector.load %arg8[%c3_45, %c0_46, %c0_47] : memref<4x128x128xf32, #tpu.memory_space<vmem>>, vector<1x128x128xf32>
    %62 = vector.shape_cast %61 : vector<1x128x128xf32> to vector<128x128xf32>
    %cst_48 = arith.constant dense<0.000000e+00> : vector<64x128xf32>
    %63 = tpu.matmul %55, %62, %cst_48 {dimension_numbers = #tpu.dot_dimension_numbers<[1], [0], [0], [1], [0, 0, 1, 1], [], []>} : vector<64x128xf32>, vector<128x128xf32>, vector<64x128xf32> -> vector<64x128xf32>
    %64 = arith.addf %60, %63 : vector<64x128xf32>
    %c2_49 = arith.constant 2 : index
    %c0_50 = arith.constant 0 : index
    %c0_51 = arith.constant 0 : index
    %65 = vector.load %arg8[%c2_49, %c0_50, %c0_51] : memref<4x128x128xf32, #tpu.memory_space<vmem>>, vector<1x128x128xf32>
    %66 = vector.shape_cast %65 : vector<1x128x128xf32> to vector<128x128xf32>
    %cst_52 = arith.constant dense<0.000000e+00> : vector<64x128xf32>
    %67 = tpu.matmul %52, %66, %cst_52 {dimension_numbers = #tpu.dot_dimension_numbers<[1], [0], [0], [1], [0, 0, 1, 1], [], []>} : vector<64x128xf32>, vector<128x128xf32>, vector<64x128xf32> -> vector<64x128xf32>
    %c0_53 = arith.constant 0 : index
    %c0_54 = arith.constant 0 : index
    %c0_55 = arith.constant 0 : index
    %68 = vector.load %arg8[%c0_53, %c0_54, %c0_55] : memref<4x128x128xf32, #tpu.memory_space<vmem>>, vector<1x128x128xf32>
    %69 = vector.shape_cast %68 : vector<1x128x128xf32> to vector<128x128xf32>
    %cst_56 = arith.constant dense<0.000000e+00> : vector<64x128xf32>
    %70 = tpu.matmul %57, %69, %cst_56 {dimension_numbers = #tpu.dot_dimension_numbers<[1], [0], [0], [1], [0, 0, 1, 1], [], []>} : vector<64x128xf32>, vector<128x128xf32>, vector<64x128xf32> -> vector<64x128xf32>
    %71 = arith.addf %67, %70 : vector<64x128xf32>
    %72 = vector.shape_cast %64 : vector<64x128xf32> to vector<8x8x128xf32>
    %73 = vector.shape_cast %71 : vector<64x128xf32> to vector<8x8x128xf32>
    %74 = tpu.concatenate %72, %73 in 1 : vector<8x8x128xf32>, vector<8x8x128xf32> -> vector<8x16x128xf32>
    %75 = vector.shape_cast %74 : vector<8x16x128xf32> to vector<128x128xf32>
    %c0_57 = arith.constant 0 : index
    %c0_58 = arith.constant 0 : index
    %76 = vector.load %arg9[%c0_57, %c0_58] : memref<1x128xf32, #tpu.memory_space<vmem>>, vector<1x128xf32>
    %77 = vector.broadcast %76 : vector<1x128xf32> to vector<128x128xf32>
    %78 = arith.mulf %75, %77 : vector<128x128xf32>
    %c0_59 = arith.constant 0 : index
    %c0_60 = arith.constant 0 : index
    %79 = vector.load %arg10[%c0_59, %c0_60] : memref<1x128xf32, #tpu.memory_space<vmem>>, vector<1x128xf32>
    %80 = vector.broadcast %79 : vector<1x128xf32> to vector<128x128xf32>
    %81 = arith.addf %78, %80 : vector<128x128xf32>
    %cst_61 = arith.constant 0.000000e+00 : f32
    %82 = vector.broadcast %cst_61 : f32 to vector<128x128xf32>
    %83 = arith.maximumf %81, %82 : vector<128x128xf32>
    %cst_62 = arith.constant 0.000000e+00 : f32
    %84 = vector.broadcast %cst_62 : f32 to vector<8x128xf32>
    %85 = vector.extract_strided_slice %83 {offsets = [0, 0], sizes = [120, 128], strides = [1, 1]} : vector<128x128xf32> to vector<120x128xf32>
    %86 = tpu.concatenate %84, %85 in 0 : vector<8x128xf32>, vector<120x128xf32> -> vector<128x128xf32>
    %87 = vector.extract_strided_slice %83 {offsets = [8, 0], sizes = [120, 128], strides = [1, 1]} : vector<128x128xf32> to vector<120x128xf32>
    %88 = tpu.concatenate %87, %84 in 0 : vector<120x128xf32>, vector<8x128xf32> -> vector<128x128xf32>
    %c1_63 = arith.constant 1 : index
    %c0_64 = arith.constant 0 : index
    %c0_65 = arith.constant 0 : index
    %89 = vector.load %arg11[%c1_63, %c0_64, %c0_65] : memref<4x128x128xf32, #tpu.memory_space<vmem>>, vector<1x128x128xf32>
    %90 = vector.shape_cast %89 : vector<1x128x128xf32> to vector<128x128xf32>
    %cst_66 = arith.constant dense<0.000000e+00> : vector<128x128xf32>
    %91 = tpu.matmul %83, %90, %cst_66 {dimension_numbers = #tpu.dot_dimension_numbers<[1], [0], [0], [1], [0, 0, 1, 1], [], []>} : vector<128x128xf32>, vector<128x128xf32>, vector<128x128xf32> -> vector<128x128xf32>
    %c3_67 = arith.constant 3 : index
    %c0_68 = arith.constant 0 : index
    %c0_69 = arith.constant 0 : index
    %92 = vector.load %arg11[%c3_67, %c0_68, %c0_69] : memref<4x128x128xf32, #tpu.memory_space<vmem>>, vector<1x128x128xf32>
    %93 = vector.shape_cast %92 : vector<1x128x128xf32> to vector<128x128xf32>
    %cst_70 = arith.constant dense<0.000000e+00> : vector<128x128xf32>
    %94 = tpu.matmul %86, %93, %cst_70 {dimension_numbers = #tpu.dot_dimension_numbers<[1], [0], [0], [1], [0, 0, 1, 1], [], []>} : vector<128x128xf32>, vector<128x128xf32>, vector<128x128xf32> -> vector<128x128xf32>
    %95 = arith.addf %91, %94 : vector<128x128xf32>
    %c2_71 = arith.constant 2 : index
    %c0_72 = arith.constant 0 : index
    %c0_73 = arith.constant 0 : index
    %96 = vector.load %arg11[%c2_71, %c0_72, %c0_73] : memref<4x128x128xf32, #tpu.memory_space<vmem>>, vector<1x128x128xf32>
    %97 = vector.shape_cast %96 : vector<1x128x128xf32> to vector<128x128xf32>
    %cst_74 = arith.constant dense<0.000000e+00> : vector<128x128xf32>
    %98 = tpu.matmul %83, %97, %cst_74 {dimension_numbers = #tpu.dot_dimension_numbers<[1], [0], [0], [1], [0, 0, 1, 1], [], []>} : vector<128x128xf32>, vector<128x128xf32>, vector<128x128xf32> -> vector<128x128xf32>
    %c0_75 = arith.constant 0 : index
    %c0_76 = arith.constant 0 : index
    %c0_77 = arith.constant 0 : index
    %99 = vector.load %arg11[%c0_75, %c0_76, %c0_77] : memref<4x128x128xf32, #tpu.memory_space<vmem>>, vector<1x128x128xf32>
    %100 = vector.shape_cast %99 : vector<1x128x128xf32> to vector<128x128xf32>
    %cst_78 = arith.constant dense<0.000000e+00> : vector<128x128xf32>
    %101 = tpu.matmul %88, %100, %cst_78 {dimension_numbers = #tpu.dot_dimension_numbers<[1], [0], [0], [1], [0, 0, 1, 1], [], []>} : vector<128x128xf32>, vector<128x128xf32>, vector<128x128xf32> -> vector<128x128xf32>
    %102 = arith.addf %98, %101 : vector<128x128xf32>
    %103 = vector.shape_cast %95 : vector<128x128xf32> to vector<16x8x128xf32>
    %104 = vector.shape_cast %102 : vector<128x128xf32> to vector<16x8x128xf32>
    %105 = tpu.concatenate %103, %104 in 1 : vector<16x8x128xf32>, vector<16x8x128xf32> -> vector<16x16x128xf32>
    %106 = vector.shape_cast %105 : vector<16x16x128xf32> to vector<256x128xf32>
    %c0_79 = arith.constant 0 : index
    %c0_80 = arith.constant 0 : index
    %107 = vector.load %arg12[%c0_79, %c0_80] : memref<1x128xf32, #tpu.memory_space<vmem>>, vector<1x128xf32>
    %108 = vector.broadcast %107 : vector<1x128xf32> to vector<256x128xf32>
    %109 = arith.mulf %106, %108 : vector<256x128xf32>
    %c0_81 = arith.constant 0 : index
    %c0_82 = arith.constant 0 : index
    %110 = vector.load %arg13[%c0_81, %c0_82] : memref<1x128xf32, #tpu.memory_space<vmem>>, vector<1x128xf32>
    %111 = vector.broadcast %110 : vector<1x128xf32> to vector<256x128xf32>
    %112 = arith.addf %109, %111 : vector<256x128xf32>
    %cst_83 = arith.constant 0.000000e+00 : f32
    %113 = vector.broadcast %cst_83 : f32 to vector<256x128xf32>
    %114 = arith.maximumf %112, %113 : vector<256x128xf32>
    %cst_84 = arith.constant 0.000000e+00 : f32
    %115 = vector.broadcast %cst_84 : f32 to vector<8x128xf32>
    %116 = vector.extract_strided_slice %114 {offsets = [0, 0], sizes = [248, 128], strides = [1, 1]} : vector<256x128xf32> to vector<248x128xf32>
    %117 = tpu.concatenate %115, %116 in 0 : vector<8x128xf32>, vector<248x128xf32> -> vector<256x128xf32>
    %118 = vector.extract_strided_slice %114 {offsets = [8, 0], sizes = [248, 128], strides = [1, 1]} : vector<256x128xf32> to vector<248x128xf32>
    %119 = tpu.concatenate %118, %115 in 0 : vector<248x128xf32>, vector<8x128xf32> -> vector<256x128xf32>
    %c1_85 = arith.constant 1 : index
    %c0_86 = arith.constant 0 : index
    %c0_87 = arith.constant 0 : index
    %120 = vector.load %arg14[%c1_85, %c0_86, %c0_87] : memref<4x128x128xf32, #tpu.memory_space<vmem>>, vector<1x128x128xf32>
    %121 = vector.shape_cast %120 : vector<1x128x128xf32> to vector<128x128xf32>
    %cst_88 = arith.constant dense<0.000000e+00> : vector<256x128xf32>
    %122 = tpu.matmul %114, %121, %cst_88 {dimension_numbers = #tpu.dot_dimension_numbers<[1], [0], [0], [1], [0, 0, 1, 1], [], []>} : vector<256x128xf32>, vector<128x128xf32>, vector<256x128xf32> -> vector<256x128xf32>
    %c3_89 = arith.constant 3 : index
    %c0_90 = arith.constant 0 : index
    %c0_91 = arith.constant 0 : index
    %123 = vector.load %arg14[%c3_89, %c0_90, %c0_91] : memref<4x128x128xf32, #tpu.memory_space<vmem>>, vector<1x128x128xf32>
    %124 = vector.shape_cast %123 : vector<1x128x128xf32> to vector<128x128xf32>
    %cst_92 = arith.constant dense<0.000000e+00> : vector<256x128xf32>
    %125 = tpu.matmul %117, %124, %cst_92 {dimension_numbers = #tpu.dot_dimension_numbers<[1], [0], [0], [1], [0, 0, 1, 1], [], []>} : vector<256x128xf32>, vector<128x128xf32>, vector<256x128xf32> -> vector<256x128xf32>
    %126 = arith.addf %122, %125 : vector<256x128xf32>
    %c2_93 = arith.constant 2 : index
    %c0_94 = arith.constant 0 : index
    %c0_95 = arith.constant 0 : index
    %127 = vector.load %arg14[%c2_93, %c0_94, %c0_95] : memref<4x128x128xf32, #tpu.memory_space<vmem>>, vector<1x128x128xf32>
    %128 = vector.shape_cast %127 : vector<1x128x128xf32> to vector<128x128xf32>
    %cst_96 = arith.constant dense<0.000000e+00> : vector<256x128xf32>
    %129 = tpu.matmul %114, %128, %cst_96 {dimension_numbers = #tpu.dot_dimension_numbers<[1], [0], [0], [1], [0, 0, 1, 1], [], []>} : vector<256x128xf32>, vector<128x128xf32>, vector<256x128xf32> -> vector<256x128xf32>
    %c0_97 = arith.constant 0 : index
    %c0_98 = arith.constant 0 : index
    %c0_99 = arith.constant 0 : index
    %130 = vector.load %arg14[%c0_97, %c0_98, %c0_99] : memref<4x128x128xf32, #tpu.memory_space<vmem>>, vector<1x128x128xf32>
    %131 = vector.shape_cast %130 : vector<1x128x128xf32> to vector<128x128xf32>
    %cst_100 = arith.constant dense<0.000000e+00> : vector<256x128xf32>
    %132 = tpu.matmul %119, %131, %cst_100 {dimension_numbers = #tpu.dot_dimension_numbers<[1], [0], [0], [1], [0, 0, 1, 1], [], []>} : vector<256x128xf32>, vector<128x128xf32>, vector<256x128xf32> -> vector<256x128xf32>
    %133 = arith.addf %129, %132 : vector<256x128xf32>
    %134 = vector.shape_cast %126 : vector<256x128xf32> to vector<32x8x128xf32>
    %135 = vector.shape_cast %133 : vector<256x128xf32> to vector<32x8x128xf32>
    %136 = tpu.concatenate %134, %135 in 1 : vector<32x8x128xf32>, vector<32x8x128xf32> -> vector<32x16x128xf32>
    %137 = vector.shape_cast %136 : vector<32x16x128xf32> to vector<512x128xf32>
    %138 = math.tanh %137 : vector<512x128xf32>
    %c0_101 = arith.constant 0 : index
    %c0_102 = arith.constant 0 : index
    %139 = vector.load %arg15[%c0_101, %c0_102] : memref<512x128xf32, #tpu.memory_space<vmem>>, vector<512x128xf32>
    tpu.vector_store %arg15[%c0_101, %c0_102], %138 {strides = array<i32>} : memref<512x128xf32, #tpu.memory_space<vmem>>, vector<512x128xf32>,
    return
  }
  func.func @transform_0(%arg0: i32) -> (i32, i32) {
    %c0_i32 = arith.constant 0 : i32
    %c0_i32_0 = arith.constant 0 : i32
    return %arg0, %c0_i32 : i32, i32
  }
  func.func @transform_1(%arg0: i32) -> (i32, i32, i32) {
    %c0_i32 = arith.constant 0 : i32
    %c0_i32_0 = arith.constant 0 : i32
    %c0_i32_1 = arith.constant 0 : i32
    %c0_i32_2 = arith.constant 0 : i32
    return %c0_i32, %c0_i32_0, %c0_i32_1 : i32, i32, i32
  }
  func.func @transform_2(%arg0: i32) -> (i32, i32) {
    %c0_i32 = arith.constant 0 : i32
    %c0_i32_0 = arith.constant 0 : i32
    %c0_i32_1 = arith.constant 0 : i32
    return %c0_i32, %c0_i32_0 : i32, i32
  }
  func.func @transform_3(%arg0: i32) -> (i32, i32) {
    %c0_i32 = arith.constant 0 : i32
    %c0_i32_0 = arith.constant 0 : i32
    %c0_i32_1 = arith.constant 0 : i32
    return %c0_i32, %c0_i32_0 : i32, i32
  }
  func.func @transform_4(%arg0: i32) -> (i32, i32, i32) {
    %c0_i32 = arith.constant 0 : i32
    %c0_i32_0 = arith.constant 0 : i32
    %c0_i32_1 = arith.constant 0 : i32
    %c0_i32_2 = arith.constant 0 : i32
    return %c0_i32, %c0_i32_0, %c0_i32_1 : i32, i32, i32
  }
  func.func @transform_5(%arg0: i32) -> (i32, i32) {
    %c0_i32 = arith.constant 0 : i32
    %c0_i32_0 = arith.constant 0 : i32
    %c0_i32_1 = arith.constant 0 : i32
    return %c0_i32, %c0_i32_0 : i32, i32
  }
  func.func @transform_6(%arg0: i32) -> (i32, i32) {
    %c0_i32 = arith.constant 0 : i32
    %c0_i32_0 = arith.constant 0 : i32
    %c0_i32_1 = arith.constant 0 : i32
    return %c0_i32, %c0_i32_0 : i32, i32
  }
  func.func @transform_7(%arg0: i32) -> (i32, i32, i32) {
    %c0_i32 = arith.constant 0 : i32
    %c0_i32_0 = arith.constant 0 : i32
    %c0_i32_1 = arith.constant 0 : i32
    %c0_i32_2 = arith.constant 0 : i32
    return %c0_i32, %c0_i32_0, %c0_i32_1 : i32, i32, i32
  }
  func.func @transform_8(%arg0: i32) -> (i32, i32) {
    %c0_i32 = arith.constant 0 : i32
    %c0_i32_0 = arith.constant 0 : i32
    %c0_i32_1 = arith.constant 0 : i32
    return %c0_i32, %c0_i32_0 : i32, i32
  }
  func.func @transform_9(%arg0: i32) -> (i32, i32) {
    %c0_i32 = arith.constant 0 : i32
    %c0_i32_0 = arith.constant 0 : i32
    %c0_i32_1 = arith.constant 0 : i32
    return %c0_i32, %c0_i32_0 : i32, i32
  }
  func.func @transform_10(%arg0: i32) -> (i32, i32, i32) {
    %c0_i32 = arith.constant 0 : i32
    %c0_i32_0 = arith.constant 0 : i32
    %c0_i32_1 = arith.constant 0 : i32
    %c0_i32_2 = arith.constant 0 : i32
    return %c0_i32, %c0_i32_0, %c0_i32_1 : i32, i32, i32
  }
  func.func @transform_11(%arg0: i32) -> (i32, i32) {
    %c0_i32 = arith.constant 0 : i32
    %c0_i32_0 = arith.constant 0 : i32
    %c0_i32_1 = arith.constant 0 : i32
    return %c0_i32, %c0_i32_0 : i32, i32
  }
  func.func @transform_12(%arg0: i32) -> (i32, i32) {
    %c0_i32 = arith.constant 0 : i32
    %c0_i32_0 = arith.constant 0 : i32
    %c0_i32_1 = arith.constant 0 : i32
    return %c0_i32, %c0_i32_0 : i32, i32
  }
  func.func @transform_13(%arg0: i32) -> (i32, i32, i32) {
    %c0_i32 = arith.constant 0 : i32
    %c0_i32_0 = arith.constant 0 : i32
    %c0_i32_1 = arith.constant 0 : i32
    %c0_i32_2 = arith.constant 0 : i32
    return %c0_i32, %c0_i32_0, %c0_i32_1 : i32, i32, i32
  }
  func.func @transform_14(%arg0: i32) -> (i32, i32) {
    %c0_i32 = arith.constant 0 : i32
    %c0_i32_0 = arith.constant 0 : i32
    return %arg0, %c0_i32 : i32, i32
  }
}

</mosaic_0001>

<bundles_post_ra>
// kernel: tpu_custom_call.1
= control target key start
LH: loop header
LB: loop body
LE: loop exit
PB: predicated region body
PF: predicated region fallthrough
CT: control target
= control target key end

     0   :  { %s7099_s0 = inlined_call_operand.hbm [shape: f32[16,128], index: 0, kind: input, shape index: {}]   ;;  %s7100_s1 = inlined_call_operand.hbm [shape: f32[4,128,128], index: 1, kind: input, shape index: {}]   ;;  %s7101_s2 = inlined_call_operand.vmem [shape: f32[1,128], index: 2, kind: input, shape index: {}]   ;;  %s7102_s3 = inlined_call_operand.vmem [shape: f32[1,128], index: 3, kind: input, shape index: {}]   ;;  %s7103_s4 = inlined_call_operand.hbm [shape: f32[4,128,128], index: 4, kind: input, shape index: {}]   ;;  %s7104_s5 = inlined_call_operand.vmem [shape: f32[1,128], index: 5, kind: input, shape index: {}]   ;;  %s7105_s6 = inlined_call_operand.vmem [shape: f32[1,128], index: 6, kind: input, shape index: {}]   ;;  %s7106_s7 = inlined_call_operand.hbm [shape: f32[4,128,128], index: 7, kind: input, shape index: {}]   ;;  %s7107_s8 = inlined_call_operand.vmem [shape: f32[1,128], index: 8, kind: input, shape index: {}]   ;;  %s7108_s9 = inlined_call_operand.vmem [shape: f32[1,128], index: 9, kind: input, shape index: {}]   ;;  %s7109_s10 = inlined_call_operand.hbm [shape: f32[4,128,128], index: 10, kind: input, shape index: {}]   ;;  %s7110_s11 = inlined_call_operand.vmem [shape: f32[1,128], index: 11, kind: input, shape index: {}]   ;;  %s7111_s12 = inlined_call_operand.vmem [shape: f32[1,128], index: 12, kind: input, shape index: {}]   ;;  %s7112_s13 = inlined_call_operand.hbm [shape: f32[4,128,128], index: 13, kind: input, shape index: {}]   ;;  %s7113_s14 = inlined_call_operand.hbm [shape: f32[1024,128], index: 14, kind: output, shape index: {}]  }
   0x1   :  { %7122 = sst [smem:[#allocation22_spill]] %s7100_s1 }
   0x2   :  { %7123 = sst [smem:[#allocation23_spill]] %s7103_s4 }
   0x3   :  { %7124 = sst [smem:[#allocation24_spill]] %s7106_s7 }
   0x4   :  { %7125 = sst [smem:[#allocation25_spill]] %s7109_s10 }
   0x5   :  { %7126 = sst [smem:[#allocation26_spill]] %s7112_s13 }
   0x6   :  { %7127 = sst [smem:[#allocation27_spill]] %s7113_s14 }
   0x7   :  { %19 = vsyncpa [#allocation3], 0 }
   0x8   :  { %21 = vsyncpa [#allocation3 + $0x1], 0 }
   0x9   :  { %22 = vsyncpa [#allocation6], 0 }
   0xa   :  { %23 = vsyncpa [#allocation9], 0 }
   0xb   :  { %24 = vsyncpa [#allocation12], 0 }
   0xc   :  { %25 = vsyncpa [#allocation4], 0 }
   0xd   :  { %27 = vsyncpa [#allocation4 + $0x1], 0  ;;  %s6075_s29 = smov 0   ;;  %s6077_s30 = smov 0  }
   0xe   :  { %s6079_s15 = smov 0   ;;  %s6081_s16 = smov 0  }
   0xf LB: > { %7128 = sst [smem:[#allocation19_spill]] %s5981_s15  ;;  %s5987_s17 = smov [#allocation5]   ;;  %s5985_s16 = sphi %s6081_s16, %s7155_s16   ;;  %s5981_s15 = sphi %s6079_s15, %s7157_s15   ;;  %s5977_s30 = sphi %s6077_s30, %s7159_s30   ;;  %s5973_s29 = sphi %s6075_s29, %s7158_s29  }
  0x10   : > { %s375_s18 = sshll.u32 %s5987_s17, 4  ;;  %s6096_s19 = sadd.s32 4294967295, %s5985_s16   ;;  %s376_s18 = int_to_ptr.vmem [resolvable:$true] %s375_s18 }
  0x11   : > { %p3913_p0 = scmp.ge.s32.totalorder %s5985_s16, 1  ;;  %p7115_p1 = scmp.eq.s32.totalorder %s6096_s19, 0 }
  0x12   : > { %p363_p2 = scmp.lt.s32.totalorder %s5985_s16, 3  ;;  %s5988_s21 = smov [#allocation8]  }
  0x13   : > { %s413_s22 = sshll.u32 %s5988_s21, 4  ;;  %s5989_s24 = smov [#allocation7]   ;;  %s6114_s22 = int_to_ptr.vmem [resolvable:$true] %s413_s22 }
  0x14   : > { %p6101_p3 = pnand %p3913_p0, %p363_p2  ;;  %s394_s25 = sshll.u32 %s5989_s24, 4  ;;  %s6116_s25 = int_to_ptr.vmem [resolvable:$true] %s394_s25 }
  0x15   : > { %s5762_s27 = scalar_lea.vmem %s376_s18, 8192  ;;  %p5770_p11 = scmp.lt.s32.totalorder %s376_s18, %s376_s18 }
  0x16   : > { %s7129_s20 = scalar_select %p6101_p3, 1, 0 }
  0x17   : > { %p5544_p5 = pneg %p6101_p3  ;;  %p5763_p8 = scmp.ne.s32.totalorder %s376_s18, %s5762_s27 }
  0x18   : > { %p5771_p12 = scmp.lt.s32.totalorder %s5762_s27, %s5762_s27 }
  0x19   : > { %p6110_p6 = pnand %p5544_p5, %p7115_p1 }
  0x1a   : > { %p5772_p13 = por %p5771_p12, %p5770_p11 }
  0x1b   : > { %p6120_p7 = pneg %p6110_p6 }
  0x1d   : > { %p5765_p9 = pnand %p5763_p8, %p6120_p7 }
  0x1f   : > { %p5766_p10 = pneg %p5765_p9 }
  0x21   : > { %p5773_p0 = pnand %p5772_p13, %p5766_p10 }
  0x23   : > { %5776 = shalt.err (!%p5773_p0)
}
  0x24   : > { %s5990_s28 = smov 128   ;;  %s5991_s17 = smov 8  }
  0x25   : > { %s7132_s1 = sld [smem:[#allocation22_spill]]  ;;  %s5788_s14 = scalar_lea.vmem %s6114_s22, 8192 }
  0x26   : > { %p5789_p2 = scmp.ne.s32.totalorder %s6114_s22, %s5788_s14  ;;  %p5796_p9 = scmp.lt.s32.totalorder %s6114_s22, %s6114_s22 }
  0x27   : > { %p5797_p10 = scmp.lt.s32.totalorder %s5788_s14, %s5788_s14 }
  0x28   : > { %p5791_p5 = pnand %p5789_p2, %p6120_p7 }
  0x29   : > { %p5798_p11 = por %p5797_p10, %p5796_p9 }
  0x2a   : > { %p5792_p8 = pneg %p5791_p5 }
  0x2b   : > { %5547 = dma.hbm_to_vmem [thread:$0]  (!%p6110_p6), %s7132_s1, 8192, %s376_s18, [#allocation6], %s5990_s28, %s5990_s28, %s5991_s17  }
  0x2c   : > { %p5799_p12 = pnand %p5798_p11, %p5792_p8 }
  0x2e   : > { %5802 = shalt.err (!%p5799_p12)
}
  0x2f   : > { %s7133_s7 = sld [smem:[#allocation24_spill]]  ;;  %s5814_s18 = scalar_lea.vmem %s6116_s25, 8192 }
  0x30   : > { %p5815_p13 = scmp.ne.s32.totalorder %s6116_s25, %s5814_s18  ;;  %p5822_p5 = scmp.lt.s32.totalorder %s6116_s25, %s6116_s25 }
  0x31   : > { %p5823_p8 = scmp.lt.s32.totalorder %s5814_s18, %s5814_s18 }
  0x32   : > { %p5817_p0 = pnand %p5815_p13, %p6120_p7 }
  0x33   : > { %p5824_p9 = por %p5823_p8, %p5822_p5 }
  0x34   : > { %p5818_p2 = pneg %p5817_p0 }
  0x35   : > { %5553 = dma.hbm_to_vmem [thread:$0]  (!%p6110_p6), %s7133_s7, 8192, %s6114_s22, [#allocation9], %s5990_s28, %s5990_s28, %s5991_s17  }
  0x36   : > { %p5825_p10 = pnand %p5824_p9, %p5818_p2 }
  0x38   : > { %5828 = shalt.err (!%p5825_p10)
}
  0x39   : > { %s7134_s4 = sld [smem:[#allocation23_spill]]  ;;  %s5992_s22 = smov [#allocation10]  }
  0x3a   : > { %s432_s27 = sshll.u32 %s5992_s22, 4  ;;  %s5993_s21 = smov [#allocation11]   ;;  %s433_s27 = int_to_ptr.vmem [resolvable:$true] %s432_s27 }
  0x3b   : > { %s451_s1 = sshll.u32 %s5993_s21, 4  ;;  %s5840_s18 = scalar_lea.vmem %s433_s27, 8192  ;;  %s452_s1 = int_to_ptr.vmem [resolvable:$true] %s451_s1 }
  0x3c   : > { %p5841_p11 = scmp.ne.s32.totalorder %s433_s27, %s5840_s18  ;;  %p5848_p0 = scmp.lt.s32.totalorder %s433_s27, %s433_s27 }
  0x3d   : > { %p5849_p2 = scmp.lt.s32.totalorder %s5840_s18, %s5840_s18 }
  0x3e   : > { %p5843_p12 = pnand %p5841_p11, %p6120_p7 }
  0x3f   : > { %5550 = dma.hbm_to_vmem [thread:$0]  (!%p6110_p6), %s7134_s4, 8192, %s6116_s25, [#allocation6], %s5990_s28, %s5990_s28, %s5991_s17  }
  0x40   : > { %p5844_p13 = pneg %p5843_p12  ;;  %p5850_p5 = por %p5849_p2, %p5848_p0 }
  0x42   : > { %p5851_p8 = pnand %p5850_p5, %p5844_p13 }
  0x44   : > { %5854 = shalt.err (!%p5851_p8)
}
  0x45   : > { %s7135_s10 = sld [smem:[#allocation25_spill]]  ;;  %s5866_s24 = scalar_lea.vmem %s452_s1, 8192 }
  0x46   : > { %p5867_p9 = scmp.ne.s32.totalorder %s452_s1, %s5866_s24  ;;  %p5874_p12 = scmp.lt.s32.totalorder %s452_s1, %s452_s1 }
  0x47   : > { %p5875_p0 = scmp.lt.s32.totalorder %s5866_s24, %s5866_s24 }
  0x48   : > { %p5869_p10 = pnand %p5867_p9, %p6120_p7 }
  0x49   : > { %p5876_p13 = por %p5875_p0, %p5874_p12 }
  0x4a   : > { %p5870_p11 = pneg %p5869_p10 }
  0x4b   : > { %5556 = dma.hbm_to_vmem [thread:$0]  (!%p6110_p6), %s7135_s10, 8192, %s433_s27, [#allocation9], %s5990_s28, %s5990_s28, %s5991_s17  }
  0x4c   : > { %p5877_p2 = pnand %p5876_p13, %p5870_p11 }
  0x4e   : > { %5880 = shalt.err (!%p5877_p2)
}
  0x4f   : > { %s7136_s13 = sld [smem:[#allocation26_spill]]  ;;  %s3912_s23 = sadd.s32 4294967294, %s5985_s16  }
  0x50   : > { %s6186_s26 = sadd.s32 1, %s5985_s16   ;;  %s40_s27 = sadd.s32 1, %s5981_s15 }
  0x51   : > { %7137 = sst [smem:[#allocation20_spill]] %s6186_s26  ;;  %s37_s18 = ssub.s32 %s5985_s16, %s6186_s26 }
  0x52   : > { %p47_p7 = scmp.ne.s32.totalorder %s5981_s15, %s5977_s30  ;;  %p38_p5 = scmp.eq.s32.totalorder %s37_s18, 0 }
  0x53   : > { %p48_p8 = scmp.eq.s32.totalorder %s5985_s16, 0  ;;  %p53_p9 = scmp.ne.s32.totalorder %s5977_s30, %s5973_s29 }
  0x54   : > { %p350_p10 = scmp.eq.s32.totalorder %s6096_s19, 1  ;;  %p356_p0 = scmp.eq.s32.totalorder %s3912_s23, 1 }
  0x55   : > { %5559 = dma.hbm_to_vmem [thread:$0]  (!%p6110_p6), %s7136_s13, 8192, %s452_s1, [#allocation12], %s5990_s28, %s5990_s28, %s5991_s17  }
  0x56   : > { %s6198_s25 = scalar_select %p38_p5, %s5981_s15, %s40_s27  }
  0x57   : > { %p49_p11 = por %p48_p8, %p47_p7  ;;  %p6202_p12 = por %p7115_p1, %p53_p9 }
  0x58   : > { %7138 = sst [smem:[#allocation21_spill]] %s6198_s25  ;;  %p6206_p6 = por %p350_p10, %p47_p7 }
  0x59   : > { %s7139_s14 = scalar_select %p6202_p12, 1, 0 }
  0x5a   : > { %s7140_s1 = scalar_select %p6206_p6, 1, 0 }
  0x5b   : > { %p5573_p13 = scmp.lt.s32.totalorder %s5985_s16, 2  ;;  %s465_s28 = sand.u32 1, %s5981_s15  }
  0x5c   : > { %p6212_p2 = por %p356_p0, %p53_p9  ;;  %s3920_s24 = sshll.u32 %s465_s28, 3 }
  0x5d   : > { %s3921_s22 = sshll.u32 %s5985_s16, 7  ;;  %s469_s4 = scalar_lea.vmem [#allocation2], %s3920_s24 }
  0x5e   : > { %s7141_s17 = scalar_select %p6212_p2, 1, 0 }
  0x5f   : > { %s6220_s18 = scalar_lea.hbm %s7099_s0, %s3921_s22  ;;  %s476_s7 = sshll.u32 %s469_s4, 4  ;;  %s477_s7 = int_to_ptr.vmem [resolvable:$true] %s476_s7 }
  0x60   : > { %p6222_p7 = pnand %p5573_p13, %p49_p11  ;;  %s466_s10 = scalar_lea.sflag [#allocation3], %s465_s28 }
  0x61   : > { %s5881_s13 = scalar_lea.hbm %s6220_s18, 128  ;;  %s5886_s27 = scalar_lea.hbm %s7099_s0, 256 }
  0x62   : > { %p5882_p5 = scmp.ne.s32.totalorder %s6220_s18, %s5881_s13  ;;  %p5883_p8 = pneg %p6222_p7 }
  0x63   : > { %p5887_p11 = scmp.lt.s32.totalorder %s6220_s18, %s7099_s0  ;;  %p5888_p0 = scmp.lt.s32.totalorder %s5886_s27, %s5881_s13 }
  0x64   : > { %p5884_p9 = pnand %p5883_p8, %p5882_p5 }
  0x65   : > { %p5889_p13 = por %p5888_p0, %p5887_p11 }
  0x66   : > { %p5885_p10 = pneg %p5884_p9 }
  0x68   : > { %p5890_p4 = pnand %p5889_p13, %p5885_p10 }
  0x6a   : > { %5893 = shalt.err (!%p5890_p4)
}
  0x6b   : > { %s5894_s4 = scalar_lea.vmem %s477_s7, 128  ;;  %s5994_s28 = smov [#allocation2]  }
  0x6c   : > { %p5895_p1 = scmp.ne.s32.totalorder %s477_s7, %s5894_s4  ;;  %s5899_s15 = sshll.u32 %s5994_s28, 4  ;;  %s5900_s15 = int_to_ptr.vmem [resolvable:$false] %s5899_s15 }
  0x6d   : > { %s5901_s26 = scalar_lea.vmem %s5900_s15, 256  ;;  %p5902_p5 = scmp.lt.s32.totalorder %s477_s7, %s5900_s15 }
  0x6e   : > { %p5897_p2 = pnand %p5895_p1, %p5883_p8  ;;  %p5903_p9 = scmp.lt.s32.totalorder %s5901_s26, %s5894_s4 }
  0x70   : > { %p5898_p6 = pneg %p5897_p2  ;;  %p5904_p12 = por %p5903_p9, %p5902_p5 }
  0x72   : > { %p5905_p3 = pnand %p5904_p12, %p5898_p6 }
  0x74   : > { %5908 = shalt.err (!%p5905_p3)
}
  0x75   : > { %5563 = dma.hbm_to_vmem [thread:$0]  (!%p6222_p7), %s6220_s18, 128, %s477_s7, %s466_s10  }
  0x76   : > { %p7143_p10 = scmp.ne.s32.totalorder %s7129_s20, 0 }
  0x77   : > { %s6243_s13 = sand.u32 (!%p7143_p10), 1, %s5977_s30   ;;  %p7144_p1 = scmp.ne.s32.totalorder (!%p7143_p10), %s7139_s14, 0 }
  0x78   : > { %485 = sbr.rel (%p7143_p10) target bundleno = 1429 (0x595), region = 76  ;;  %s3923_s25 = sshll.u32 (!%p7143_p10), %s6243_s13, 3 }
  0x79   : > { %s488_s22 = scalar_lea.sflag (!%p7143_p10), [#allocation3], %s6243_s13  ;;  %s6247_s15 = scalar_lea.vmem (!%p7143_p10), [#allocation2], %s3923_s25 }
  0x7d   : > { %5952 = dma.done.wait (%p7144_p1), %s488_s22, 128  }
  0x7e   : > { %5954 = vsyncadd (%p7144_p1), %s488_s22, 4294967168  ;;  %p7145_p3 = scmp.eq.s32.totalorder %s6096_s19, 0 }
  0x80   : > { %5956 = dma.done.wait (%p7145_p3), [#allocation6], 16384   ;;  %p7146_p4 = pmov %p7145_p3 }
  0x81   : > { %p7147_p12 = pmov %p7145_p3 }
  0x82   : > { %5958 = vsyncadd (%p7146_p4), [#allocation6], 4294950912 }
  0x83   : > { %5960 = dma.done.wait (%p7147_p12), [#allocation9], 16384   ;;  %p7148_p6 = pmov %p7145_p3 }
  0x84   : > { %p7149_p2 = pmov %p7145_p3 }
  0x85   : > { %5962 = vsyncadd (%p7148_p6), [#allocation9], 4294950912 }
  0x86   : > { %5964 = dma.done.wait (%p7149_p2), [#allocation12], 8192   ;;  %p7150_p7 = pmov %p7149_p2 }
  0x87   : > { %v5995_v0 = vmov 0.0   ;;  %vm5996_vm0 = vmmov 0   ;;  %v573_v1 = vld [vmem:[#allocation5 + $0x78] sm:$0xff]  ;;  %v572_v3 = vld [vmem:[#allocation5 + $0x70] sm:$0xff]  ;;  %v571_v5 = vld [vmem:[#allocation5 + $0x68] sm:$0xff]  ;;  %s3929_s10 = sshll.u32 %s6243_s13, 9 }
  0x88   : > { %5966 = vsyncadd (%p7150_p7), [#allocation12], 4294959104  ;;  %4508 = vmatprep.subr.mxu0 %v5995_v0  ;;  %4543 = vmatprep.subr.mxu1 %v5995_v0  ;;  %v660_v2 = vld [vmem:[#allocation5 + $0xf8] sm:$0xff]  ;;  %v659_v4 = vld [vmem:[#allocation5 + $0xf0] sm:$0xff]  ;;  %s6983_s20 = scalar_lea.vmem [#allocation13], %s3929_s10  ;;  %s3943_s26 = sshll.u32 %s6096_s19, 13 }
  0x89   : > { %4540 = vmatprep.mubr.msk.f32.mxu0 %vm5996_vm0, %v5995_v0  ;;  %4575 = vmatprep.mubr.msk.f32.mxu1 %vm5996_vm0, %v5995_v0  ;;  %v658_v6 = vld [vmem:[#allocation5 + $0xe8] sm:$0xff]  ;;  %v570_v7 = vld [vmem:[#allocation5 + $0x60] sm:$0xff]  ;;  %v569_v9 = vld [vmem:[#allocation5 + $0x58] sm:$0xff]  ;;  %s3791_s14 = sshll.u32 %s6983_s20, 4  ;;  %s7151_s21 = sld [smem:[#allocation27_spill]]  ;;  %s7054_s14 = int_to_ptr.vmem [resolvable:$true] %s3791_s14 }
  0x8a   : > { %4509 = vmatpush3.msra.mxu0 %v573_v1  ;;  %4544 = vmatpush3.msra.mxu1 %v660_v2  ;;  %v657_v8 = vld [vmem:[#allocation5 + $0xe0] sm:$0xff]  ;;  %v656_v10 = vld [vmem:[#allocation5 + $0xd8] sm:$0xff]  ;;  %v568_v11 = vld [vmem:[#allocation5 + $0x50] sm:$0xff]  ;;  %s3778_s24 = scalar_lea.sflag [#allocation4], %s6243_s13  ;;  %s5909_s4 = scalar_lea.vmem %s7054_s14, 8192 }
  0x8b   : > { %4510 = vmatprep.subr.mxu0 %v5995_v0  ;;  %4545 = vmatprep.subr.mxu1 %v5995_v0  ;;  %v655_v12 = vld [vmem:[#allocation5 + $0xd0] sm:$0xff]  ;;  %v567_v13 = vld [vmem:[#allocation5 + $0x48] sm:$0xff]  ;;  %v566_v15 = vld [vmem:[#allocation5 + $0x40] sm:$0xff]  ;;  %p5910_p8 = scmp.ne.s32.totalorder %s7054_s14, %s5909_s4  ;;  %p7152_p11 = scmp.ne.s32.totalorder %s7140_s1, 0 }
  0x8c   : > { %4511 = vmatpush3.msra.mxu0 %v572_v3  ;;  %4546 = vmatpush3.msra.mxu1 %v659_v4  ;;  %v654_v14 = vld [vmem:[#allocation5 + $0xc8] sm:$0xff]  ;;  %v653_v16 = vld [vmem:[#allocation5 + $0xc0] sm:$0xff]  ;;  %v565_v17 = vld [vmem:[#allocation5 + $0x38] sm:$0xff]  ;;  %s5997_s19 = smov [#allocation13]  }
  0x8d   : > { %4512 = vmatprep.subr.mxu0 %v5995_v0  ;;  %4547 = vmatprep.subr.mxu1 %v5995_v0  ;;  %v652_v18 = vld [vmem:[#allocation5 + $0xb8] sm:$0xff]  ;;  %v564_v19 = vld [vmem:[#allocation5 + $0x30] sm:$0xff]  ;;  %v563_v21 = vld [vmem:[#allocation5 + $0x28] sm:$0xff]  ;;  %p5911_p0 = pnand %p5910_p8, %p7152_p11  ;;  %s5913_s28 = sshll.u32 %s5997_s19, 4  ;;  %s5914_s28 = int_to_ptr.vmem [resolvable:$false] %s5913_s28 }
  0x8e   : > { %4513 = vmatpush3.msra.mxu0 %v571_v5  ;;  %4548 = vmatpush3.msra.mxu1 %v658_v6  ;;  %v651_v20 = vld [vmem:[#allocation5 + $0xb0] sm:$0xff]  ;;  %v650_v22 = vld [vmem:[#allocation5 + $0xa8] sm:$0xff]  ;;  %v562_v23 = vld [vmem:[#allocation5 + $0x20] sm:$0xff]  ;;  %s5915_s25 = scalar_lea.vmem %s5914_s28, 16384  ;;  %p5916_p5 = scmp.lt.s32.totalorder %s7054_s14, %s5914_s28 }
  0x8f   : > { %4514 = vmatprep.subr.mxu0 %v5995_v0  ;;  %4549 = vmatprep.subr.mxu1 %v5995_v0  ;;  %v649_v24 = vld [vmem:[#allocation5 + $0xa0] sm:$0xff]  ;;  %v561_v25 = vld [vmem:[#allocation5 + $0x18] sm:$0xff]  ;;  %v560_v27 = vld [vmem:[#allocation5 + $0x10] sm:$0xff]  ;;  %s7052_s27 = scalar_lea.hbm %s7151_s21, %s3943_s26  ;;  %p5912_p13 = pneg %p5911_p0 }
  0x90   : > { %4515 = vmatpush3.msra.mxu0 %v570_v7  ;;  %4550 = vmatpush3.msra.mxu1 %v657_v8  ;;  %v648_v26 = vld [vmem:[#allocation5 + $0x98] sm:$0xff]  ;;  %v647_v28 = vld [vmem:[#allocation5 + $0x90] sm:$0xff]  ;;  %v559_v29 = vld [vmem:[#allocation5 + $0x8] sm:$0xff]  ;;  %p5917_p9 = scmp.lt.s32.totalorder %s5915_s25, %s5909_s4 }
  0x91   : > { %4516 = vmatprep.subr.mxu0 %v5995_v0  ;;  %4551 = vmatprep.subr.mxu1 %v5995_v0  ;;  %v646_v30 = vld [vmem:[#allocation5 + $0x88] sm:$0xff]  ;;  %v558_v31 = vld [vmem:[#allocation5] sm:$0xff]  ;;  %v6300_v33 = vld [vmem:[%s6247_s15] sm:$0xff] }
  0x92   : > { %4517 = vmatpush3.msra.mxu0 %v569_v9  ;;  %4552 = vmatpush3.msra.mxu1 %v656_v10  ;;  %v645_v32 = vld [vmem:[#allocation5 + $0x80] sm:$0xff]  ;;  %v747_v34 = vld [vmem:[#allocation5 + $0x178] sm:$0xff]  ;;  %v746_v36 = vld [vmem:[#allocation5 + $0x170] sm:$0xff]  ;;  %p5918_p10 = por %p5917_p9, %p5916_p5 }
  0x93   : > { %4518 = vmatprep.subr.mxu0 %v5995_v0  ;;  %4553 = vmatprep.subr.mxu1 %v5995_v0  ;;  %v834_v35 = vld [vmem:[#allocation5 + $0x1f8] sm:$0xff]  ;;  %v833_v37 = vld [vmem:[#allocation5 + $0x1f0] sm:$0xff]  ;;  %v745_v38 = vld [vmem:[#allocation5 + $0x168] sm:$0xff] }
  0x94   : > { %4519 = vmatpush3.msra.mxu0 %v568_v11  ;;  %4554 = vmatpush3.msra.mxu1 %v655_v12  ;;  %v832_v39 = vld [vmem:[#allocation5 + $0x1e8] sm:$0xff]  ;;  %v744_v40 = vld [vmem:[#allocation5 + $0x160] sm:$0xff]  ;;  %v743_v42 = vld [vmem:[#allocation5 + $0x158] sm:$0xff]  ;;  %p5919_p1 = pnand %p5918_p10, %p5912_p13 }
  0x95   : > { %4520 = vmatprep.subr.mxu0 %v5995_v0  ;;  %4555 = vmatprep.subr.mxu1 %v5995_v0  ;;  %v831_v41 = vld [vmem:[#allocation5 + $0x1e0] sm:$0xff]  ;;  %v830_v43 = vld [vmem:[#allocation5 + $0x1d8] sm:$0xff]  ;;  %v742_v44 = vld [vmem:[#allocation5 + $0x150] sm:$0xff] }
  0x96   : > { %4521 = vmatpush3.msra.mxu0 %v567_v13  ;;  %4556 = vmatpush3.msra.mxu1 %v654_v14  ;;  %v829_v45 = vld [vmem:[#allocation5 + $0x1d0] sm:$0xff]  ;;  %v741_v46 = vld [vmem:[#allocation5 + $0x148] sm:$0xff]  ;;  %v740_v48 = vld [vmem:[#allocation5 + $0x140] sm:$0xff] }
  0x97   : > { %4522 = vmatprep.subr.mxu0 %v5995_v0  ;;  %4557 = vmatprep.subr.mxu1 %v5995_v0  ;;  %v828_v47 = vld [vmem:[#allocation5 + $0x1c8] sm:$0xff]  ;;  %v827_v49 = vld [vmem:[#allocation5 + $0x1c0] sm:$0xff]  ;;  %v739_v50 = vld [vmem:[#allocation5 + $0x138] sm:$0xff] }
  0x98   : > { %4523 = vmatpush3.msra.mxu0 %v566_v15  ;;  %4558 = vmatpush3.msra.mxu1 %v653_v16  ;;  %v826_v51 = vld [vmem:[#allocation5 + $0x1b8] sm:$0xff]  ;;  %v738_v52 = vld [vmem:[#allocation5 + $0x130] sm:$0xff]  ;;  %v737_v54 = vld [vmem:[#allocation5 + $0x128] sm:$0xff] }
  0x99   : > { %4524 = vmatprep.subr.mxu0 %v5995_v0  ;;  %4559 = vmatprep.subr.mxu1 %v5995_v0  ;;  %v825_v53 = vld [vmem:[#allocation5 + $0x1b0] sm:$0xff]  ;;  %v824_v55 = vld [vmem:[#allocation5 + $0x1a8] sm:$0xff]  ;;  %v736_v56 = vld [vmem:[#allocation5 + $0x120] sm:$0xff] }
  0x9a   : > { %4525 = vmatpush3.msra.mxu0 %v565_v17  ;;  %4560 = vmatpush3.msra.mxu1 %v652_v18  ;;  %v823_v57 = vld [vmem:[#allocation5 + $0x1a0] sm:$0xff]  ;;  %v735_v58 = vld [vmem:[#allocation5 + $0x118] sm:$0xff]  ;;  %v734_v60 = vld [vmem:[#allocation5 + $0x110] sm:$0xff] }
  0x9b   : > { %4526 = vmatprep.subr.mxu0 %v5995_v0  ;;  %4561 = vmatprep.subr.mxu1 %v5995_v0  ;;  %v822_v59 = vld [vmem:[#allocation5 + $0x198] sm:$0xff]  ;;  %v821_v61 = vld [vmem:[#allocation5 + $0x190] sm:$0xff]  ;;  %v733_v62 = vld [vmem:[#allocation5 + $0x108] sm:$0xff] }
  0x9c   : > { %4527 = vmatpush3.msra.mxu0 %v564_v19  ;;  %4562 = vmatpush3.msra.mxu1 %v651_v20  ;;  %v820_v63 = vld [vmem:[#allocation5 + $0x188] sm:$0xff]  ;;  %v732_v1 = vld [vmem:[#allocation5 + $0x100] sm:$0xff]  ;;  %v964_v3 = vld [vmem:[#allocation7 + $0x1f8] sm:$0xff] }
  0x9d   : > { %4528 = vmatprep.subr.mxu0 %v5995_v0  ;;  %4563 = vmatprep.subr.mxu1 %v5995_v0  ;;  %v819_v2 = vld [vmem:[#allocation5 + $0x180] sm:$0xff]  ;;  %v947_v4 = vld [vmem:[#allocation7 + $0xf8] sm:$0xff]  ;;  %v963_v5 = vld [vmem:[#allocation7 + $0x1f0] sm:$0xff] }
  0x9e   : > { %4529 = vmatpush3.msra.mxu0 %v563_v21  ;;  %4564 = vmatpush3.msra.mxu1 %v650_v22  ;;  %v946_v6 = vld [vmem:[#allocation7 + $0xf0] sm:$0xff]  ;;  %v962_v7 = vld [vmem:[#allocation7 + $0x1e8] sm:$0xff]  ;;  %v961_v9 = vld [vmem:[#allocation7 + $0x1e0] sm:$0xff] }
  0x9f   : > { %4530 = vmatprep.subr.mxu0 %v5995_v0  ;;  %4565 = vmatprep.subr.mxu1 %v5995_v0  ;;  %v945_v8 = vld [vmem:[#allocation7 + $0xe8] sm:$0xff]  ;;  %v944_v10 = vld [vmem:[#allocation7 + $0xe0] sm:$0xff]  ;;  %v960_v11 = vld [vmem:[#allocation7 + $0x1d8] sm:$0xff] }
  0xa0   : > { %4531 = vmatpush3.msra.mxu0 %v562_v23  ;;  %4566 = vmatpush3.msra.mxu1 %v649_v24  ;;  %v943_v12 = vld [vmem:[#allocation7 + $0xd8] sm:$0xff]  ;;  %v959_v13 = vld [vmem:[#allocation7 + $0x1d0] sm:$0xff]  ;;  %v958_v15 = vld [vmem:[#allocation7 + $0x1c8] sm:$0xff] }
  0xa1   : > { %4532 = vmatprep.subr.mxu0 %v5995_v0  ;;  %4567 = vmatprep.subr.mxu1 %v5995_v0  ;;  %v942_v14 = vld [vmem:[#allocation7 + $0xd0] sm:$0xff]  ;;  %v941_v16 = vld [vmem:[#allocation7 + $0xc8] sm:$0xff]  ;;  %v957_v17 = vld [vmem:[#allocation7 + $0x1c0] sm:$0xff] }
  0xa2   : > { %4533 = vmatpush3.msra.mxu0 %v561_v25  ;;  %4568 = vmatpush3.msra.mxu1 %v648_v26  ;;  %v940_v18 = vld [vmem:[#allocation7 + $0xc0] sm:$0xff]  ;;  %v956_v19 = vld [vmem:[#allocation7 + $0x1b8] sm:$0xff]  ;;  %v955_v21 = vld [vmem:[#allocation7 + $0x1b0] sm:$0xff] }
  0xa3   : > { %4534 = vmatprep.subr.mxu0 %v5995_v0  ;;  %4569 = vmatprep.subr.mxu1 %v5995_v0  ;;  %v939_v20 = vld [vmem:[#allocation7 + $0xb8] sm:$0xff]  ;;  %v938_v22 = vld [vmem:[#allocation7 + $0xb0] sm:$0xff]  ;;  %v954_v23 = vld [vmem:[#allocation7 + $0x1a8] sm:$0xff] }
  0xa4   : > { %4535 = vmatpush3.msra.mxu0 %v560_v27  ;;  %4570 = vmatpush3.msra.mxu1 %v647_v28  ;;  %v937_v24 = vld [vmem:[#allocation7 + $0xa8] sm:$0xff]  ;;  %v953_v25 = vld [vmem:[#allocation7 + $0x1a0] sm:$0xff]  ;;  %v952_v27 = vld [vmem:[#allocation7 + $0x198] sm:$0xff] }
  0xa5   : > { %4536 = vmatprep.subr.mxu0 %v5995_v0  ;;  %4571 = vmatprep.subr.mxu1 %v5995_v0  ;;  %v936_v26 = vld [vmem:[#allocation7 + $0xa0] sm:$0xff]  ;;  %v935_v28 = vld [vmem:[#allocation7 + $0x98] sm:$0xff] }
  0xa6   : > { %4537 = vmatpush3.msra.mxu0 %v559_v29  ;;  %4572 = vmatpush3.msra.mxu1 %v646_v30  ;;  %v951_v29 = vld [vmem:[#allocation7 + $0x190] sm:$0xff] }
  0xa7   : > { %4538 = vmatprep.subr.mxu0 %v5995_v0  ;;  %4573 = vmatprep.subr.mxu1 %v5995_v0  ;;  %v934_v30 = vld [vmem:[#allocation7 + $0x90] sm:$0xff] }
  0xa8   : > { %4539 = vmatpush3.msra.mxu0 %v558_v31  ;;  %4574 = vmatpush3.msra.mxu1 %v645_v32  ;;  %v950_v31 = vld [vmem:[#allocation7 + $0x188] sm:$0xff] }
  0xa9   : > { %4541 = vmatmul.mubr.f32.vlgmr.msra.gmra.mxu0 %v6300_v33  ;;  %4576 = vmatmul.mubr.f32.vlgmr.msra.gmra.mxu1 %v6300_v33  ;;  %v933_v32 = vld [vmem:[#allocation7 + $0x88] sm:$0xff] }
  0xaa   : > { %4578 = vmatprep.subr.mxu0 %v5995_v0  ;;  %4613 = vmatprep.subr.mxu1 %v5995_v0 }
  0xab   : > { %4579 = vmatpush3.msra.mxu0 %v747_v34  ;;  %4614 = vmatpush3.msra.mxu1 %v834_v35  ;;  %v932_v34 = vld [vmem:[#allocation7 + $0x80] sm:$0xff]  ;;  %v1167_v35 = vld [vmem:[#allocation7 + $0x78] sm:$0xff] }
  0xac   : > { %4580 = vmatprep.subr.mxu0 %v5995_v0  ;;  %4615 = vmatprep.subr.mxu1 %v5995_v0 }
  0xad   : > { %4581 = vmatpush3.msra.mxu0 %v746_v36  ;;  %4616 = vmatpush3.msra.mxu1 %v833_v37  ;;  %v1151_v36 = vld [vmem:[#allocation7 + $0x178] sm:$0xff]  ;;  %v6348_v37 = vld [vmem:[%s7101_s2] ss:$0 sm:$0xff] }
  0xae   : > { %4582 = vmatprep.subr.mxu0 %v5995_v0  ;;  %4617 = vmatprep.subr.mxu1 %v5995_v0 }
  0xaf   : > { %4583 = vmatpush3.msra.mxu0 %v745_v38  ;;  %4618 = vmatpush3.msra.mxu1 %v832_v39  ;;  %v6353_v39 = vld [vmem:[%s7102_s3] ss:$0 sm:$0xff] }
  0xb0   : > { %4584 = vmatprep.subr.mxu0 %v5995_v0  ;;  %4619 = vmatprep.subr.mxu1 %v5995_v0 }
  0xb1   : > { %4585 = vmatpush3.msra.mxu0 %v744_v40  ;;  %4620 = vmatpush3.msra.mxu1 %v831_v41 }
  0xb2   : > { %4586 = vmatprep.subr.mxu0 %v5995_v0  ;;  %4621 = vmatprep.subr.mxu1 %v5995_v0 }
  0xb3   : > { %4587 = vmatpush3.msra.mxu0 %v743_v42  ;;  %4622 = vmatpush3.msra.mxu1 %v830_v43 }
  0xb4   : > { %4588 = vmatprep.subr.mxu0 %v5995_v0  ;;  %4623 = vmatprep.subr.mxu1 %v5995_v0 }
  0xb5   : > { %4589 = vmatpush3.msra.mxu0 %v742_v44  ;;  %4624 = vmatpush3.msra.mxu1 %v829_v45 }
  0xb6   : > { %4590 = vmatprep.subr.mxu0 %v5995_v0  ;;  %4625 = vmatprep.subr.mxu1 %v5995_v0 }
  0xb7   : > { %4591 = vmatpush3.msra.mxu0 %v741_v46  ;;  %4626 = vmatpush3.msra.mxu1 %v828_v47 }
  0xb8   : > { %4592 = vmatprep.subr.mxu0 %v5995_v0  ;;  %4627 = vmatprep.subr.mxu1 %v5995_v0 }
  0xb9   : > { %4593 = vmatpush3.msra.mxu0 %v740_v48  ;;  %4628 = vmatpush3.msra.mxu1 %v827_v49  ;;  %v1166_v49 = vld [vmem:[#allocation7 + $0x70] sm:$0xff] }
  0xba   : > { %4594 = vmatprep.subr.mxu0 %v5995_v0  ;;  %4629 = vmatprep.subr.mxu1 %v5995_v0 }
  0xbb   : > { %4595 = vmatpush3.msra.mxu0 %v739_v50  ;;  %4630 = vmatpush3.msra.mxu1 %v826_v51  ;;  %v1150_v50 = vld [vmem:[#allocation7 + $0x170] sm:$0xff]  ;;  %v1165_v51 = vld [vmem:[#allocation7 + $0x68] sm:$0xff] }
  0xbc   : > { %4596 = vmatprep.subr.mxu0 %v5995_v0  ;;  %4631 = vmatprep.subr.mxu1 %v5995_v0 }
  0xbd   : > { %4597 = vmatpush3.msra.mxu0 %v738_v52  ;;  %4632 = vmatpush3.msra.mxu1 %v825_v53  ;;  %v1149_v52 = vld [vmem:[#allocation7 + $0x168] sm:$0xff]  ;;  %v1164_v53 = vld [vmem:[#allocation7 + $0x60] sm:$0xff] }
  0xbe   : > { %4598 = vmatprep.subr.mxu0 %v5995_v0  ;;  %4633 = vmatprep.subr.mxu1 %v5995_v0 }
  0xbf   : > { %4599 = vmatpush3.msra.mxu0 %v737_v54  ;;  %4634 = vmatpush3.msra.mxu1 %v824_v55  ;;  %v1148_v54 = vld [vmem:[#allocation7 + $0x160] sm:$0xff]  ;;  %v1163_v55 = vld [vmem:[#allocation7 + $0x58] sm:$0xff] }
  0xc0   : > { %4600 = vmatprep.subr.mxu0 %v5995_v0  ;;  %4635 = vmatprep.subr.mxu1 %v5995_v0 }
  0xc1   : > { %4601 = vmatpush3.msra.mxu0 %v736_v56  ;;  %4636 = vmatpush3.msra.mxu1 %v823_v57  ;;  %v1147_v56 = vld [vmem:[#allocation7 + $0x158] sm:$0xff]  ;;  %v1162_v57 = vld [vmem:[#allocation7 + $0x50] sm:$0xff] }
  0xc2   : > { %4602 = vmatprep.subr.mxu0 %v5995_v0  ;;  %4637 = vmatprep.subr.mxu1 %v5995_v0 }
  0xc3   : > { %4603 = vmatpush3.msra.mxu0 %v735_v58  ;;  %4638 = vmatpush3.msra.mxu1 %v822_v59  ;;  %v1146_v58 = vld [vmem:[#allocation7 + $0x150] sm:$0xff]  ;;  %v1161_v59 = vld [vmem:[#allocation7 + $0x48] sm:$0xff] }
  0xc4   : > { %4604 = vmatprep.subr.mxu0 %v5995_v0  ;;  %4639 = vmatprep.subr.mxu1 %v5995_v0 }
  0xc5   : > { %4605 = vmatpush3.msra.mxu0 %v734_v60  ;;  %4640 = vmatpush3.msra.mxu1 %v821_v61  ;;  %v1145_v60 = vld [vmem:[#allocation7 + $0x148] sm:$0xff]  ;;  %v1160_v61 = vld [vmem:[#allocation7 + $0x40] sm:$0xff] }
  0xc6   : > { %4606 = vmatprep.subr.mxu0 %v5995_v0  ;;  %4641 = vmatprep.subr.mxu1 %v5995_v0 }
  0xc7   : > { %4607 = vmatpush3.msra.mxu0 %v733_v62  ;;  %4642 = vmatpush3.msra.mxu1 %v820_v63  ;;  %v1144_v62 = vld [vmem:[#allocation7 + $0x140] sm:$0xff]  ;;  %v1159_v63 = vld [vmem:[#allocation7 + $0x38] sm:$0xff] }
  0xc8   : > { %4608 = vmatprep.subr.mxu0 %v5995_v0  ;;  %4643 = vmatprep.subr.mxu1 %v5995_v0 }
  0xc9   : > { %4609 = vmatpush3.msra.mxu0 %v732_v1  ;;  %4610 = vmatprep.mubr.msk.f32.mxu0 %vm5996_vm0, %v5995_v0  ;;  %v1143_v1 = vld [vmem:[#allocation7 + $0x138] sm:$0xff] }
  0xca   : > { %4644 = vmatpush3.msra.mxu1 %v819_v2  ;;  %4645 = vmatprep.mubr.msk.f32.mxu1 %vm5996_vm0, %v5995_v0  ;;  %v1158_v2 = vld [vmem:[#allocation7 + $0x30] sm:$0xff] }
  0xcb   : > { %4611 = vmatmul.mubr.f32.vlgmr.msra.gmra.mxu0 %v6300_v33  ;;  %4646 = vmatmul.mubr.f32.vlgmr.msra.gmra.mxu1 %v6300_v33  ;;  %v949_v33 = vld [vmem:[#allocation7 + $0x180] sm:$0xff] }
  0xcc   : > { %4648 = vmatprep.subr.mxu0 %v964_v3  ;;  %4686 = vmatprep.subr.mxu1 %v947_v4 }
  0xcd   : > { %4649 = vmatpush3.msra.mxu0 %v964_v3  ;;  %4687 = vmatpush3.msra.mxu1 %v947_v4  ;;  %v1142_v3 = vld [vmem:[#allocation7 + $0x130] sm:$0xff]  ;;  %v1157_v4 = vld [vmem:[#allocation7 + $0x28] sm:$0xff] }
  0xce   : > { %4650 = vmatprep.subr.mxu0 %v963_v5  ;;  %4688 = vmatprep.subr.mxu1 %v946_v6 }
  0xcf   : > { %4651 = vmatpush3.msra.mxu0 %v963_v5  ;;  %4689 = vmatpush3.msra.mxu1 %v946_v6  ;;  %v1141_v5 = vld [vmem:[#allocation7 + $0x128] sm:$0xff]  ;;  %v1156_v6 = vld [vmem:[#allocation7 + $0x20] sm:$0xff] }
  0xd0   : > { %4652 = vmatprep.subr.mxu0 %v962_v7  ;;  %4690 = vmatprep.subr.mxu1 %v945_v8 }
  0xd1   : > { %4653 = vmatpush3.msra.mxu0 %v962_v7  ;;  %4691 = vmatpush3.msra.mxu1 %v945_v8  ;;  %v1140_v7 = vld [vmem:[#allocation7 + $0x120] sm:$0xff]  ;;  %v1155_v8 = vld [vmem:[#allocation7 + $0x18] sm:$0xff] }
  0xd2   : > { %4654 = vmatprep.subr.mxu0 %v961_v9  ;;  %4692 = vmatprep.subr.mxu1 %v944_v10 }
  0xd3   : > { %4655 = vmatpush3.msra.mxu0 %v961_v9  ;;  %4693 = vmatpush3.msra.mxu1 %v944_v10  ;;  %v1139_v9 = vld [vmem:[#allocation7 + $0x118] sm:$0xff]  ;;  %v1154_v10 = vld [vmem:[#allocation7 + $0x10] sm:$0xff] }
  0xd4   : > { %4656 = vmatprep.subr.mxu0 %v960_v11  ;;  %4694 = vmatprep.subr.mxu1 %v943_v12 }
  0xd5   : > { %4657 = vmatpush3.msra.mxu0 %v960_v11  ;;  %4695 = vmatpush3.msra.mxu1 %v943_v12  ;;  %v1138_v11 = vld [vmem:[#allocation7 + $0x110] sm:$0xff]  ;;  %v1153_v12 = vld [vmem:[#allocation7 + $0x8] sm:$0xff] }
  0xd6   : > { %4658 = vmatprep.subr.mxu0 %v959_v13  ;;  %4696 = vmatprep.subr.mxu1 %v942_v14 }
  0xd7   : > { %4659 = vmatpush3.msra.mxu0 %v959_v13  ;;  %4697 = vmatpush3.msra.mxu1 %v942_v14  ;;  %v1137_v13 = vld [vmem:[#allocation7 + $0x108] sm:$0xff] }
  0xd8   : > { %4660 = vmatprep.subr.mxu0 %v958_v15  ;;  %4698 = vmatprep.subr.mxu1 %v941_v16 }
  0xd9   : > { %4661 = vmatpush3.msra.mxu0 %v958_v15  ;;  %4699 = vmatpush3.msra.mxu1 %v941_v16 }
  0xda   : > { %4662 = vmatprep.subr.mxu0 %v957_v17  ;;  %4700 = vmatprep.subr.mxu1 %v940_v18 }
  0xdb   : > { %4663 = vmatpush3.msra.mxu0 %v957_v17  ;;  %4701 = vmatpush3.msra.mxu1 %v940_v18  ;;  %v1152_v18 = vld [vmem:[#allocation7] sm:$0xff] }
  0xdc   : > { %4664 = vmatprep.subr.mxu0 %v956_v19  ;;  %4702 = vmatprep.subr.mxu1 %v939_v20 }
  0xdd   : > { %4665 = vmatpush3.msra.mxu0 %v956_v19  ;;  %4703 = vmatpush3.msra.mxu1 %v939_v20  ;;  %v1136_v19 = vld [vmem:[#allocation7 + $0x100] sm:$0xff] }
  0xde   : > { %4666 = vmatprep.subr.mxu0 %v955_v21  ;;  %4704 = vmatprep.subr.mxu1 %v938_v22 }
  0xdf   : > { %4667 = vmatpush3.msra.mxu0 %v955_v21  ;;  %4705 = vmatpush3.msra.mxu1 %v938_v22 }
  0xe0   : > { %4668 = vmatprep.subr.mxu0 %v954_v23  ;;  %4706 = vmatprep.subr.mxu1 %v937_v24 }
  0xe1   : > { %4669 = vmatpush3.msra.mxu0 %v954_v23  ;;  %4707 = vmatpush3.msra.mxu1 %v937_v24  ;;  %v1409_v24 = vld [vmem:[#allocation8 + $0x1f8] sm:$0xff] }
  0xe2   : > { %4670 = vmatprep.subr.mxu0 %v953_v25  ;;  %4708 = vmatprep.subr.mxu1 %v936_v26 }
  0xe3   : > { %4671 = vmatpush3.msra.mxu0 %v953_v25  ;;  %4709 = vmatpush3.msra.mxu1 %v936_v26 }
  0xe4   : > { %4672 = vmatprep.subr.mxu0 %v952_v27  ;;  %4680 = vmatprep.mubr.f32.mxu0 %v5995_v0 }
  0xe5   : > { %4673 = vmatpush3.msra.mxu0 %v952_v27  ;;  %4710 = vmatprep.subr.mxu1 %v935_v28  ;;  %v1408_v27 = vld [vmem:[#allocation8 + $0x1f0] sm:$0xff] }
  0xe6   : > { %4674 = vmatprep.subr.mxu0 %v951_v29  ;;  %4711 = vmatpush3.msra.mxu1 %v935_v28  ;;  %v1407_v28 = vld [vmem:[#allocation8 + $0x1e8] sm:$0xff] }
  0xe7   : > { %4675 = vmatpush3.msra.mxu0 %v951_v29  ;;  %4712 = vmatprep.subr.mxu1 %v934_v30  ;;  %v1406_v29 = vld [vmem:[#allocation8 + $0x1e0] sm:$0xff] }
  0xe8   : > { %4676 = vmatprep.subr.mxu0 %v950_v31  ;;  %4713 = vmatpush3.msra.mxu1 %v934_v30  ;;  %v1405_v30 = vld [vmem:[#allocation8 + $0x1d8] sm:$0xff] }
  0xe9   : > { %4677 = vmatpush3.msra.mxu0 %v950_v31  ;;  %4714 = vmatprep.subr.mxu1 %v933_v32  ;;  %v1404_v31 = vld [vmem:[#allocation8 + $0x1d0] sm:$0xff] }
  0xea   : > { %4678 = vmatprep.subr.mxu0 %v949_v33  ;;  %4715 = vmatpush3.msra.mxu1 %v933_v32  ;;  %v1403_v32 = vld [vmem:[#allocation8 + $0x1c8] sm:$0xff] }
  0xeb   : > { %4679 = vmatpush3.msra.mxu0 %v949_v33  ;;  %4716 = vmatprep.subr.mxu1 %v932_v34  ;;  %v1402_v33 = vld [vmem:[#allocation8 + $0x1c0] sm:$0xff] }
  0xec   : > { %4717 = vmatpush3.msra.mxu1 %v932_v34  ;;  %4724 = vmatprep.subr.mxu0 %v1167_v35  ;;  %v1401_v34 = vld [vmem:[#allocation8 + $0x1b8] sm:$0xff] }
  0xed   : > { %4762 = vmatprep.subr.mxu1 %v1151_v36 }
 0x169   : > { %v640_v38 = vpop.f32.mrf.mxu0  ;;  %v727_v40 = vpop.f32.mrf.mxu1 }
 0x16a   : > { %v912_v41 = vmul.f32 %v6348_v37, %v640_v38  ;;  %v913_v42 = vmul.f32 %v6348_v37, %v727_v40  ;;  %v1397_v38 = vld [vmem:[#allocation8 + $0x198] sm:$0xff]  ;;  %v1395_v40 = vld [vmem:[#allocation8 + $0x188] sm:$0xff] }
 0x16b   : > { %v4542_v43 = vpop.f32.mrf.mxu0  ;;  %v4577_v44 = vpop.f32.mrf.mxu1 }
 0x16c   : > { %v923_v45 = vadd.f32 %v6353_v39, %v912_v41  ;;  %v924_v46 = vadd.f32 %v6353_v39, %v913_v42  ;;  %v1394_v41 = vld [vmem:[#allocation8 + $0x180] sm:$0xff]  ;;  %v1392_v42 = vld [vmem:[#allocation8 + $0xf8] sm:$0xff]  ;;  %v1391_v43 = vld [vmem:[#allocation8 + $0xf0] sm:$0xff] }
 0x16d   : > { %v1390_v44 = vld [vmem:[#allocation8 + $0xe8] sm:$0xff] }
 0x16e   : > { %v6359_v47 = vmax.f32 %v923_v45, 0.0  ;;  %v6361_v48 = vmax.f32 %v924_v46, 0.0  ;;  %v1652_v45 = vld [vmem:[#allocation8 + $0x78] sm:$0xff]  ;;  %v1389_v46 = vld [vmem:[#allocation8 + $0xe0] sm:$0xff] }
 0x170   : > { %4681 = vmatmul.mubr.f32.vlgmr.msra.gmra.mxu0 %v6359_v47  ;;  %4718 = vmatprep.mubr.f32.mxu1 %v6359_v47 }
 0x171   : > { %4719 = vmatmul.mubr.f32.vlgmr.msra.gmra.mxu1 %v6361_v48  ;;  %4683 = vmatprep.mubr.f32.mxu0 %v6361_v48 }
 0x172   : > { %4725 = vmatpush3.msra.mxu0 %v1167_v35  ;;  %4763 = vmatpush3.msra.mxu1 %v1151_v36  ;;  %v1400_v35 = vld [vmem:[#allocation8 + $0x1b0] sm:$0xff]  ;;  %v1399_v36 = vld [vmem:[#allocation8 + $0x1a8] sm:$0xff] }
 0x173   : > { %4726 = vmatprep.subr.mxu0 %v1166_v49  ;;  %4764 = vmatprep.subr.mxu1 %v1150_v50 }
 0x174   : > { %4727 = vmatpush3.msra.mxu0 %v1166_v49  ;;  %4765 = vmatpush3.msra.mxu1 %v1150_v50  ;;  %v1386_v49 = vld [vmem:[#allocation8 + $0xc8] sm:$0xff]  ;;  %v1385_v50 = vld [vmem:[#allocation8 + $0xc0] sm:$0xff] }
 0x175   : > { %4728 = vmatprep.subr.mxu0 %v1165_v51  ;;  %4766 = vmatprep.subr.mxu1 %v1149_v52 }
 0x176   : > { %4729 = vmatpush3.msra.mxu0 %v1165_v51  ;;  %4767 = vmatpush3.msra.mxu1 %v1149_v52  ;;  %v1384_v51 = vld [vmem:[#allocation8 + $0xb8] sm:$0xff]  ;;  %v1383_v52 = vld [vmem:[#allocation8 + $0xb0] sm:$0xff] }
 0x177   : > { %4730 = vmatprep.subr.mxu0 %v1164_v53  ;;  %4768 = vmatprep.subr.mxu1 %v1148_v54 }
 0x178   : > { %4731 = vmatpush3.msra.mxu0 %v1164_v53  ;;  %4769 = vmatpush3.msra.mxu1 %v1148_v54  ;;  %v1382_v53 = vld [vmem:[#allocation8 + $0xa8] sm:$0xff]  ;;  %v1381_v54 = vld [vmem:[#allocation8 + $0xa0] sm:$0xff] }
 0x179   : > { %4732 = vmatprep.subr.mxu0 %v1163_v55  ;;  %4770 = vmatprep.subr.mxu1 %v1147_v56 }
 0x17a   : > { %4733 = vmatpush3.msra.mxu0 %v1163_v55  ;;  %4771 = vmatpush3.msra.mxu1 %v1147_v56  ;;  %v1380_v55 = vld [vmem:[#allocation8 + $0x98] sm:$0xff]  ;;  %v1379_v56 = vld [vmem:[#allocation8 + $0x90] sm:$0xff] }
 0x17b   : > { %4734 = vmatprep.subr.mxu0 %v1162_v57  ;;  %4772 = vmatprep.subr.mxu1 %v1146_v58 }
 0x17c   : > { %4735 = vmatpush3.msra.mxu0 %v1162_v57  ;;  %4773 = vmatpush3.msra.mxu1 %v1146_v58  ;;  %v1378_v57 = vld [vmem:[#allocation8 + $0x88] sm:$0xff]  ;;  %v1377_v58 = vld [vmem:[#allocation8 + $0x80] sm:$0xff] }
 0x17d   : > { %4736 = vmatprep.subr.mxu0 %v1161_v59  ;;  %4774 = vmatprep.subr.mxu1 %v1145_v60 }
 0x17e   : > { %4737 = vmatpush3.msra.mxu0 %v1161_v59  ;;  %4775 = vmatpush3.msra.mxu1 %v1145_v60  ;;  %v6376_v59 = vld [vmem:[#allocation8 + $0x178] sm:$0xff] }
 0x17f   : > { %4738 = vmatprep.subr.mxu0 %v1160_v61  ;;  %4776 = vmatprep.subr.mxu1 %v1144_v62 }
 0x180   : > { %4739 = vmatpush3.msra.mxu0 %v1160_v61  ;;  %4777 = vmatpush3.msra.mxu1 %v1144_v62 }
 0x181   : > { %4740 = vmatprep.subr.mxu0 %v1159_v63  ;;  %4778 = vmatprep.subr.mxu1 %v1143_v1 }
 0x182   : > { %4741 = vmatpush3.msra.mxu0 %v1159_v63  ;;  %4779 = vmatpush3.msra.mxu1 %v1143_v1 }
 0x183   : > { %4742 = vmatprep.subr.mxu0 %v1158_v2  ;;  %4780 = vmatprep.subr.mxu1 %v1142_v3 }
 0x184   : > { %4743 = vmatpush3.msra.mxu0 %v1158_v2  ;;  %4781 = vmatpush3.msra.mxu1 %v1142_v3  ;;  %v6382_v2 = vld [vmem:[%s7104_s5] ss:$0 sm:$0xff] }
 0x185   : > { %4744 = vmatprep.subr.mxu0 %v1157_v4  ;;  %4782 = vmatprep.subr.mxu1 %v1141_v5 }
 0x186   : > { %4745 = vmatpush3.msra.mxu0 %v1157_v4  ;;  %4783 = vmatpush3.msra.mxu1 %v1141_v5  ;;  %v6388_v4 = vld [vmem:[%s7105_s6] ss:$0 sm:$0xff] }
 0x187   : > { %4746 = vmatprep.subr.mxu0 %v1156_v6  ;;  %4784 = vmatprep.subr.mxu1 %v1140_v7 }
 0x188   : > { %4747 = vmatpush3.msra.mxu0 %v1156_v6  ;;  %4785 = vmatpush3.msra.mxu1 %v1140_v7  ;;  %v1651_v7 = vld [vmem:[#allocation8 + $0x70] sm:$0xff] }
 0x189   : > { %4748 = vmatprep.subr.mxu0 %v1155_v8  ;;  %4786 = vmatprep.subr.mxu1 %v1139_v9 }
 0x18a   : > { %4749 = vmatpush3.msra.mxu0 %v1155_v8  ;;  %4787 = vmatpush3.msra.mxu1 %v1139_v9  ;;  %v1650_v8 = vld [vmem:[#allocation8 + $0x68] sm:$0xff]  ;;  %v1649_v9 = vld [vmem:[#allocation8 + $0x60] sm:$0xff] }
 0x18b   : > { %v814_v14 = vpop.f32.mrf.mxu0  ;;  %v901_v15 = vpop.f32.mrf.mxu1  ;;  %4750 = vmatprep.subr.mxu0 %v1154_v10  ;;  %4788 = vmatprep.subr.mxu1 %v1138_v11 }
 0x18c   : > { %v914_v16 = vmul.f32 %v6348_v37, %v814_v14  ;;  %v915_v17 = vmul.f32 %v6348_v37, %v901_v15  ;;  %4751 = vmatpush3.msra.mxu0 %v1154_v10  ;;  %4789 = vmatpush3.msra.mxu1 %v1138_v11  ;;  %v1398_v37 = vld [vmem:[#allocation8 + $0x1a0] sm:$0xff]  ;;  %v1648_v10 = vld [vmem:[#allocation8 + $0x58] sm:$0xff]  ;;  %v1647_v11 = vld [vmem:[#allocation8 + $0x50] sm:$0xff] }
 0x18d   : > { %v4612_v20 = vpop.f32.mrf.mxu0  ;;  %v4647_v21 = vpop.f32.mrf.mxu1  ;;  %4752 = vmatprep.subr.mxu0 %v1153_v12  ;;  %4790 = vmatprep.subr.mxu1 %v1137_v13  ;;  %v1644_v14 = vld [vmem:[#allocation8 + $0x38] sm:$0xff]  ;;  %v1643_v15 = vld [vmem:[#allocation8 + $0x30] sm:$0xff] }
 0x18e   : > { %v925_v22 = vadd.f32 %v6353_v39, %v914_v16  ;;  %v926_v23 = vadd.f32 %v6353_v39, %v915_v17  ;;  %4753 = vmatpush3.msra.mxu0 %v1153_v12  ;;  %4791 = vmatpush3.msra.mxu1 %v1137_v13  ;;  %v1396_v39 = vld [vmem:[#allocation8 + $0x190] sm:$0xff]  ;;  %v1646_v12 = vld [vmem:[#allocation8 + $0x48] sm:$0xff]  ;;  %v1645_v13 = vld [vmem:[#allocation8 + $0x40] sm:$0xff] }
 0x18f   : > { %4754 = vmatprep.subr.mxu0 %v1152_v18  ;;  %4792 = vmatprep.subr.mxu1 %v1136_v19  ;;  %v1642_v16 = vld [vmem:[#allocation8 + $0x28] sm:$0xff]  ;;  %v1641_v17 = vld [vmem:[#allocation8 + $0x20] sm:$0xff]  ;;  %v1639_v21 = vld [vmem:[#allocation8 + $0x10] sm:$0xff] }
 0x190   : > { %v929_v25 = vmax.f32 %v925_v22, 0.0  ;;  %v930_v26 = vmax.f32 %v926_v23, 0.0  ;;  %4755 = vmatpush3.msra.mxu0 %v1152_v18  ;;  %4793 = vmatpush3.msra.mxu1 %v1136_v19  ;;  %v1640_v18 = vld [vmem:[#allocation8 + $0x18] sm:$0xff] }
 0x191   : > { %4800 = vmatprep.subr.mxu0 %v1409_v24  ;;  %4844 = vmatprep.subr.mxu1 %v1392_v42 }
 0x192   : > { %4684 = vmatmul.mubr.f32.gmra.mxu0 %v929_v25  ;;  %4721 = vmatprep.mubr.f32.mxu1 %v929_v25 }
 0x193   : > { %4722 = vmatmul.mubr.f32.gmra.mxu1 %v930_v26  ;;  %4756 = vmatprep.mubr.f32.mxu0 %v6361_v48 }
 0x194   : > { %4794 = vmatprep.mubr.f32.mxu1 %v6359_v47  ;;  %v1388_v47 = vld [vmem:[#allocation8 + $0xd8] sm:$0xff] }
 0x196   : > { %4757 = vmatmul.mubr.f32.vlgmr.msra.gmra.mxu0 %v929_v25 }
 0x197   : > { %4759 = vmatprep.mubr.f32.mxu0 %v930_v26  ;;  %4795 = vmatmul.mubr.f32.vlgmr.msra.gmra.mxu1 %v6361_v48  ;;  %v1387_v48 = vld [vmem:[#allocation8 + $0xd0] sm:$0xff] }
 0x198   : > { %4797 = vmatprep.mubr.f32.mxu1 %v929_v25  ;;  %4801 = vmatpush3.msra.mxu0 %v1409_v24  ;;  %v1638_v25 = vld [vmem:[#allocation8 + $0x8] sm:$0xff] }
 0x199   : > { %4802 = vmatprep.subr.mxu0 %v1408_v27  ;;  %4845 = vmatpush3.msra.mxu1 %v1392_v42 }
 0x19a   : > { %4760 = vmatmul.mubr.f32.gmra.mxu0 %v5995_v0  ;;  %4846 = vmatprep.subr.mxu1 %v1391_v43 }
 0x19b   : > { %4798 = vmatmul.mubr.f32.gmra.mxu1 %v930_v26  ;;  %4803 = vmatpush3.msra.mxu0 %v1408_v27 }
 0x19c   : > { %4804 = vmatprep.subr.mxu0 %v1407_v28  ;;  %4832 = vmatprep.mubr.f32.mxu0 %v5995_v0 }
 0x19d   : > { %4805 = vmatpush3.msra.mxu0 %v1407_v28  ;;  %4847 = vmatpush3.msra.mxu1 %v1391_v43  ;;  %v1637_v28 = vld [vmem:[#allocation8] sm:$0xff] }
 0x19e   : > { %4806 = vmatprep.subr.mxu0 %v1406_v29  ;;  %4848 = vmatprep.subr.mxu1 %v1390_v44 }
 0x19f   : > { %4807 = vmatpush3.msra.mxu0 %v1406_v29  ;;  %4849 = vmatpush3.msra.mxu1 %v1390_v44 }
 0x1a0   : > { %4808 = vmatprep.subr.mxu0 %v1405_v30  ;;  %4850 = vmatprep.subr.mxu1 %v1389_v46 }
 0x1a1   : > { %4809 = vmatpush3.msra.mxu0 %v1405_v30  ;;  %4851 = vmatpush3.msra.mxu1 %v1389_v46 }
 0x1a2   : > { %4810 = vmatprep.subr.mxu0 %v1404_v31  ;;  %4852 = vmatprep.subr.mxu1 %v1388_v47 }
 0x1a3   : > { %4811 = vmatpush3.msra.mxu0 %v1404_v31  ;;  %4853 = vmatpush3.msra.mxu1 %v1388_v47 }
 0x1a4   : > { %4812 = vmatprep.subr.mxu0 %v1403_v32  ;;  %4854 = vmatprep.subr.mxu1 %v1387_v48 }
 0x1a5   : > { %4813 = vmatpush3.msra.mxu0 %v1403_v32  ;;  %4855 = vmatpush3.msra.mxu1 %v1387_v48 }
 0x1a6   : > { %4814 = vmatprep.subr.mxu0 %v1402_v33  ;;  %4856 = vmatprep.subr.mxu1 %v1386_v49 }
 0x1a7   : > { %4815 = vmatpush3.msra.mxu0 %v1402_v33  ;;  %4857 = vmatpush3.msra.mxu1 %v1386_v49 }
 0x1a8   : > { %4816 = vmatprep.subr.mxu0 %v1401_v34  ;;  %4858 = vmatprep.subr.mxu1 %v1385_v50 }
 0x1a9   : > { %4817 = vmatpush3.msra.mxu0 %v1401_v34  ;;  %4859 = vmatpush3.msra.mxu1 %v1385_v50 }
 0x1aa   : > { %4818 = vmatprep.subr.mxu0 %v1400_v35  ;;  %4860 = vmatprep.subr.mxu1 %v1384_v51 }
 0x1ab   : > { %4819 = vmatpush3.msra.mxu0 %v1400_v35  ;;  %4861 = vmatpush3.msra.mxu1 %v1384_v51 }
 0x1ac   : > { %4820 = vmatprep.subr.mxu0 %v1399_v36  ;;  %4862 = vmatprep.subr.mxu1 %v1383_v52 }
 0x1ad   : > { %4821 = vmatpush3.msra.mxu0 %v1399_v36  ;;  %4863 = vmatpush3.msra.mxu1 %v1383_v52 }
 0x1ae   : > { %4822 = vmatprep.subr.mxu0 %v1398_v37  ;;  %4864 = vmatprep.subr.mxu1 %v1382_v53 }
 0x1af   : > { %4823 = vmatpush3.msra.mxu0 %v1398_v37  ;;  %4865 = vmatpush3.msra.mxu1 %v1382_v53  ;;  %v1635_v53 = vld [vmem:[#allocation8 + $0x170] sm:$0xff] }
 0x1b0   : > { %4824 = vmatprep.subr.mxu0 %v1397_v38  ;;  %4866 = vmatprep.subr.mxu1 %v1381_v54 }
 0x1b1   : > { %4825 = vmatpush3.msra.mxu0 %v1397_v38  ;;  %4867 = vmatpush3.msra.mxu1 %v1381_v54 }
 0x1b2   : > { %4826 = vmatprep.subr.mxu0 %v1396_v39  ;;  %4868 = vmatprep.subr.mxu1 %v1380_v55 }
 0x1b3   : > { %4827 = vmatpush3.msra.mxu0 %v1396_v39  ;;  %4869 = vmatpush3.msra.mxu1 %v1380_v55 }
 0x1b4   : > { %4828 = vmatprep.subr.mxu0 %v1395_v40  ;;  %4870 = vmatprep.subr.mxu1 %v1379_v56 }
 0x1b5   : > { %4829 = vmatpush3.msra.mxu0 %v1395_v40  ;;  %4871 = vmatpush3.msra.mxu1 %v1379_v56  ;;  %v1634_v56 = vld [vmem:[#allocation8 + $0x168] sm:$0xff] }
 0x1b6   : > { %4830 = vmatprep.subr.mxu0 %v1394_v41  ;;  %4872 = vmatprep.subr.mxu1 %v1378_v57 }
 0x1b7   : > { %4831 = vmatpush3.msra.mxu0 %v1394_v41  ;;  %4873 = vmatpush3.msra.mxu1 %v1378_v57 }
 0x1b8   : > { %4888 = vmatprep.subr.mxu0 %v1652_v45  ;;  %4874 = vmatprep.subr.mxu1 %v1377_v58 }
 0x1b9   : > { %4875 = vmatpush3.msra.mxu1 %v1377_v58 }
 0x1ba   : > { %4932 = vmatprep.subr.mxu1 %v6376_v59 }
 0x230   : > { %v4682_v60 = vpop.f32.mrf.mxu0 }
 0x231   : > { %v4720_v61 = vpop.f32.mrf.mxu1 }
 0x232   : > { %v1031_v62 = vpop.f32.mrf.mxu0  ;;  %v1122_v23 = vadd.f32 %v4720_v61, %v4682_v60  ;;  %v1633_v61 = vld [vmem:[#allocation8 + $0x160] sm:$0xff] }
 0x233   : > { %v1116_v63 = vpop.f32.mrf.mxu1 }
 0x234   : > { %v1117_v1 = vadd.f32 %v1116_v63, %v1031_v62  ;;  %v1347_v31 = vmul.f32 %v6382_v2, %v1122_v23  ;;  %v1632_v62 = vld [vmem:[#allocation8 + $0x158] sm:$0xff]  ;;  %v1949_v23 = vld [vmem:[#allocation10 + $0x1b0] sm:$0xff] }
 0x236   : > { %v1345_v3 = vmul.f32 %v6382_v2, %v1117_v1  ;;  %v1362_v40 = vadd.f32 %v6388_v4, %v1347_v31  ;;  %v1940_v31 = vld [vmem:[#allocation10 + $0xf0] sm:$0xff] }
 0x238   : > { %v1360_v5 = vadd.f32 %v6388_v4, %v1345_v3  ;;  %v6405_v50 = vmax.f32 %v1362_v40, 0.0  ;;  %v1630_v3 = vld [vmem:[#allocation8 + $0x148] sm:$0xff] }
 0x239   : > { %v1931_v40 = vld [vmem:[#allocation10 + $0xa8] sm:$0xff] }
 0x23a   : > { %v6391_v6 = vmax.f32 %v1360_v5, 0.0 }
 0x23c   : > { %4833 = vmatmul.mubr.f32.vlgmr.msra.gmra.mxu0 %v6391_v6  ;;  %4876 = vmatprep.mubr.f32.mxu1 %v6391_v6 }
 0x23d   : > { %4889 = vmatpush3.msra.mxu0 %v1652_v45 }
 0x23e   : > { %4890 = vmatprep.subr.mxu0 %v1651_v7 }
 0x23f   : > { %4891 = vmatpush3.msra.mxu0 %v1651_v7  ;;  %v1628_v7 = vld [vmem:[#allocation8 + $0x138] sm:$0xff] }
 0x240   : > { %4892 = vmatprep.subr.mxu0 %v1650_v8 }
 0x241   : > { %4893 = vmatpush3.msra.mxu0 %v1650_v8  ;;  %v1627_v8 = vld [vmem:[#allocation8 + $0x130] sm:$0xff] }
 0x242   : > { %4894 = vmatprep.subr.mxu0 %v1649_v9 }
 0x243   : > { %4895 = vmatpush3.msra.mxu0 %v1649_v9  ;;  %v1626_v9 = vld [vmem:[#allocation8 + $0x128] sm:$0xff] }
 0x244   : > { %4896 = vmatprep.subr.mxu0 %v1648_v10 }
 0x245   : > { %4897 = vmatpush3.msra.mxu0 %v1648_v10  ;;  %v1625_v10 = vld [vmem:[#allocation8 + $0x120] sm:$0xff] }
 0x246   : > { %4898 = vmatprep.subr.mxu0 %v1647_v11 }
 0x247   : > { %4899 = vmatpush3.msra.mxu0 %v1647_v11  ;;  %v1624_v11 = vld [vmem:[#allocation8 + $0x118] sm:$0xff] }
 0x248   : > { %4900 = vmatprep.subr.mxu0 %v1646_v12 }
 0x249   : > { %4901 = vmatpush3.msra.mxu0 %v1646_v12  ;;  %v1622_v12 = vld [vmem:[#allocation8 + $0x108] sm:$0xff] }
 0x24a   : > { %4902 = vmatprep.subr.mxu0 %v1645_v13 }
 0x24b   : > { %4903 = vmatpush3.msra.mxu0 %v1645_v13  ;;  %v1621_v13 = vld [vmem:[#allocation8 + $0x100] sm:$0xff] }
 0x24c   : > { %4904 = vmatprep.subr.mxu0 %v1644_v14 }
 0x24d   : > { %4905 = vmatpush3.msra.mxu0 %v1644_v14  ;;  %v1958_v14 = vld [vmem:[#allocation10 + $0x1f8] sm:$0xff] }
 0x24e   : > { %4906 = vmatprep.subr.mxu0 %v1643_v15 }
 0x24f   : > { %4907 = vmatpush3.msra.mxu0 %v1643_v15  ;;  %v1957_v15 = vld [vmem:[#allocation10 + $0x1f0] sm:$0xff] }
 0x250   : > { %4908 = vmatprep.subr.mxu0 %v1642_v16 }
 0x251   : > { %4909 = vmatpush3.msra.mxu0 %v1642_v16  ;;  %v1956_v16 = vld [vmem:[#allocation10 + $0x1e8] sm:$0xff] }
 0x252   : > { %v4685_v19 = vpop.f32.mrf.mxu0  ;;  %4910 = vmatprep.subr.mxu0 %v1641_v17 }
 0x253   : > { %v4723_v20 = vpop.f32.mrf.mxu1  ;;  %4911 = vmatpush3.msra.mxu0 %v1641_v17  ;;  %v1955_v17 = vld [vmem:[#allocation10 + $0x1e0] sm:$0xff] }
 0x254   : > { %v1041_v22 = vpop.f32.mrf.mxu0  ;;  %4912 = vmatprep.subr.mxu0 %v1640_v18  ;;  %v1132_v41 = vadd.f32 %v4723_v20, %v4685_v19  ;;  %v1953_v19 = vld [vmem:[#allocation10 + $0x1d0] sm:$0xff]  ;;  %v1952_v20 = vld [vmem:[#allocation10 + $0x1c8] sm:$0xff] }
 0x255   : > { %v1126_v24 = vpop.f32.mrf.mxu1  ;;  %4913 = vmatpush3.msra.mxu0 %v1640_v18  ;;  %v1954_v18 = vld [vmem:[#allocation10 + $0x1d8] sm:$0xff] }
 0x256   : > { %v4758_v26 = vpop.f32.mrf.mxu0  ;;  %4914 = vmatprep.subr.mxu0 %v1639_v21  ;;  %v1127_v32 = vadd.f32 %v1126_v24, %v1041_v22  ;;  %v1351_v51 = vmul.f32 %v6382_v2, %v1132_v41  ;;  %v1950_v22 = vld [vmem:[#allocation10 + $0x1b8] sm:$0xff]  ;;  %v1948_v24 = vld [vmem:[#allocation10 + $0x1a8] sm:$0xff]  ;;  %v1930_v41 = vld [vmem:[#allocation10 + $0xa0] sm:$0xff] }
 0x257   : > { %v4796_v27 = vpop.f32.mrf.mxu1  ;;  %4915 = vmatpush3.msra.mxu0 %v1639_v21  ;;  %v1951_v21 = vld [vmem:[#allocation10 + $0x1c0] sm:$0xff] }
 0x258   : > { %v1325_v29 = vadd.f32 %v4796_v27, %v4758_v26  ;;  %v1234_v30 = vpop.f32.mrf.mxu0  ;;  %4916 = vmatprep.subr.mxu0 %v1638_v25  ;;  %v1349_v42 = vmul.f32 %v6382_v2, %v1127_v32  ;;  %v1366_v58 = vadd.f32 %v6388_v4, %v1351_v51  ;;  %v1946_v26 = vld [vmem:[#allocation10 + $0x198] sm:$0xff]  ;;  %v1945_v27 = vld [vmem:[#allocation10 + $0x190] sm:$0xff]  ;;  %v1939_v32 = vld [vmem:[#allocation10 + $0xe8] sm:$0xff] }
 0x259   : > { %v1319_v33 = vpop.f32.mrf.mxu1  ;;  %4917 = vmatpush3.msra.mxu0 %v1638_v25  ;;  %v1947_v25 = vld [vmem:[#allocation10 + $0x1a0] sm:$0xff] }
 0x25a   : > { %v1320_v34 = vadd.f32 %v1319_v33, %v1234_v30  ;;  %v4761_v35 = vpop.f32.mrf.mxu0  ;;  %4918 = vmatprep.subr.mxu0 %v1637_v28  ;;  %v1348_v36 = vmul.f32 %v6382_v2, %v1325_v29  ;;  %v1364_v52 = vadd.f32 %v6388_v4, %v1349_v42  ;;  %v6428_v1 = vmax.f32 %v1366_v58, 0.0  ;;  %v1943_v29 = vld [vmem:[#allocation10 + $0x180] sm:$0xff]  ;;  %v1941_v30 = vld [vmem:[#allocation10 + $0xf8] sm:$0xff] }
 0x25b   : > { %v4799_v37 = vpop.f32.mrf.mxu1  ;;  %4919 = vmatpush3.msra.mxu0 %v1637_v28  ;;  %v1944_v28 = vld [vmem:[#allocation10 + $0x188] sm:$0xff]  ;;  %v1938_v33 = vld [vmem:[#allocation10 + $0xe0] sm:$0xff]  ;;  %v1929_v42 = vld [vmem:[#allocation10 + $0x98] sm:$0xff] }
 0x25c   : > { %v1346_v38 = vmul.f32 %v6382_v2, %v1320_v34  ;;  %v1244_v39 = vpop.f32.mrf.mxu0  ;;  %v1363_v46 = vadd.f32 %v6388_v4, %v1348_v36  ;;  %v1335_v48 = vadd.f32 %v4799_v37, %v4761_v35  ;;  %v6419_v60 = vmax.f32 %v1364_v52, 0.0  ;;  %4976 = vmatprep.subr.mxu0 %v1958_v14  ;;  %v1937_v34 = vld [vmem:[#allocation10 + $0xd8] sm:$0xff]  ;;  %v1936_v35 = vld [vmem:[#allocation10 + $0xd0] sm:$0xff]  ;;  %v1935_v36 = vld [vmem:[#allocation10 + $0xc8] sm:$0xff] }
 0x25d   : > { %v1329_v43 = vpop.f32.mrf.mxu1  ;;  %v1934_v37 = vld [vmem:[#allocation10 + $0xc0] sm:$0xff] }
 0x25e   : > { %v1361_v44 = vadd.f32 %v6388_v4, %v1346_v38  ;;  %v1330_v45 = vadd.f32 %v1329_v43, %v1244_v39  ;;  %v6411_v54 = vmax.f32 %v1363_v46, 0.0  ;;  %v1352_v57 = vmul.f32 %v6382_v2, %v1335_v48  ;;  %v1933_v38 = vld [vmem:[#allocation10 + $0xb8] sm:$0xff]  ;;  %v1932_v39 = vld [vmem:[#allocation10 + $0xb0] sm:$0xff]  ;;  %v1926_v46 = vld [vmem:[#allocation10 + $0x80] sm:$0xff] }
 0x25f   : > { %v1928_v43 = vld [vmem:[#allocation10 + $0x90] sm:$0xff] }
 0x260   : > { %v6402_v47 = vmax.f32 %v1361_v44, 0.0  ;;  %v1350_v49 = vmul.f32 %v6382_v2, %v1330_v45  ;;  %v1367_v63 = vadd.f32 %v6388_v4, %v1352_v57  ;;  %v1631_v2 = vld [vmem:[#allocation8 + $0x150] sm:$0xff]  ;;  %v1927_v44 = vld [vmem:[#allocation10 + $0x88] sm:$0xff]  ;;  %v2281_v45 = vld [vmem:[#allocation10 + $0x78] sm:$0xff] }
 0x261   : > { %v6468_v57 = vld [vmem:[%s7108_s9] ss:$0 sm:$0xff] }
 0x262   : > { %4835 = vmatprep.mubr.f32.mxu0 %v6402_v47  ;;  %4877 = vmatmul.mubr.f32.vlgmr.msra.gmra.mxu1 %v6402_v47  ;;  %v1365_v55 = vadd.f32 %v6388_v4, %v1350_v49  ;;  %v6434_v5 = vmax.f32 %v1367_v63, 0.0  ;;  %v1629_v4 = vld [vmem:[#allocation8 + $0x140] sm:$0xff] }
 0x263   : > { %4933 = vmatpush3.msra.mxu1 %v6376_v59  ;;  %4836 = vmatmul.mubr.f32.gmra.mxu0 %v6405_v50 }
 0x264   : > { %4879 = vmatprep.mubr.f32.mxu1 %v6405_v50  ;;  %4934 = vmatprep.subr.mxu1 %v1635_v53  ;;  %v6423_v59 = vmax.f32 %v1365_v55, 0.0  ;;  %v6462_v55 = vld [vmem:[%s7107_s8] ss:$0 sm:$0xff] }
 0x265   : > { %4838 = vmatprep.mubr.f32.mxu0 %v6411_v54  ;;  %4935 = vmatpush3.msra.mxu1 %v1635_v53 }
 0x266   : > { %4936 = vmatprep.subr.mxu1 %v1634_v56  ;;  %4880 = vmatmul.mubr.f32.gmra.mxu1 %v6411_v54 }
 0x267   : > { %4937 = vmatpush3.msra.mxu1 %v1634_v56  ;;  %4839 = vmatmul.mubr.f32.gmra.mxu0 %v6419_v60 }
 0x268   : > { %4882 = vmatprep.mubr.f32.mxu1 %v6419_v60  ;;  %4938 = vmatprep.subr.mxu1 %v1633_v61 }
 0x269   : > { %4841 = vmatprep.mubr.f32.mxu0 %v6423_v59  ;;  %4939 = vmatpush3.msra.mxu1 %v1633_v61 }
 0x26a   : > { %4940 = vmatprep.subr.mxu1 %v1632_v62  ;;  %4883 = vmatmul.mubr.f32.gmra.mxu1 %v6423_v59 }
 0x26b   : > { %4941 = vmatpush3.msra.mxu1 %v1632_v62  ;;  %4842 = vmatmul.mubr.f32.gmra.mxu0 %v6428_v1  ;;  %v2280_v62 = vld [vmem:[#allocation10 + $0x70] sm:$0xff] }
 0x26c   : > { %4885 = vmatprep.mubr.f32.mxu1 %v6428_v1  ;;  %4942 = vmatprep.subr.mxu1 %v1631_v2 }
 0x26d   : > { %4920 = vmatprep.mubr.f32.mxu0 %v6402_v47  ;;  %4943 = vmatpush3.msra.mxu1 %v1631_v2 }
 0x26e   : > { %4944 = vmatprep.subr.mxu1 %v1630_v3  ;;  %4886 = vmatmul.mubr.f32.gmra.mxu1 %v6434_v5 }
 0x26f   : > { %4945 = vmatpush3.msra.mxu1 %v1630_v3  ;;  %4921 = vmatmul.mubr.f32.vlgmr.msra.gmra.mxu0 %v6405_v50  ;;  %v2278_v3 = vld [vmem:[#allocation10 + $0x60] sm:$0xff] }
 0x270   : > { %4946 = vmatprep.subr.mxu1 %v1629_v4  ;;  %4964 = vmatprep.mubr.f32.mxu1 %v6391_v6  ;;  %v1623_v6 = vld [vmem:[#allocation8 + $0x110] sm:$0xff] }
 0x271   : > { %4923 = vmatprep.mubr.f32.mxu0 %v6411_v54  ;;  %4947 = vmatpush3.msra.mxu1 %v1629_v4  ;;  %v2277_v4 = vld [vmem:[#allocation10 + $0x58] sm:$0xff] }
 0x272   : > { %4948 = vmatprep.subr.mxu1 %v1628_v7  ;;  %4977 = vmatpush3.msra.mxu0 %v1958_v14 }
 0x273   : > { %4949 = vmatpush3.msra.mxu1 %v1628_v7  ;;  %4924 = vmatmul.mubr.f32.gmra.mxu0 %v6419_v60 }
 0x274   : > { %4950 = vmatprep.subr.mxu1 %v1627_v8  ;;  %4926 = vmatprep.mubr.f32.mxu0 %v6423_v59 }
 0x275   : > { %4951 = vmatpush3.msra.mxu1 %v1627_v8  ;;  %4978 = vmatprep.subr.mxu0 %v1957_v15  ;;  %v2276_v8 = vld [vmem:[#allocation10 + $0x50] sm:$0xff] }
 0x276   : > { %4952 = vmatprep.subr.mxu1 %v1626_v9  ;;  %4979 = vmatpush3.msra.mxu0 %v1957_v15  ;;  %v2272_v15 = vld [vmem:[#allocation10 + $0x30] sm:$0xff] }
 0x277   : > { %4953 = vmatpush3.msra.mxu1 %v1626_v9  ;;  %4927 = vmatmul.mubr.f32.gmra.mxu0 %v6428_v1 }
 0x278   : > { %4954 = vmatprep.subr.mxu1 %v1625_v10  ;;  %4929 = vmatprep.mubr.f32.mxu0 %v6434_v5 }
 0x279   : > { %4955 = vmatpush3.msra.mxu1 %v1625_v10  ;;  %4980 = vmatprep.subr.mxu0 %v1956_v16  ;;  %v2275_v10 = vld [vmem:[#allocation10 + $0x48] sm:$0xff] }
 0x27a   : > { %4956 = vmatprep.subr.mxu1 %v1624_v11  ;;  %4981 = vmatpush3.msra.mxu0 %v1956_v16 }
 0x27b   : > { %4957 = vmatpush3.msra.mxu1 %v1624_v11  ;;  %4930 = vmatmul.mubr.f32.gmra.mxu0 %v5995_v0 }
 0x27c   : > { %4958 = vmatprep.subr.mxu1 %v1623_v6  ;;  %5008 = vmatprep.mubr.f32.mxu0 %v5995_v0 }
 0x27d   : > { %4959 = vmatpush3.msra.mxu1 %v1623_v6  ;;  %4982 = vmatprep.subr.mxu0 %v1955_v17  ;;  %v2274_v6 = vld [vmem:[#allocation10 + $0x40] sm:$0xff] }
 0x27e   : > { %4960 = vmatprep.subr.mxu1 %v1622_v12  ;;  %4983 = vmatpush3.msra.mxu0 %v1955_v17  ;;  %v2271_v17 = vld [vmem:[#allocation10 + $0x28] sm:$0xff] }
 0x27f   : > { %4961 = vmatpush3.msra.mxu1 %v1622_v12  ;;  %4984 = vmatprep.subr.mxu0 %v1954_v18 }
 0x280   : > { %4962 = vmatprep.subr.mxu1 %v1621_v13  ;;  %4985 = vmatpush3.msra.mxu0 %v1954_v18 }
 0x281   : > { %4963 = vmatpush3.msra.mxu1 %v1621_v13  ;;  %4986 = vmatprep.subr.mxu0 %v1953_v19  ;;  %v2273_v13 = vld [vmem:[#allocation10 + $0x38] sm:$0xff] }
 0x282   : > { %4965 = vmatmul.mubr.f32.vlgmr.msra.gmra.mxu1 %v6402_v47  ;;  %4987 = vmatpush3.msra.mxu0 %v1953_v19  ;;  %v6454_v47 = vld [vmem:[#allocation10 + $0x178] sm:$0xff] }
 0x283   : > { %4967 = vmatprep.mubr.f32.mxu1 %v6405_v50  ;;  %4988 = vmatprep.subr.mxu0 %v1952_v20 }
 0x284   : > { %4989 = vmatpush3.msra.mxu0 %v1952_v20  ;;  %5032 = vmatprep.subr.mxu1 %v1941_v30  ;;  %v2270_v20 = vld [vmem:[#allocation10 + $0x20] sm:$0xff] }
 0x285   : > { %4990 = vmatprep.subr.mxu0 %v1951_v21  ;;  %5033 = vmatpush3.msra.mxu1 %v1941_v30 }
 0x286   : > { %4968 = vmatmul.mubr.f32.gmra.mxu1 %v6411_v54  ;;  %4991 = vmatpush3.msra.mxu0 %v1951_v21 }
 0x287   : > { %4970 = vmatprep.mubr.f32.mxu1 %v6419_v60  ;;  %4992 = vmatprep.subr.mxu0 %v1950_v22 }
 0x288   : > { %4993 = vmatpush3.msra.mxu0 %v1950_v22  ;;  %5034 = vmatprep.subr.mxu1 %v1940_v31 }
 0x289   : > { %4994 = vmatprep.subr.mxu0 %v1949_v23  ;;  %5035 = vmatpush3.msra.mxu1 %v1940_v31 }
 0x28a   : > { %4971 = vmatmul.mubr.f32.gmra.mxu1 %v6423_v59  ;;  %4995 = vmatpush3.msra.mxu0 %v1949_v23  ;;  %v2269_v23 = vld [vmem:[#allocation10 + $0x18] sm:$0xff] }
 0x28b   : > { %4973 = vmatprep.mubr.f32.mxu1 %v6428_v1  ;;  %4996 = vmatprep.subr.mxu0 %v1948_v24  ;;  %v2279_v1 = vld [vmem:[#allocation10 + $0x68] sm:$0xff] }
 0x28c   : > { %4997 = vmatpush3.msra.mxu0 %v1948_v24  ;;  %5036 = vmatprep.subr.mxu1 %v1939_v32 }
 0x28d   : > { %4998 = vmatprep.subr.mxu0 %v1947_v25  ;;  %5037 = vmatpush3.msra.mxu1 %v1939_v32 }
 0x28e   : > { %4974 = vmatmul.mubr.f32.gmra.mxu1 %v6434_v5  ;;  %4999 = vmatpush3.msra.mxu0 %v1947_v25 }
 0x28f   : > { %5000 = vmatprep.subr.mxu0 %v1946_v26  ;;  %5038 = vmatprep.subr.mxu1 %v1938_v33 }
 0x290   : > { %5001 = vmatpush3.msra.mxu0 %v1946_v26  ;;  %5039 = vmatpush3.msra.mxu1 %v1938_v33  ;;  %v2267_v33 = vld [vmem:[#allocation10 + $0x8] sm:$0xff] }
 0x291   : > { %5002 = vmatprep.subr.mxu0 %v1945_v27  ;;  %5040 = vmatprep.subr.mxu1 %v1937_v34 }
 0x292   : > { %5003 = vmatpush3.msra.mxu0 %v1945_v27  ;;  %5041 = vmatpush3.msra.mxu1 %v1937_v34 }
 0x293   : > { %5004 = vmatprep.subr.mxu0 %v1944_v28  ;;  %5042 = vmatprep.subr.mxu1 %v1936_v35 }
 0x294   : > { %5005 = vmatpush3.msra.mxu0 %v1944_v28  ;;  %5043 = vmatpush3.msra.mxu1 %v1936_v35  ;;  %v2268_v28 = vld [vmem:[#allocation10 + $0x10] sm:$0xff] }
 0x295   : > { %5006 = vmatprep.subr.mxu0 %v1943_v29  ;;  %5044 = vmatprep.subr.mxu1 %v1935_v36 }
 0x296   : > { %5007 = vmatpush3.msra.mxu0 %v1943_v29  ;;  %5045 = vmatpush3.msra.mxu1 %v1935_v36 }
 0x297   : > { %5046 = vmatprep.subr.mxu1 %v1934_v37  ;;  %5088 = vmatprep.subr.mxu0 %v2281_v45 }
 0x298   : > { %5047 = vmatpush3.msra.mxu1 %v1934_v37 }
 0x299   : > { %5048 = vmatprep.subr.mxu1 %v1933_v38 }
 0x29a   : > { %5049 = vmatpush3.msra.mxu1 %v1933_v38 }
 0x29b   : > { %5050 = vmatprep.subr.mxu1 %v1932_v39 }
 0x29c   : > { %5051 = vmatpush3.msra.mxu1 %v1932_v39  ;;  %v2266_v39 = vld [vmem:[#allocation10] sm:$0xff] }
 0x29d   : > { %5052 = vmatprep.subr.mxu1 %v1931_v40 }
 0x29e   : > { %5053 = vmatpush3.msra.mxu1 %v1931_v40 }
 0x29f   : > { %5054 = vmatprep.subr.mxu1 %v1930_v41 }
 0x2a0   : > { %5055 = vmatpush3.msra.mxu1 %v1930_v41 }
 0x2a1   : > { %5056 = vmatprep.subr.mxu1 %v1929_v42 }
 0x2a2   : > { %5057 = vmatpush3.msra.mxu1 %v1929_v42 }
 0x2a3   : > { %5058 = vmatprep.subr.mxu1 %v1928_v43 }
 0x2a4   : > { %5059 = vmatpush3.msra.mxu1 %v1928_v43 }
 0x2a5   : > { %5060 = vmatprep.subr.mxu1 %v1927_v44 }
 0x2a6   : > { %5061 = vmatpush3.msra.mxu1 %v1927_v44 }
 0x2a7   : > { %5062 = vmatprep.subr.mxu1 %v1926_v46 }
 0x2a8   : > { %5063 = vmatpush3.msra.mxu1 %v1926_v46 }
 0x2a9   : > { %5144 = vmatprep.subr.mxu1 %v6454_v47 }
 0x2fc   : > { %v4834_v48 = vpop.f32.mrf.mxu0 }
 0x2fe   : > { %v1476_v49 = vpop.f32.mrf.mxu0 }
 0x322   : > { %v4878_v50 = vpop.f32.mrf.mxu1 }
 0x323   : > { %v6457_v51 = vpop.f32.mrf.mxu0  ;;  %v1587_v18 = vadd.f32 %v4878_v50, %v4834_v48 }
 0x324   : > { %v1581_v52 = vpop.f32.mrf.mxu1 }
 0x325   : > { %v1582_v53 = vadd.f32 %v1581_v52, %v1476_v49  ;;  %v1486_v54 = vpop.f32.mrf.mxu0  ;;  %v1872_v25 = vmul.f32 %v6462_v55, %v1587_v18 }
 0x326   : > { %v6475_v59 = vpop.f32.mrf.mxu1 }
 0x327   : > { %v1870_v56 = vmul.f32 %v6462_v55, %v1582_v53  ;;  %v6471_v60 = vpop.f32.mrf.mxu0  ;;  %v1895_v35 = vadd.f32 %v6468_v57, %v1872_v25  ;;  %v1597_v36 = vadd.f32 %v6475_v59, %v6457_v51 }
 0x328   : > { %v1591_v2 = vpop.f32.mrf.mxu1 }
 0x329   : > { %v1893_v58 = vadd.f32 %v6468_v57, %v1870_v56  ;;  %v6477_v63 = vpop.f32.mrf.mxu0  ;;  %v1592_v26 = vadd.f32 %v1591_v2, %v1486_v54  ;;  %v6503_v49 = vmax.f32 %v1895_v35, 0.0  ;;  %v1876_v50 = vmul.f32 %v6462_v55, %v1597_v36  ;;  %v2264_v54 = vld [vmem:[#allocation10 + $0x170] sm:$0xff] }
 0x32a   : > { %v6483_v7 = vpop.f32.mrf.mxu1 }
 0x32b   : > { %v6473_v61 = vmax.f32 %v1893_v58, 0.0  ;;  %v6481_v5 = vpop.f32.mrf.mxu0  ;;  %v1874_v37 = vmul.f32 %v6462_v55, %v1592_v26 }
 0x32c   : > { %v1601_v11 = vpop.f32.mrf.mxu1 }
 0x32d   : > { %5009 = vmatmul.mubr.f32.vlgmr.msra.gmra.mxu0 %v6473_v61  ;;  %5064 = vmatprep.mubr.f32.mxu1 %v6473_v61  ;;  %v6485_v9 = vpop.f32.mrf.mxu0  ;;  %v1897_v51 = vadd.f32 %v6468_v57, %v1874_v37  ;;  %v1602_v52 = vadd.f32 %v1601_v11, %v6477_v63  ;;  %v2263_v63 = vld [vmem:[#allocation10 + $0x168] sm:$0xff]  ;;  %v2256_v37 = vld [vmem:[#allocation10 + $0x130] sm:$0xff] }
 0x32e   : > { %5089 = vmatpush3.msra.mxu0 %v2281_v45  ;;  %v6487_v14 = vpop.f32.mrf.mxu1 }
 0x32f   : > { %5090 = vmatprep.subr.mxu0 %v2280_v62  ;;  %v4922_v12 = vpop.f32.mrf.mxu0  ;;  %v1878_v11 = vmul.f32 %v6462_v55, %v1602_v52  ;;  %v2251_v52 = vld [vmem:[#allocation10 + $0x108] sm:$0xff] }
 0x330   : > { %5091 = vmatpush3.msra.mxu0 %v2280_v62  ;;  %v6489_v19 = vpop.f32.mrf.mxu1 }
 0x331   : > { %5092 = vmatprep.subr.mxu0 %v2279_v1  ;;  %v1719_v16 = vpop.f32.mrf.mxu0 }
 0x332   : > { %5093 = vmatpush3.msra.mxu0 %v2279_v1 }
 0x333   : > { %5094 = vmatprep.subr.mxu0 %v2278_v3  ;;  %v4925_v21 = vpop.f32.mrf.mxu0 }
 0x334   : > { %5095 = vmatpush3.msra.mxu0 %v2278_v3 }
 0x335   : > { %5096 = vmatprep.subr.mxu0 %v2277_v4  ;;  %v1729_v29 = vpop.f32.mrf.mxu0 }
 0x336   : > { %5097 = vmatpush3.msra.mxu0 %v2277_v4  ;;  %v1899_v4 = vadd.f32 %v6468_v57, %v1876_v50 }
 0x337   : > { %5098 = vmatprep.subr.mxu0 %v2276_v8  ;;  %v4928_v40 = vpop.f32.mrf.mxu0 }
 0x338   : > { %5099 = vmatpush3.msra.mxu0 %v2276_v8  ;;  %v6518_v8 = vmax.f32 %v1897_v51, 0.0  ;;  %v2252_v51 = vld [vmem:[#allocation10 + $0x110] sm:$0xff] }
 0x339   : > { %5100 = vmatprep.subr.mxu0 %v2275_v10  ;;  %v1739_v56 = vpop.f32.mrf.mxu0 }
 0x33a   : > { %5101 = vmatpush3.msra.mxu0 %v2275_v10  ;;  %v1607_v10 = vadd.f32 %v6483_v7, %v6471_v60  ;;  %v2261_v60 = vld [vmem:[#allocation10 + $0x158] sm:$0xff] }
 0x33b   : > { %5102 = vmatprep.subr.mxu0 %v2274_v6  ;;  %v4931_v2 = vpop.f32.mrf.mxu0 }
 0x33c   : > { %5103 = vmatpush3.msra.mxu0 %v2274_v6  ;;  %v1880_v18 = vmul.f32 %v6462_v55, %v1607_v10  ;;  %v2701_v10 = vld [vmem:[#allocation11 + $0x188] sm:$0xff] }
 0x33d   : > { %5104 = vmatprep.subr.mxu0 %v2273_v13  ;;  %v1749_v7 = vpop.f32.mrf.mxu0 }
 0x33e   : > { %5105 = vmatpush3.msra.mxu0 %v2273_v13 }
 0x33f   : > { %5106 = vmatprep.subr.mxu0 %v2272_v15 }
 0x340   : > { %5107 = vmatpush3.msra.mxu0 %v2272_v15 }
 0x341   : > { %5108 = vmatprep.subr.mxu0 %v2271_v17 }
 0x342   : > { %v4966_v22 = vpop.f32.mrf.mxu1  ;;  %5109 = vmatpush3.msra.mxu0 %v2271_v17  ;;  %v6531_v17 = vmax.f32 %v1899_v4, 0.0  ;;  %v2703_v4 = vld [vmem:[#allocation11 + $0x198] sm:$0xff] }
 0x343   : > { %v1830_v24 = vadd.f32 %v4966_v22, %v4922_v12  ;;  %5110 = vmatprep.subr.mxu0 %v2270_v20  ;;  %v2260_v22 = vld [vmem:[#allocation10 + $0x150] sm:$0xff] }
 0x344   : > { %v1824_v27 = vpop.f32.mrf.mxu1  ;;  %5111 = vmatpush3.msra.mxu0 %v2270_v20  ;;  %v1901_v20 = vadd.f32 %v6468_v57, %v1878_v11  ;;  %v2700_v11 = vld [vmem:[#allocation11 + $0x180] sm:$0xff] }
 0x345   : > { %v1825_v30 = vadd.f32 %v1824_v27, %v1719_v16  ;;  %5112 = vmatprep.subr.mxu0 %v2269_v23  ;;  %v1873_v31 = vmul.f32 %v6462_v55, %v1830_v24  ;;  %v2259_v27 = vld [vmem:[#allocation10 + $0x148] sm:$0xff] }
 0x346   : > { %v4969_v32 = vpop.f32.mrf.mxu1  ;;  %5113 = vmatpush3.msra.mxu0 %v2269_v23 }
 0x347   : > { %v1871_v34 = vmul.f32 %v6462_v55, %v1825_v30  ;;  %5114 = vmatprep.subr.mxu0 %v2268_v28  ;;  %v1896_v43 = vadd.f32 %v6468_v57, %v1873_v31  ;;  %v1840_v44 = vadd.f32 %v4969_v32, %v4925_v21  ;;  %v1612_v21 = vadd.f32 %v6489_v19, %v6485_v9  ;;  %v2258_v30 = vld [vmem:[#allocation10 + $0x140] sm:$0xff] }
 0x348   : > { %v1834_v38 = vpop.f32.mrf.mxu1  ;;  %5115 = vmatpush3.msra.mxu0 %v2268_v28  ;;  %v1903_v9 = vadd.f32 %v6468_v57, %v1880_v18  ;;  %v6546_v19 = vmax.f32 %v1901_v20, 0.0  ;;  %v1617_v28 = vadd.f32 %v6487_v14, %v6481_v5  ;;  %v2689_v18 = vld [vmem:[#allocation11 + $0xb0] sm:$0xff]  ;;  %v2688_v20 = vld [vmem:[#allocation11 + $0xa8] sm:$0xff] }
 0x349   : > { %v1894_v41 = vadd.f32 %v6468_v57, %v1871_v34  ;;  %v1835_v42 = vadd.f32 %v1834_v38, %v1729_v29  ;;  %5116 = vmatprep.subr.mxu0 %v2267_v33  ;;  %v6510_v58 = vmax.f32 %v1896_v43, 0.0  ;;  %v1877_v59 = vmul.f32 %v6462_v55, %v1840_v44  ;;  %v2257_v34 = vld [vmem:[#allocation10 + $0x138] sm:$0xff]  ;;  %v2254_v44 = vld [vmem:[#allocation10 + $0x120] sm:$0xff] }
 0x34a   : > { %v4972_v45 = vpop.f32.mrf.mxu1  ;;  %5117 = vmatpush3.msra.mxu0 %v2267_v33  ;;  %v1882_v29 = vmul.f32 %v6462_v55, %v1612_v21  ;;  %v6559_v14 = vmax.f32 %v1903_v9, 0.0  ;;  %v1884_v35 = vmul.f32 %v6462_v55, %v1617_v28  ;;  %v2687_v21 = vld [vmem:[#allocation11 + $0xa0] sm:$0xff] }
 0x34b   : > { %v6500_v46 = vmax.f32 %v1894_v41, 0.0  ;;  %v1875_v48 = vmul.f32 %v6462_v55, %v1835_v42  ;;  %5118 = vmatprep.subr.mxu0 %v2266_v39  ;;  %v1900_v6 = vadd.f32 %v6468_v57, %v1877_v59  ;;  %v1850_v13 = vadd.f32 %v4972_v45, %v4928_v40  ;;  %v2255_v40 = vld [vmem:[#allocation10 + $0x128] sm:$0xff] }
 0x34c   : > { %v1844_v53 = vpop.f32.mrf.mxu1  ;;  %5119 = vmatpush3.msra.mxu0 %v2266_v39  ;;  %v1905_v36 = vadd.f32 %v6468_v57, %v1882_v29  ;;  %v1907_v42 = vadd.f32 %v6468_v57, %v1884_v35  ;;  %v2709_v59 = vld [vmem:[#allocation11 + $0x1c8] sm:$0xff]  ;;  %v6647_v35 = vld [vmem:[%s7111_s12] ss:$0 sm:$0xff] }
 0x34d   : > { %5011 = vmatprep.mubr.f32.mxu0 %v6500_v46  ;;  %5065 = vmatmul.mubr.f32.vlgmr.msra.gmra.mxu1 %v6500_v46  ;;  %v1898_v62 = vadd.f32 %v6468_v57, %v1875_v48  ;;  %v1845_v1 = vadd.f32 %v1844_v53, %v1739_v56  ;;  %v6539_v23 = vmax.f32 %v1900_v6, 0.0  ;;  %v1881_v24 = vmul.f32 %v6462_v55, %v1850_v13  ;;  %v2714_v56 = vld [vmem:[#allocation11 + $0x1f0] sm:$0xff]  ;;  %v2695_v13 = vld [vmem:[#allocation11 + $0xe0] sm:$0xff] }
 0x34e   : > { %5145 = vmatpush3.msra.mxu1 %v6454_v47  ;;  %5012 = vmatmul.mubr.f32.gmra.mxu0 %v6503_v49  ;;  %v4975_v3 = vpop.f32.mrf.mxu1  ;;  %v2262_v47 = vld [vmem:[#allocation10 + $0x160] sm:$0xff]  ;;  %v6572_v43 = vmax.f32 %v1905_v36, 0.0  ;;  %v6581_v50 = vmax.f32 %v1907_v42, 0.0  ;;  %v2697_v6 = vld [vmem:[#allocation11 + $0xf0] sm:$0xff] }
 0x34f   : > { %5067 = vmatprep.mubr.f32.mxu1 %v6503_v49  ;;  %5146 = vmatprep.subr.mxu1 %v2264_v54  ;;  %v6526_v12 = vmax.f32 %v1898_v62, 0.0  ;;  %v1879_v15 = vmul.f32 %v6462_v55, %v1845_v1  ;;  %v1904_v31 = vadd.f32 %v6468_v57, %v1881_v24  ;;  %v1860_v5 = vadd.f32 %v4975_v3, %v4931_v2  ;;  %v2708_v62 = vld [vmem:[#allocation11 + $0x1c0] sm:$0xff]  ;;  %v2707_v1 = vld [vmem:[#allocation11 + $0x1b8] sm:$0xff]  ;;  %v2705_v2 = vld [vmem:[#allocation11 + $0x1a8] sm:$0xff] }
 0x350   : > { %5014 = vmatprep.mubr.f32.mxu0 %v6510_v58  ;;  %5147 = vmatpush3.msra.mxu1 %v2264_v54  ;;  %v1854_v16 = vpop.f32.mrf.mxu1  ;;  %v2715_v54 = vld [vmem:[#allocation11 + $0x1f8] sm:$0xff]  ;;  %v2704_v3 = vld [vmem:[#allocation11 + $0x1a0] sm:$0xff]  ;;  %v2684_v24 = vld [vmem:[#allocation11 + $0x88] sm:$0xff] }
 0x351   : > { %5148 = vmatprep.subr.mxu1 %v2263_v63  ;;  %5068 = vmatmul.mubr.f32.gmra.mxu1 %v6510_v58  ;;  %v1902_v25 = vadd.f32 %v6468_v57, %v1879_v15  ;;  %v1855_v26 = vadd.f32 %v1854_v16, %v1749_v7  ;;  %v6565_v38 = vmax.f32 %v1904_v31, 0.0  ;;  %v1885_v41 = vmul.f32 %v6462_v55, %v1860_v5  ;;  %v2694_v15 = vld [vmem:[#allocation11 + $0xd8] sm:$0xff]  ;;  %v2692_v7 = vld [vmem:[#allocation11 + $0xc8] sm:$0xff]  ;;  %v2691_v16 = vld [vmem:[#allocation11 + $0xc0] sm:$0xff] }
 0x352   : > { %5149 = vmatpush3.msra.mxu1 %v2263_v63  ;;  %5015 = vmatmul.mubr.f32.gmra.mxu0 %v6518_v8  ;;  %v2706_v63 = vld [vmem:[#allocation11 + $0x1b0] sm:$0xff] }
 0x353   : > { %5070 = vmatprep.mubr.f32.mxu1 %v6518_v8  ;;  %5150 = vmatprep.subr.mxu1 %v2262_v47  ;;  %v6554_v32 = vmax.f32 %v1902_v25, 0.0  ;;  %v1883_v33 = vmul.f32 %v6462_v55, %v1855_v26  ;;  %v2253_v55 = vld [vmem:[#allocation10 + $0x118] sm:$0xff]  ;;  %v1908_v48 = vadd.f32 %v6468_v57, %v1885_v41  ;;  %v2683_v25 = vld [vmem:[#allocation11 + $0x80] sm:$0xff] }
 0x354   : > { %5017 = vmatprep.mubr.f32.mxu0 %v6526_v12  ;;  %5151 = vmatpush3.msra.mxu1 %v2262_v47  ;;  %v2698_v47 = vld [vmem:[#allocation11 + $0xf8] sm:$0xff] }
 0x355   : > { %5152 = vmatprep.subr.mxu1 %v2261_v60  ;;  %5071 = vmatmul.mubr.f32.gmra.mxu1 %v6526_v12  ;;  %v1906_v39 = vadd.f32 %v6468_v57, %v1883_v33  ;;  %v6587_v53 = vmax.f32 %v1908_v48, 0.0  ;;  %v2250_v57 = vld [vmem:[#allocation10 + $0x100] sm:$0xff]  ;;  %v3198_v26 = vld [vmem:[#allocation11 + $0x78] sm:$0xff]  ;;  %v6637_v33 = vld [vmem:[%s7110_s11] ss:$0 sm:$0xff] }
 0x356   : > { %5153 = vmatpush3.msra.mxu1 %v2261_v60  ;;  %5018 = vmatmul.mubr.f32.gmra.mxu0 %v6531_v17  ;;  %v2693_v60 = vld [vmem:[#allocation11 + $0xd0] sm:$0xff] }
 0x357   : > { %5073 = vmatprep.mubr.f32.mxu1 %v6531_v17  ;;  %5154 = vmatprep.subr.mxu1 %v2260_v22  ;;  %v6576_v45 = vmax.f32 %v1906_v39, 0.0 }
 0x358   : > { %5020 = vmatprep.mubr.f32.mxu0 %v6539_v23  ;;  %5155 = vmatpush3.msra.mxu1 %v2260_v22  ;;  %v2686_v22 = vld [vmem:[#allocation11 + $0x98] sm:$0xff] }
 0x359   : > { %5156 = vmatprep.subr.mxu1 %v2259_v27  ;;  %5074 = vmatmul.mubr.f32.gmra.mxu1 %v6539_v23 }
 0x35a   : > { %5157 = vmatpush3.msra.mxu1 %v2259_v27  ;;  %5021 = vmatmul.mubr.f32.gmra.mxu0 %v6546_v19  ;;  %v6623_v27 = vld [vmem:[#allocation11 + $0x178] sm:$0xff] }
 0x35b   : > { %5076 = vmatprep.mubr.f32.mxu1 %v6546_v19  ;;  %5158 = vmatprep.subr.mxu1 %v2258_v30 }
 0x35c   : > { %5023 = vmatprep.mubr.f32.mxu0 %v6554_v32  ;;  %5159 = vmatpush3.msra.mxu1 %v2258_v30 }
 0x35d   : > { %5160 = vmatprep.subr.mxu1 %v2257_v34  ;;  %5077 = vmatmul.mubr.f32.gmra.mxu1 %v6554_v32 }
 0x35e   : > { %5161 = vmatpush3.msra.mxu1 %v2257_v34  ;;  %5024 = vmatmul.mubr.f32.gmra.mxu0 %v6559_v14 }
 0x35f   : > { %5079 = vmatprep.mubr.f32.mxu1 %v6559_v14  ;;  %5162 = vmatprep.subr.mxu1 %v2256_v37 }
 0x360   : > { %5026 = vmatprep.mubr.f32.mxu0 %v6565_v38  ;;  %5163 = vmatpush3.msra.mxu1 %v2256_v37 }
 0x361   : > { %5164 = vmatprep.subr.mxu1 %v2255_v40  ;;  %5080 = vmatmul.mubr.f32.gmra.mxu1 %v6565_v38 }
 0x362   : > { %5165 = vmatpush3.msra.mxu1 %v2255_v40  ;;  %5027 = vmatmul.mubr.f32.gmra.mxu0 %v6572_v43 }
 0x363   : > { %5082 = vmatprep.mubr.f32.mxu1 %v6572_v43  ;;  %5166 = vmatprep.subr.mxu1 %v2254_v44 }
 0x364   : > { %5029 = vmatprep.mubr.f32.mxu0 %v6576_v45  ;;  %5167 = vmatpush3.msra.mxu1 %v2254_v44 }
 0x365   : > { %5168 = vmatprep.subr.mxu1 %v2253_v55  ;;  %5083 = vmatmul.mubr.f32.gmra.mxu1 %v6576_v45 }
 0x366   : > { %5169 = vmatpush3.msra.mxu1 %v2253_v55  ;;  %5030 = vmatmul.mubr.f32.gmra.mxu0 %v6581_v50  ;;  %v3196_v55 = vld [vmem:[#allocation11 + $0x68] sm:$0xff] }
 0x367   : > { %5085 = vmatprep.mubr.f32.mxu1 %v6581_v50  ;;  %5170 = vmatprep.subr.mxu1 %v2252_v51 }
 0x368   : > { %5120 = vmatprep.mubr.f32.mxu0 %v6500_v46  ;;  %5171 = vmatpush3.msra.mxu1 %v2252_v51  ;;  %v3195_v51 = vld [vmem:[#allocation11 + $0x60] sm:$0xff] }
 0x369   : > { %5172 = vmatprep.subr.mxu1 %v2251_v52  ;;  %5086 = vmatmul.mubr.f32.gmra.mxu1 %v6587_v53 }
 0x36a   : > { %5173 = vmatpush3.msra.mxu1 %v2251_v52  ;;  %5121 = vmatmul.mubr.f32.vlgmr.msra.gmra.mxu0 %v6503_v49 }
 0x36b   : > { %5174 = vmatprep.subr.mxu1 %v2250_v57  ;;  %5176 = vmatprep.mubr.f32.mxu1 %v6473_v61  ;;  %v2713_v61 = vld [vmem:[#allocation11 + $0x1e8] sm:$0xff] }
 0x36c   : > { %5123 = vmatprep.mubr.f32.mxu0 %v6510_v58  ;;  %5175 = vmatpush3.msra.mxu1 %v2250_v57  ;;  %v3194_v57 = vld [vmem:[#allocation11 + $0x58] sm:$0xff] }
 0x36d   : > { %5177 = vmatmul.mubr.f32.vlgmr.msra.gmra.mxu1 %v6500_v46  ;;  %5200 = vmatprep.subr.mxu0 %v2715_v54  ;;  %v2712_v46 = vld [vmem:[#allocation11 + $0x1e0] sm:$0xff] }
 0x36e   : > { %5124 = vmatmul.mubr.f32.gmra.mxu0 %v6518_v8  ;;  %5179 = vmatprep.mubr.f32.mxu1 %v6503_v49  ;;  %v2711_v49 = vld [vmem:[#allocation11 + $0x1d8] sm:$0xff] }
 0x36f   : > { %5126 = vmatprep.mubr.f32.mxu0 %v6526_v12  ;;  %5201 = vmatpush3.msra.mxu0 %v2715_v54 }
 0x370   : > { %5202 = vmatprep.subr.mxu0 %v2714_v56  ;;  %5280 = vmatprep.subr.mxu1 %v2698_v47 }
 0x371   : > { %5180 = vmatmul.mubr.f32.gmra.mxu1 %v6510_v58  ;;  %5203 = vmatpush3.msra.mxu0 %v2714_v56  ;;  %v2710_v58 = vld [vmem:[#allocation11 + $0x1d0] sm:$0xff] }
 0x372   : > { %5127 = vmatmul.mubr.f32.gmra.mxu0 %v6531_v17  ;;  %5182 = vmatprep.mubr.f32.mxu1 %v6518_v8  ;;  %v2702_v8 = vld [vmem:[#allocation11 + $0x190] sm:$0xff] }
 0x373   : > { %5129 = vmatprep.mubr.f32.mxu0 %v6539_v23  ;;  %5204 = vmatprep.subr.mxu0 %v2713_v61 }
 0x374   : > { %5205 = vmatpush3.msra.mxu0 %v2713_v61  ;;  %5281 = vmatpush3.msra.mxu1 %v2698_v47 }
 0x375   : > { %5183 = vmatmul.mubr.f32.gmra.mxu1 %v6526_v12  ;;  %5206 = vmatprep.subr.mxu0 %v2712_v46  ;;  %v2696_v12 = vld [vmem:[#allocation11 + $0xe8] sm:$0xff] }
 0x376   : > { %5130 = vmatmul.mubr.f32.gmra.mxu0 %v6546_v19  ;;  %5185 = vmatprep.mubr.f32.mxu1 %v6531_v17  ;;  %v2690_v17 = vld [vmem:[#allocation11 + $0xb8] sm:$0xff] }
 0x377   : > { %5132 = vmatprep.mubr.f32.mxu0 %v6554_v32  ;;  %5207 = vmatpush3.msra.mxu0 %v2712_v46  ;;  %v3193_v46 = vld [vmem:[#allocation11 + $0x50] sm:$0xff] }
 0x378   : > { %5208 = vmatprep.subr.mxu0 %v2711_v49  ;;  %5282 = vmatprep.subr.mxu1 %v2697_v6 }
 0x379   : > { %5186 = vmatmul.mubr.f32.gmra.mxu1 %v6539_v23  ;;  %5209 = vmatpush3.msra.mxu0 %v2711_v49  ;;  %v2685_v23 = vld [vmem:[#allocation11 + $0x90] sm:$0xff] }
 0x37a   : > { %5133 = vmatmul.mubr.f32.gmra.mxu0 %v6559_v14  ;;  %5188 = vmatprep.mubr.f32.mxu1 %v6546_v19 }
 0x37b   : > { %5135 = vmatprep.mubr.f32.mxu0 %v6565_v38  ;;  %5210 = vmatprep.subr.mxu0 %v2710_v58 }
 0x37c   : > { %5211 = vmatpush3.msra.mxu0 %v2710_v58  ;;  %5283 = vmatpush3.msra.mxu1 %v2697_v6  ;;  %v3190_v6 = vld [vmem:[#allocation11 + $0x38] sm:$0xff] }
 0x37d   : > { %5189 = vmatmul.mubr.f32.gmra.mxu1 %v6554_v32  ;;  %5212 = vmatprep.subr.mxu0 %v2709_v59 }
 0x37e   : > { %5136 = vmatmul.mubr.f32.gmra.mxu0 %v6572_v43  ;;  %5191 = vmatprep.mubr.f32.mxu1 %v6559_v14 }
 0x37f   : > { %5138 = vmatprep.mubr.f32.mxu0 %v6576_v45  ;;  %5213 = vmatpush3.msra.mxu0 %v2709_v59 }
 0x380   : > { %5214 = vmatprep.subr.mxu0 %v2708_v62  ;;  %5284 = vmatprep.subr.mxu1 %v2696_v12 }
 0x381   : > { %5192 = vmatmul.mubr.f32.gmra.mxu1 %v6565_v38  ;;  %5215 = vmatpush3.msra.mxu0 %v2708_v62  ;;  %v3192_v62 = vld [vmem:[#allocation11 + $0x48] sm:$0xff] }
 0x382   : > { %5139 = vmatmul.mubr.f32.gmra.mxu0 %v6581_v50  ;;  %5194 = vmatprep.mubr.f32.mxu1 %v6572_v43  ;;  %v3197_v43 = vld [vmem:[#allocation11 + $0x70] sm:$0xff] }
 0x383   : > { %5141 = vmatprep.mubr.f32.mxu0 %v6587_v53  ;;  %5216 = vmatprep.subr.mxu0 %v2707_v1 }
 0x384   : > { %5217 = vmatpush3.msra.mxu0 %v2707_v1  ;;  %5285 = vmatpush3.msra.mxu1 %v2696_v12 }
 0x385   : > { %5195 = vmatmul.mubr.f32.gmra.mxu1 %v6576_v45  ;;  %5218 = vmatprep.subr.mxu0 %v2706_v63 }
 0x386   : > { %5197 = vmatprep.mubr.f32.mxu1 %v6581_v50  ;;  %5142 = vmatmul.mubr.f32.gmra.mxu0 %v5995_v0 }
 0x387   : > { %5232 = vmatprep.mubr.f32.mxu0 %v5995_v0  ;;  %5219 = vmatpush3.msra.mxu0 %v2706_v63 }
 0x388   : > { %5220 = vmatprep.subr.mxu0 %v2705_v2  ;;  %5286 = vmatprep.subr.mxu1 %v2695_v13 }
 0x389   : > { %5198 = vmatmul.mubr.f32.gmra.mxu1 %v6587_v53  ;;  %5221 = vmatpush3.msra.mxu0 %v2705_v2 }
 0x38a   : > { %5222 = vmatprep.subr.mxu0 %v2704_v3  ;;  %5287 = vmatpush3.msra.mxu1 %v2695_v13 }
 0x38b   : > { %5223 = vmatpush3.msra.mxu0 %v2704_v3  ;;  %5288 = vmatprep.subr.mxu1 %v2694_v15 }
 0x38c   : > { %5224 = vmatprep.subr.mxu0 %v2703_v4  ;;  %5289 = vmatpush3.msra.mxu1 %v2694_v15 }
 0x38d   : > { %5225 = vmatpush3.msra.mxu0 %v2703_v4  ;;  %5290 = vmatprep.subr.mxu1 %v2693_v60  ;;  %v3191_v4 = vld [vmem:[#allocation11 + $0x40] sm:$0xff] }
 0x38e   : > { %5226 = vmatprep.subr.mxu0 %v2702_v8  ;;  %5291 = vmatpush3.msra.mxu1 %v2693_v60 }
 0x38f   : > { %5227 = vmatpush3.msra.mxu0 %v2702_v8  ;;  %5292 = vmatprep.subr.mxu1 %v2692_v7 }
 0x390   : > { %5228 = vmatprep.subr.mxu0 %v2701_v10  ;;  %5293 = vmatpush3.msra.mxu1 %v2692_v7 }
 0x391   : > { %5229 = vmatpush3.msra.mxu0 %v2701_v10  ;;  %5294 = vmatprep.subr.mxu1 %v2691_v16 }
 0x392   : > { %5230 = vmatprep.subr.mxu0 %v2700_v11  ;;  %5295 = vmatpush3.msra.mxu1 %v2691_v16  ;;  %v3189_v16 = vld [vmem:[#allocation11 + $0x30] sm:$0xff] }
 0x393   : > { %5231 = vmatpush3.msra.mxu0 %v2700_v11  ;;  %5296 = vmatprep.subr.mxu1 %v2690_v17 }
 0x394   : > { %5297 = vmatpush3.msra.mxu1 %v2690_v17  ;;  %5360 = vmatprep.subr.mxu0 %v3198_v26 }
 0x395   : > { %5298 = vmatprep.subr.mxu1 %v2689_v18 }
 0x396   : > { %5299 = vmatpush3.msra.mxu1 %v2689_v18 }
 0x397   : > { %5300 = vmatprep.subr.mxu1 %v2688_v20 }
 0x398   : > { %5301 = vmatpush3.msra.mxu1 %v2688_v20 }
 0x399   : > { %5302 = vmatprep.subr.mxu1 %v2687_v21 }
 0x39a   : > { %5303 = vmatpush3.msra.mxu1 %v2687_v21 }
 0x39b   : > { %5304 = vmatprep.subr.mxu1 %v2686_v22 }
 0x39c   : > { %5305 = vmatpush3.msra.mxu1 %v2686_v22 }
 0x39d   : > { %5306 = vmatprep.subr.mxu1 %v2685_v23 }
 0x39e   : > { %5307 = vmatpush3.msra.mxu1 %v2685_v23  ;;  %v3188_v23 = vld [vmem:[#allocation11 + $0x28] sm:$0xff] }
 0x39f   : > { %5308 = vmatprep.subr.mxu1 %v2684_v24 }
 0x3a0   : > { %5309 = vmatpush3.msra.mxu1 %v2684_v24 }
 0x3a1   : > { %5310 = vmatprep.subr.mxu1 %v2683_v25 }
 0x3a2   : > { %5311 = vmatpush3.msra.mxu1 %v2683_v25 }
 0x3a3   : > { %5440 = vmatprep.subr.mxu1 %v6623_v27 }
 0x3ed   : > { %v6626_v9 = vpop.f32.mrf.mxu0 }
 0x3ef   : > { %v2025_v19 = vpop.f32.mrf.mxu0 }
 0x40d   : > { %v6628_v28 = vpop.f32.mrf.mxu1 }
 0x40e   : > { %v6630_v29 = vpop.f32.mrf.mxu0 }
 0x40f   : > { %v2170_v30 = vpop.f32.mrf.mxu1 }
 0x410   : > { %v2171_v31 = vadd.f32 %v2170_v30, %v2025_v19  ;;  %v6632_v32 = vpop.f32.mrf.mxu0  ;;  %v2176_v30 = vadd.f32 %v6628_v28, %v6626_v9 }
 0x411   : > { %v6639_v34 = vpop.f32.mrf.mxu1 }
 0x412   : > { %v2579_v5 = vmul.f32 %v6637_v33, %v2171_v31  ;;  %v6642_v14 = vpop.f32.mrf.mxu0 }
 0x413   : > { %v6649_v36 = vpop.f32.mrf.mxu1 }
 0x414   : > { %v2618_v37 = vadd.f32 %v6647_v35, %v2579_v5  ;;  %v6652_v38 = vpop.f32.mrf.mxu0  ;;  %v3187_v5 = vld [vmem:[#allocation11 + $0x20] sm:$0xff] }
 0x415   : > { %v6654_v39 = vpop.f32.mrf.mxu1 }
 0x416   : > { %v6656_v40 = vmax.f32 %v2618_v37, 0.0  ;;  %v6658_v41 = vpop.f32.mrf.mxu0 }
 0x417   : > { %v6660_v42 = vpop.f32.mrf.mxu1 }
 0x418   : > { %v6662_v44 = vpop.f32.mrf.mxu0  ;;  %5233 = vmatmul.mubr.f32.vlgmr.msra.gmra.mxu0 %v6656_v40  ;;  %5312 = vmatprep.mubr.f32.mxu1 %v6656_v40 }
 0x419   : > { %v6666_v45 = vpop.f32.mrf.mxu1  ;;  %5361 = vmatpush3.msra.mxu0 %v3198_v26 }
 0x41a   : > { %v5022_v48 = vpop.f32.mrf.mxu0  ;;  %5362 = vmatprep.subr.mxu0 %v3197_v43 }
 0x41b   : > { %v6668_v50 = vpop.f32.mrf.mxu1  ;;  %5363 = vmatpush3.msra.mxu0 %v3197_v43 }
 0x41c   : > { %v6670_v52 = vpop.f32.mrf.mxu0  ;;  %5364 = vmatprep.subr.mxu0 %v3196_v55 }
 0x41d   : > { %v5078_v53 = vpop.f32.mrf.mxu1  ;;  %5365 = vmatpush3.msra.mxu0 %v3196_v55 }
 0x41e   : > { %v2216_v54 = vadd.f32 %v5078_v53, %v5022_v48  ;;  %v5025_v56 = vpop.f32.mrf.mxu0  ;;  %5366 = vmatprep.subr.mxu0 %v3195_v51  ;;  %v3186_v53 = vld [vmem:[#allocation11 + $0x18] sm:$0xff] }
 0x41f   : > { %v6672_v61 = vpop.f32.mrf.mxu1  ;;  %5367 = vmatpush3.msra.mxu0 %v3195_v51 }
 0x420   : > { %v2597_v49 = vmul.f32 %v6637_v33, %v2216_v54  ;;  %v2075_v58 = vpop.f32.mrf.mxu0  ;;  %5368 = vmatprep.subr.mxu0 %v3194_v57 }
 0x421   : > { %v5081_v59 = vpop.f32.mrf.mxu1  ;;  %5369 = vmatpush3.msra.mxu0 %v3194_v57 }
 0x422   : > { %v6676_v1 = vadd.f32 %v6647_v35, %v2597_v49  ;;  %v2226_v63 = vadd.f32 %v5081_v59, %v5025_v56  ;;  %v5028_v2 = vpop.f32.mrf.mxu0  ;;  %5370 = vmatprep.subr.mxu0 %v3193_v46  ;;  %v2581_v56 = vmul.f32 %v6637_v33, %v2176_v30 }
 0x423   : > { %v2220_v3 = vpop.f32.mrf.mxu1  ;;  %5371 = vmatpush3.msra.mxu0 %v3193_v46  ;;  %v2181_v46 = vadd.f32 %v6649_v36, %v6632_v32  ;;  %v2186_v36 = vadd.f32 %v6639_v34, %v6630_v29 }
 0x424   : > { %v2601_v8 = vmul.f32 %v6637_v33, %v2226_v63  ;;  %v2221_v10 = vadd.f32 %v2220_v3, %v2075_v58  ;;  %v2085_v11 = vpop.f32.mrf.mxu0  ;;  %5372 = vmatprep.subr.mxu0 %v3192_v62  ;;  %v3185_v58 = vld [vmem:[#allocation11 + $0x10] sm:$0xff]  ;;  %v2620_v32 = vadd.f32 %v6647_v35, %v2581_v56 }
 0x425   : > { %v5084_v47 = vpop.f32.mrf.mxu1  ;;  %5373 = vmatpush3.msra.mxu0 %v3192_v62 }
 0x426   : > { %v6680_v12 = vadd.f32 %v6647_v35, %v2601_v8  ;;  %v2599_v13 = vmul.f32 %v6637_v33, %v2221_v10  ;;  %v2236_v15 = vadd.f32 %v5084_v47, %v5028_v2  ;;  %v5031_v60 = vpop.f32.mrf.mxu0  ;;  %5374 = vmatprep.subr.mxu0 %v3191_v4  ;;  %v6720_v34 = vmax.f32 %v2620_v32, 0.0 }
 0x427   : > { %v2230_v7 = vpop.f32.mrf.mxu1  ;;  %5375 = vmatpush3.msra.mxu0 %v3191_v4  ;;  %v3184_v4 = vld [vmem:[#allocation11 + $0x8] sm:$0xff] }
 0x428   : > { %v6684_v17 = vadd.f32 %v6647_v35, %v2599_v13  ;;  %v2605_v18 = vmul.f32 %v6637_v33, %v2236_v15  ;;  %v2231_v20 = vadd.f32 %v2230_v7, %v2085_v11  ;;  %v2095_v21 = vpop.f32.mrf.mxu0  ;;  %5376 = vmatprep.subr.mxu0 %v3190_v6  ;;  %v2583_v11 = vmul.f32 %v6637_v33, %v2181_v46  ;;  %v3180_v46 = vld [vmem:[#allocation11 + $0x168] sm:$0xff] }
 0x429   : > { %v5087_v22 = vpop.f32.mrf.mxu1  ;;  %5377 = vmatpush3.msra.mxu0 %v3190_v6  ;;  %v3183_v6 = vld [vmem:[#allocation11] sm:$0xff] }
 0x42a   : > { %v6688_v24 = vadd.f32 %v6647_v35, %v2605_v18  ;;  %v2603_v25 = vmul.f32 %v6637_v33, %v2231_v20  ;;  %v2246_v26 = vadd.f32 %v5087_v22, %v5031_v60  ;;  %v5122_v19 = vpop.f32.mrf.mxu0  ;;  %5378 = vmatprep.subr.mxu0 %v3189_v16  ;;  %v2585_v22 = vmul.f32 %v6637_v33, %v2186_v36 }
 0x42b   : > { %v2240_v31 = vpop.f32.mrf.mxu1  ;;  %5379 = vmatpush3.msra.mxu0 %v3189_v16 }
 0x42c   : > { %v6694_v37 = vadd.f32 %v6647_v35, %v2603_v25  ;;  %v2609_v43 = vmul.f32 %v6637_v33, %v2246_v26  ;;  %v2241_v55 = vadd.f32 %v2240_v31, %v2095_v21  ;;  %v2348_v48 = vpop.f32.mrf.mxu0  ;;  %5380 = vmatprep.subr.mxu0 %v3188_v23  ;;  %v2191_v25 = vadd.f32 %v6660_v42, %v6652_v38 }
 0x42d   : > { %v5178_v51 = vpop.f32.mrf.mxu1  ;;  %5381 = vmatpush3.msra.mxu0 %v3188_v23  ;;  %v2622_v23 = vadd.f32 %v6647_v35, %v2583_v11  ;;  %v2196_v38 = vadd.f32 %v6654_v39, %v6642_v14 }
 0x42e   : > { %v6698_v57 = vadd.f32 %v6647_v35, %v2609_v43  ;;  %v2607_v54 = vmul.f32 %v6637_v33, %v2241_v55  ;;  %v2499_v9 = vadd.f32 %v5178_v51, %v5122_v19  ;;  %v5125_v28 = vpop.f32.mrf.mxu0  ;;  %5382 = vmatprep.subr.mxu0 %v3187_v5  ;;  %v3181_v55 = vld [vmem:[#allocation11 + $0x170] sm:$0xff]  ;;  %v2624_v51 = vadd.f32 %v6647_v35, %v2585_v22 }
 0x42f   : > { %v2493_v49 = vpop.f32.mrf.mxu1  ;;  %5383 = vmatpush3.msra.mxu0 %v3187_v5 }
 0x430   : > { %v6705_v59 = vadd.f32 %v6647_v35, %v2607_v54  ;;  %v2582_v62 = vmul.f32 %v6637_v33, %v2499_v9  ;;  %v2494_v63 = vadd.f32 %v2493_v49, %v2348_v48  ;;  %v2358_v2 = vpop.f32.mrf.mxu0  ;;  %5384 = vmatprep.subr.mxu0 %v3186_v53  ;;  %v2587_v54 = vmul.f32 %v6637_v33, %v2191_v25 }
 0x431   : > { %v5181_v3 = vpop.f32.mrf.mxu1  ;;  %5385 = vmatpush3.msra.mxu0 %v3186_v53  ;;  %v6739_v53 = vmax.f32 %v2622_v23, 0.0  ;;  %v2201_v49 = vadd.f32 %v6668_v50, %v6662_v44 }
 0x432   : > { %v2580_v8 = vmul.f32 %v6637_v33, %v2494_v63  ;;  %v5128_v10 = vpop.f32.mrf.mxu0  ;;  %5386 = vmatprep.subr.mxu0 %v3185_v58  ;;  %v2621_v13 = vadd.f32 %v6647_v35, %v2582_v62  ;;  %v2509_v60 = vadd.f32 %v5181_v3, %v5125_v28  ;;  %v2589_v62 = vmul.f32 %v6637_v33, %v2196_v38 }
 0x433   : > { %v2503_v47 = vpop.f32.mrf.mxu1  ;;  %5387 = vmatpush3.msra.mxu0 %v3185_v58  ;;  %v6755_v3 = vmax.f32 %v2624_v51, 0.0 }
 0x434   : > { %v2619_v15 = vadd.f32 %v6647_v35, %v2580_v8  ;;  %v2504_v7 = vadd.f32 %v2503_v47, %v2358_v2  ;;  %v2368_v16 = vpop.f32.mrf.mxu0  ;;  %5388 = vmatprep.subr.mxu0 %v3184_v4  ;;  %v6726_v19 = vmax.f32 %v2621_v13, 0.0  ;;  %v2586_v30 = vmul.f32 %v6637_v33, %v2509_v60  ;;  %v3179_v47 = vld [vmem:[#allocation11 + $0x160] sm:$0xff] }
 0x435   : > { %v5184_v18 = vpop.f32.mrf.mxu1  ;;  %5389 = vmatpush3.msra.mxu0 %v3184_v4  ;;  %v2626_v4 = vadd.f32 %v6647_v35, %v2587_v54  ;;  %v2591_v13 = vmul.f32 %v6637_v33, %v2201_v49  ;;  %v2628_v60 = vadd.f32 %v6647_v35, %v2589_v62 }
 0x436   : > { %v6715_v20 = vmax.f32 %v2619_v15, 0.0  ;;  %v2584_v21 = vmul.f32 %v6637_v33, %v2504_v7  ;;  %v6718_v29 = vpop.f32.mrf.mxu0  ;;  %5390 = vmatprep.subr.mxu0 %v3183_v6  ;;  %v2519_v9 = vadd.f32 %v5184_v18, %v5128_v10 }
 0x437   : > { %v2513_v26 = vpop.f32.mrf.mxu1  ;;  %5391 = vmatpush3.msra.mxu0 %v3183_v6  ;;  %v2206_v6 = vadd.f32 %v6666_v45, %v6658_v41 }
 0x438   : > { %v2623_v31 = vadd.f32 %v6647_v35, %v2584_v21  ;;  %v2514_v5 = vadd.f32 %v2513_v26, %v2368_v16  ;;  %v2378_v43 = vpop.f32.mrf.mxu0  ;;  %5235 = vmatprep.mubr.f32.mxu0 %v6715_v20  ;;  %5313 = vmatmul.mubr.f32.vlgmr.msra.gmra.mxu1 %v6715_v20  ;;  %v2590_v8 = vmul.f32 %v6637_v33, %v2519_v9  ;;  %v6774_v21 = vmax.f32 %v2626_v4, 0.0 }
 0x439   : > { %5441 = vmatpush3.msra.mxu1 %v6623_v27  ;;  %v5187_v48 = vpop.f32.mrf.mxu1  ;;  %5236 = vmatmul.mubr.f32.gmra.mxu0 %v6720_v34  ;;  %v2625_v27 = vadd.f32 %v6647_v35, %v2586_v30  ;;  %v2211_v9 = vadd.f32 %v6672_v61, %v6670_v52 }
 0x43a   : > { %5315 = vmatprep.mubr.f32.mxu1 %v6720_v34  ;;  %v5134_v42 = vpop.f32.mrf.mxu0  ;;  %5238 = vmatprep.mubr.f32.mxu0 %v6726_v19  ;;  %v6743_v56 = vmax.f32 %v2623_v31, 0.0  ;;  %v2588_v14 = vmul.f32 %v6637_v33, %v2514_v5  ;;  %v2629_v41 = vadd.f32 %v6647_v35, %v2590_v8  ;;  %v2529_v45 = vadd.f32 %v5187_v48, %v6718_v29  ;;  %v3178_v5 = vld [vmem:[#allocation11 + $0x158] sm:$0xff] }
 0x43b   : > { %v2523_v28 = vpop.f32.mrf.mxu1  ;;  %5442 = vmatprep.subr.mxu1 %v3181_v55  ;;  %v6759_v50 = vmax.f32 %v2625_v27, 0.0  ;;  %v6786_v29 = vmax.f32 %v2628_v60, 0.0 }
 0x43c   : > { %v6746_v39 = vpop.f32.mrf.mxu0  ;;  %5316 = vmatmul.mubr.f32.gmra.mxu1 %v6726_v19  ;;  %v2524_v10 = vadd.f32 %v2523_v28, %v2378_v43  ;;  %v2627_v32 = vadd.f32 %v6647_v35, %v2588_v14  ;;  %v2593_v43 = vmul.f32 %v6637_v33, %v2206_v6  ;;  %v6796_v28 = vmax.f32 %v2629_v41, 0.0 }
 0x43d   : > { %5443 = vmatpush3.msra.mxu1 %v3181_v55  ;;  %v5190_v58 = vpop.f32.mrf.mxu1  ;;  %5239 = vmatmul.mubr.f32.gmra.mxu0 %v6739_v53  ;;  %v2630_v55 = vadd.f32 %v6647_v35, %v2591_v13  ;;  %v2594_v27 = vmul.f32 %v6637_v33, %v2529_v45 }
 0x43e   : > { %v2539_v63 = vadd.f32 %v5190_v58, %v5134_v42  ;;  %5318 = vmatprep.mubr.f32.mxu1 %v6739_v53  ;;  %v5137_v2 = vpop.f32.mrf.mxu0  ;;  %5241 = vmatprep.mubr.f32.mxu0 %v6743_v56  ;;  %v2592_v22 = vmul.f32 %v6637_v33, %v2524_v10  ;;  %v6779_v25 = vmax.f32 %v2627_v32, 0.0  ;;  %v2632_v52 = vadd.f32 %v6647_v35, %v2593_v43  ;;  %v3174_v43 = vld [vmem:[#allocation11 + $0x138] sm:$0xff] }
 0x43f   : > { %v2533_v44 = vpop.f32.mrf.mxu1  ;;  %5444 = vmatprep.subr.mxu1 %v3180_v46  ;;  %v2595_v32 = vmul.f32 %v6637_v33, %v2211_v9  ;;  %v6881_v9 = vmax.f32 %v6694_v37, 0.0 }
 0x440   : > { %v2598_v36 = vmul.f32 %v6637_v33, %v2539_v63  ;;  %v2398_v11 = vpop.f32.mrf.mxu0  ;;  %5319 = vmatmul.mubr.f32.gmra.mxu1 %v6743_v56  ;;  %v2631_v14 = vadd.f32 %v6647_v35, %v2592_v22  ;;  %v2534_v49 = vadd.f32 %v2533_v44, %v6746_v39  ;;  %v6814_v44 = vmax.f32 %v2630_v55, 0.0 }
 0x441   : > { %5445 = vmatpush3.msra.mxu1 %v3180_v46  ;;  %v5193_v15 = vpop.f32.mrf.mxu1  ;;  %5242 = vmatmul.mubr.f32.gmra.mxu0 %v6755_v3  ;;  %v6831_v45 = vmax.f32 %v2632_v52, 0.0  ;;  %v2634_v22 = vadd.f32 %v6647_v35, %v2595_v32 }
 0x442   : > { %v6770_v7 = vadd.f32 %v6647_v35, %v2598_v36  ;;  %v2549_v16 = vadd.f32 %v5193_v15, %v5137_v2  ;;  %5321 = vmatprep.mubr.f32.mxu1 %v6755_v3  ;;  %v5140_v18 = vpop.f32.mrf.mxu0  ;;  %5244 = vmatprep.mubr.f32.mxu0 %v6759_v50  ;;  %v3177_v2 = vld [vmem:[#allocation11 + $0x150] sm:$0xff]  ;;  %v2633_v36 = vadd.f32 %v6647_v35, %v2594_v27  ;;  %v6890_v27 = vmax.f32 %v6688_v24, 0.0 }
 0x443   : > { %v2543_v23 = vpop.f32.mrf.mxu1  ;;  %5446 = vmatprep.subr.mxu1 %v3179_v47  ;;  %v2596_v6 = vmul.f32 %v6637_v33, %v2534_v49  ;;  %v3168_v49 = vld [vmem:[#allocation11 + $0x108] sm:$0xff] }
 0x444   : > { %v2602_v26 = vmul.f32 %v6637_v33, %v2549_v16  ;;  %v2544_v30 = vadd.f32 %v2543_v23, %v2398_v11  ;;  %v2408_v31 = vpop.f32.mrf.mxu0  ;;  %5322 = vmatmul.mubr.f32.gmra.mxu1 %v6759_v50  ;;  %v6818_v11 = vmax.f32 %v2631_v14, 0.0  ;;  %v3176_v16 = vld [vmem:[#allocation11 + $0x148] sm:$0xff]  ;;  %v6834_v23 = vmax.f32 %v2633_v36, 0.0  ;;  %v3169_v14 = vld [vmem:[#allocation11 + $0x110] sm:$0xff] }
 0x445   : > { %5447 = vmatpush3.msra.mxu1 %v3179_v47  ;;  %v5196_v38 = vpop.f32.mrf.mxu1  ;;  %5245 = vmatmul.mubr.f32.gmra.mxu0 %v6774_v21  ;;  %v6854_v55 = vmax.f32 %v6770_v7, 0.0  ;;  %v3172_v7 = vld [vmem:[#allocation11 + $0x128] sm:$0xff] }
 0x446   : > { %v6789_v48 = vadd.f32 %v6647_v35, %v2602_v26  ;;  %v2600_v42 = vmul.f32 %v6637_v33, %v2544_v30  ;;  %v2559_v51 = vadd.f32 %v5196_v38, %v5140_v18  ;;  %5324 = vmatprep.mubr.f32.mxu1 %v6774_v21  ;;  %5247 = vmatprep.mubr.f32.mxu0 %v6779_v25  ;;  %v5143_v54 = vpop.f32.mrf.mxu0  ;;  %v3173_v38 = vld [vmem:[#allocation11 + $0x130] sm:$0xff] }
 0x447   : > { %v2553_v46 = vpop.f32.mrf.mxu1  ;;  %5448 = vmatprep.subr.mxu1 %v3178_v5  ;;  %v2635_v26 = vadd.f32 %v6647_v35, %v2596_v6 }
 0x448   : > { %v6802_v58 = vadd.f32 %v6647_v35, %v2600_v42  ;;  %v2606_v62 = vmul.f32 %v6637_v33, %v2559_v51  ;;  %v2554_v63 = vadd.f32 %v2553_v46, %v2408_v31  ;;  %5325 = vmatmul.mubr.f32.gmra.mxu1 %v6779_v25  ;;  %v2418_v4 = vpop.f32.mrf.mxu0  ;;  %v6842_v31 = vmax.f32 %v2634_v22, 0.0 }
 0x449   : > { %5449 = vmatpush3.msra.mxu1 %v3178_v5  ;;  %v5199_v61 = vpop.f32.mrf.mxu1  ;;  %5248 = vmatmul.mubr.f32.gmra.mxu0 %v6786_v29  ;;  %v6844_v5 = vmax.f32 %v2635_v26, 0.0  ;;  %v6861_v42 = vmax.f32 %v6684_v17, 0.0  ;;  %v6871_v51 = vmax.f32 %v6680_v12, 0.0  ;;  %v6874_v17 = vmax.f32 %v6789_v48, 0.0  ;;  %v3170_v48 = vld [vmem:[#allocation11 + $0x118] sm:$0xff] }
 0x44a   : > { %v6809_v8 = vadd.f32 %v6647_v35, %v2606_v62  ;;  %v2604_v39 = vmul.f32 %v6637_v33, %v2554_v63  ;;  %v2569_v10 = vadd.f32 %v5199_v61, %v5143_v54  ;;  %5327 = vmatprep.mubr.f32.mxu1 %v6786_v29  ;;  %5250 = vmatprep.mubr.f32.mxu0 %v6796_v28  ;;  %v3171_v54 = vld [vmem:[#allocation11 + $0x120] sm:$0xff]  ;;  %v6900_v46 = vmax.f32 %v6705_v59, 0.0 }
 0x44b   : > { %v2563_v47 = vpop.f32.mrf.mxu1  ;;  %5450 = vmatprep.subr.mxu1 %v3177_v2  ;;  %v3167_v59 = vld [vmem:[#allocation11 + $0x100] sm:$0xff] }
 0x44c   : > { %v2643_v13 = vadd.f32 %v6647_v35, %v2604_v39  ;;  %v2610_v15 = vmul.f32 %v6637_v33, %v2569_v10  ;;  %v2564_v60 = vadd.f32 %v2563_v47, %v2418_v4  ;;  %5328 = vmatmul.mubr.f32.gmra.mxu1 %v6796_v28  ;;  %v6893_v37 = vmax.f32 %v6809_v8, 0.0 }
 0x44d   : > { %5451 = vmatpush3.msra.mxu1 %v3177_v2  ;;  %5251 = vmatmul.mubr.f32.gmra.mxu0 %v6814_v44 }
 0x44e   : > { %v2608_v18 = vmul.f32 %v6637_v33, %v2564_v60  ;;  %5330 = vmatprep.mubr.f32.mxu1 %v6814_v44  ;;  %5253 = vmatprep.mubr.f32.mxu0 %v6818_v11  ;;  %v6829_v41 = vadd.f32 %v6647_v35, %v2610_v15  ;;  %v3175_v33 = vld [vmem:[#allocation11 + $0x140] sm:$0xff]  ;;  %v6883_v12 = vmax.f32 %v2643_v13, 0.0 }
 0x44f   : > { %5452 = vmatprep.subr.mxu1 %v3176_v16 }
 0x450   : > { %v2647_v30 = vadd.f32 %v6647_v35, %v2608_v18  ;;  %5331 = vmatmul.mubr.f32.gmra.mxu1 %v6818_v11  ;;  %v6851_v35 = vmax.f32 %v6676_v1, 0.0  ;;  %v6864_v1 = vmax.f32 %v6802_v58, 0.0  ;;  %v6909_v58 = vmax.f32 %v6698_v57, 0.0 }
 0x451   : > { %5453 = vmatpush3.msra.mxu1 %v3176_v16  ;;  %5254 = vmatmul.mubr.f32.gmra.mxu0 %v6831_v45  ;;  %v6916_v62 = vmax.f32 %v6829_v41, 0.0 }
 0x452   : > { %5333 = vmatprep.mubr.f32.mxu1 %v6831_v45  ;;  %5256 = vmatprep.mubr.f32.mxu0 %v6834_v23  ;;  %v6902_v24 = vmax.f32 %v2647_v30, 0.0 }
 0x453   : > { %5454 = vmatprep.subr.mxu1 %v3175_v33 }
 0x454   : > { %5334 = vmatmul.mubr.f32.gmra.mxu1 %v6834_v23 }
 0x455   : > { %5455 = vmatpush3.msra.mxu1 %v3175_v33  ;;  %5257 = vmatmul.mubr.f32.gmra.mxu0 %v6842_v31 }
 0x456   : > { %5336 = vmatprep.mubr.f32.mxu1 %v6842_v31  ;;  %5259 = vmatprep.mubr.f32.mxu0 %v6844_v5 }
 0x457   : > { %5456 = vmatprep.subr.mxu1 %v3174_v43 }
 0x458   : > { %5337 = vmatmul.mubr.f32.gmra.mxu1 %v6844_v5 }
 0x459   : > { %5457 = vmatpush3.msra.mxu1 %v3174_v43  ;;  %5260 = vmatmul.mubr.f32.gmra.mxu0 %v6851_v35 }
 0x45a   : > { %5339 = vmatprep.mubr.f32.mxu1 %v6851_v35  ;;  %5262 = vmatprep.mubr.f32.mxu0 %v6854_v55 }
 0x45b   : > { %5458 = vmatprep.subr.mxu1 %v3173_v38 }
 0x45c   : > { %5340 = vmatmul.mubr.f32.gmra.mxu1 %v6854_v55 }
 0x45d   : > { %5459 = vmatpush3.msra.mxu1 %v3173_v38  ;;  %5263 = vmatmul.mubr.f32.gmra.mxu0 %v6861_v42 }
 0x45e   : > { %5342 = vmatprep.mubr.f32.mxu1 %v6861_v42  ;;  %5265 = vmatprep.mubr.f32.mxu0 %v6864_v1 }
 0x45f   : > { %5460 = vmatprep.subr.mxu1 %v3172_v7 }
 0x460   : > { %5343 = vmatmul.mubr.f32.gmra.mxu1 %v6864_v1 }
 0x461   : > { %5461 = vmatpush3.msra.mxu1 %v3172_v7  ;;  %5266 = vmatmul.mubr.f32.gmra.mxu0 %v6871_v51 }
 0x462   : > { %5345 = vmatprep.mubr.f32.mxu1 %v6871_v51  ;;  %5268 = vmatprep.mubr.f32.mxu0 %v6874_v17 }
 0x463   : > { %5462 = vmatprep.subr.mxu1 %v3171_v54 }
 0x464   : > { %5346 = vmatmul.mubr.f32.gmra.mxu1 %v6874_v17 }
 0x465   : > { %5463 = vmatpush3.msra.mxu1 %v3171_v54  ;;  %5269 = vmatmul.mubr.f32.gmra.mxu0 %v6881_v9 }
 0x466   : > { %5348 = vmatprep.mubr.f32.mxu1 %v6881_v9  ;;  %5271 = vmatprep.mubr.f32.mxu0 %v6883_v12 }
 0x467   : > { %5464 = vmatprep.subr.mxu1 %v3170_v48 }
 0x468   : > { %5349 = vmatmul.mubr.f32.gmra.mxu1 %v6883_v12 }
 0x469   : > { %5465 = vmatpush3.msra.mxu1 %v3170_v48  ;;  %5272 = vmatmul.mubr.f32.gmra.mxu0 %v6890_v27 }
 0x46a   : > { %5351 = vmatprep.mubr.f32.mxu1 %v6890_v27  ;;  %5274 = vmatprep.mubr.f32.mxu0 %v6893_v37 }
 0x46b   : > { %5466 = vmatprep.subr.mxu1 %v3169_v14 }
 0x46c   : > { %5352 = vmatmul.mubr.f32.gmra.mxu1 %v6893_v37 }
 0x46d   : > { %5467 = vmatpush3.msra.mxu1 %v3169_v14  ;;  %5275 = vmatmul.mubr.f32.gmra.mxu0 %v6900_v46 }
 0x46e   : > { %5354 = vmatprep.mubr.f32.mxu1 %v6900_v46  ;;  %5277 = vmatprep.mubr.f32.mxu0 %v6902_v24 }
 0x46f   : > { %5468 = vmatprep.subr.mxu1 %v3168_v49 }
 0x470   : > { %5355 = vmatmul.mubr.f32.gmra.mxu1 %v6902_v24 }
 0x471   : > { %5469 = vmatpush3.msra.mxu1 %v3168_v49  ;;  %5278 = vmatmul.mubr.f32.gmra.mxu0 %v6909_v58 }
 0x472   : > { %5357 = vmatprep.mubr.f32.mxu1 %v6909_v58  ;;  %5392 = vmatprep.mubr.f32.mxu0 %v6715_v20 }
 0x473   : > { %5470 = vmatprep.subr.mxu1 %v3167_v59 }
 0x474   : > { %5358 = vmatmul.mubr.f32.gmra.mxu1 %v6916_v62 }
 0x475   : > { %5471 = vmatpush3.msra.mxu1 %v3167_v59  ;;  %5393 = vmatmul.mubr.f32.vlgmr.msra.gmra.mxu0 %v6720_v34 }
 0x476   : > { %5472 = vmatprep.mubr.f32.mxu1 %v6656_v40  ;;  %5395 = vmatprep.mubr.f32.mxu0 %v6726_v19 }
 0x478   : > { %5473 = vmatmul.mubr.f32.vlgmr.msra.gmra.mxu1 %v6715_v20 }
 0x479   : > { %5396 = vmatmul.mubr.f32.gmra.mxu0 %v6739_v53  ;;  %5475 = vmatprep.mubr.f32.mxu1 %v6720_v34 }
 0x47a   : > { %5398 = vmatprep.mubr.f32.mxu0 %v6743_v56 }
 0x47c   : > { %5476 = vmatmul.mubr.f32.gmra.mxu1 %v6726_v19 }
 0x47d   : > { %5399 = vmatmul.mubr.f32.gmra.mxu0 %v6755_v3  ;;  %5478 = vmatprep.mubr.f32.mxu1 %v6739_v53 }
 0x47e   : > { %5401 = vmatprep.mubr.f32.mxu0 %v6759_v50 }
 0x480   : > { %5479 = vmatmul.mubr.f32.gmra.mxu1 %v6743_v56 }
 0x481   : > { %5402 = vmatmul.mubr.f32.gmra.mxu0 %v6774_v21  ;;  %5481 = vmatprep.mubr.f32.mxu1 %v6755_v3 }
 0x482   : > { %5404 = vmatprep.mubr.f32.mxu0 %v6779_v25 }
 0x484   : > { %5482 = vmatmul.mubr.f32.gmra.mxu1 %v6759_v50 }
 0x485   : > { %5405 = vmatmul.mubr.f32.gmra.mxu0 %v6786_v29  ;;  %5484 = vmatprep.mubr.f32.mxu1 %v6774_v21 }
 0x486   : > { %5407 = vmatprep.mubr.f32.mxu0 %v6796_v28 }
 0x488   : > { %5485 = vmatmul.mubr.f32.gmra.mxu1 %v6779_v25 }
 0x489   : > { %5408 = vmatmul.mubr.f32.gmra.mxu0 %v6814_v44  ;;  %5487 = vmatprep.mubr.f32.mxu1 %v6786_v29 }
 0x48a   : > { %5410 = vmatprep.mubr.f32.mxu0 %v6818_v11 }
 0x48c   : > { %5488 = vmatmul.mubr.f32.gmra.mxu1 %v6796_v28 }
 0x48d   : > { %5411 = vmatmul.mubr.f32.gmra.mxu0 %v6831_v45  ;;  %5490 = vmatprep.mubr.f32.mxu1 %v6814_v44 }
 0x48e   : > { %5413 = vmatprep.mubr.f32.mxu0 %v6834_v23 }
 0x490   : > { %5491 = vmatmul.mubr.f32.gmra.mxu1 %v6818_v11 }
 0x491   : > { %5414 = vmatmul.mubr.f32.gmra.mxu0 %v6842_v31  ;;  %5493 = vmatprep.mubr.f32.mxu1 %v6831_v45 }
 0x492   : > { %5416 = vmatprep.mubr.f32.mxu0 %v6844_v5 }
 0x494   : > { %5494 = vmatmul.mubr.f32.gmra.mxu1 %v6834_v23 }
 0x495   : > { %5417 = vmatmul.mubr.f32.gmra.mxu0 %v6851_v35  ;;  %5496 = vmatprep.mubr.f32.mxu1 %v6842_v31 }
 0x496   : > { %5419 = vmatprep.mubr.f32.mxu0 %v6854_v55 }
 0x498   : > { %5497 = vmatmul.mubr.f32.gmra.mxu1 %v6844_v5 }
 0x499   : > { %5420 = vmatmul.mubr.f32.gmra.mxu0 %v6861_v42  ;;  %5499 = vmatprep.mubr.f32.mxu1 %v6851_v35 }
 0x49a   : > { %5422 = vmatprep.mubr.f32.mxu0 %v6864_v1 }
 0x49c   : > { %5500 = vmatmul.mubr.f32.gmra.mxu1 %v6854_v55 }
 0x49d   : > { %5423 = vmatmul.mubr.f32.gmra.mxu0 %v6871_v51  ;;  %5502 = vmatprep.mubr.f32.mxu1 %v6861_v42 }
 0x49e   : > { %5425 = vmatprep.mubr.f32.mxu0 %v6874_v17 }
 0x4a0   : > { %5503 = vmatmul.mubr.f32.gmra.mxu1 %v6864_v1 }
 0x4a1   : > { %5426 = vmatmul.mubr.f32.gmra.mxu0 %v6881_v9  ;;  %5505 = vmatprep.mubr.f32.mxu1 %v6871_v51 }
 0x4a2   : > { %5428 = vmatprep.mubr.f32.mxu0 %v6883_v12 }
 0x4a4   : > { %5506 = vmatmul.mubr.f32.gmra.mxu1 %v6874_v17 }
 0x4a5   : > { %5429 = vmatmul.mubr.f32.gmra.mxu0 %v6890_v27  ;;  %5508 = vmatprep.mubr.f32.mxu1 %v6881_v9 }
 0x4a6   : > { %5431 = vmatprep.mubr.f32.mxu0 %v6893_v37 }
 0x4a8   : > { %5509 = vmatmul.mubr.f32.gmra.mxu1 %v6883_v12 }
 0x4a9   : > { %5432 = vmatmul.mubr.f32.gmra.mxu0 %v6900_v46  ;;  %5511 = vmatprep.mubr.f32.mxu1 %v6890_v27 }
 0x4aa   : > { %5434 = vmatprep.mubr.f32.mxu0 %v6902_v24 }
 0x4ac   : > { %5512 = vmatmul.mubr.f32.gmra.mxu1 %v6893_v37 }
 0x4ad   : > { %5435 = vmatmul.mubr.f32.gmra.mxu0 %v6909_v58  ;;  %5514 = vmatprep.mubr.f32.mxu1 %v6900_v46 }
 0x4ae   : > { %5437 = vmatprep.mubr.f32.mxu0 %v6916_v62 }
 0x4b0   : > { %5515 = vmatmul.mubr.f32.gmra.mxu1 %v6902_v24 }
 0x4b1   : > { %5517 = vmatprep.mubr.f32.mxu1 %v6909_v58  ;;  %5438 = vmatmul.mubr.f32.gmra.mxu0 %v5995_v0 }
 0x4b4   : > { %5518 = vmatmul.mubr.f32.gmra.mxu1 %v6916_v62 }
 0x4d8   : > { %v5234_v40 = vpop.f32.mrf.mxu0 }
 0x4da   : > { %v2782_v57 = vpop.f32.mrf.mxu0 }
 0x4f8   : > { %v5314_v20 = vpop.f32.mrf.mxu1 }
 0x4f9   : > { %v3013_v34 = vadd.f32 %v5314_v20, %v5234_v40  ;;  %v5237_v19 = vpop.f32.mrf.mxu0 }
 0x4fa   : > { %v3007_v53 = vpop.f32.mrf.mxu1 }
 0x4fb   : > { %5623 = vtanh.f32 %v3013_v34  ;;  %v3008_v56 = vadd.f32 %v3007_v53, %v2782_v57  ;;  %v2792_v3 = vpop.f32.mrf.mxu0 }
 0x4fc   : > { %v5317_v50 = vpop.f32.mrf.mxu1 }
 0x4fd   : > { %5625 = vtanh.f32 %v3008_v56  ;;  %v3023_v21 = vadd.f32 %v5317_v50, %v5237_v19  ;;  %v5240_v25 = vpop.f32.mrf.mxu0 }
 0x4fe   : > { %v3017_v29 = vpop.f32.mrf.mxu1 }
 0x4ff   : > { %5627 = vtanh.f32 %v3023_v21  ;;  %v3018_v28 = vadd.f32 %v3017_v29, %v2792_v3  ;;  %v2802_v0 = vpop.f32.mrf.mxu0 }
 0x500   : > { %v5320_v63 = vpop.f32.mrf.mxu1 }
 0x501   : > { %5629 = vtanh.f32 %v3018_v28  ;;  %v3033_v2 = vadd.f32 %v5320_v63, %v5240_v25  ;;  %v5243_v52 = vpop.f32.mrf.mxu0 }
 0x502   : > { %v3027_v61 = vpop.f32.mrf.mxu1 }
 0x503   : > { %5631 = vtanh.f32 %v3033_v2  ;;  %v3028_v4 = vadd.f32 %v3027_v61, %v2802_v0  ;;  %v2812_v8 = vpop.f32.mrf.mxu0 }
 0x504   : > { %v5323_v39 = vpop.f32.mrf.mxu1 }
 0x505   : > { %5633 = vtanh.f32 %v3028_v4  ;;  %v3043_v10 = vadd.f32 %v5323_v39, %v5243_v52  ;;  %v5246_v44 = vpop.f32.mrf.mxu0 }
 0x506   : > { %v3037_v32 = vpop.f32.mrf.mxu1 }
 0x507   : > { %5635 = vtanh.f32 %v3043_v10  ;;  %v3038_v36 = vadd.f32 %v3037_v32, %v2812_v8  ;;  %v2822_v11 = vpop.f32.mrf.mxu0 }
 0x508   : > { %v5624_v47 = vpop.eup %5623  ;;  %v5326_v6 = vpop.f32.mrf.mxu1 }
 0x509   : > { %3715 = vst [vmem:[%s6983_s20 + $0x10] sm:$0xff] %v5624_v47  ;;  %5637 = vtanh.f32 %v3038_v36  ;;  %v3053_v13 = vadd.f32 %v5326_v6, %v5246_v44  ;;  %v5249_v15 = vpop.f32.mrf.mxu0 }
 0x50a   : > { %v5626_v60 = vpop.eup %5625  ;;  %v3047_v16 = vpop.f32.mrf.mxu1 }
 0x50b   : > { %3713 = vst [vmem:[%s6983_s20] sm:$0xff] %v5626_v60  ;;  %5639 = vtanh.f32 %v3053_v13  ;;  %v3048_v18 = vadd.f32 %v3047_v16, %v2822_v11  ;;  %v2832_v41 = vpop.f32.mrf.mxu0 }
 0x50c   : > { %v5628_v45 = vpop.eup %5627  ;;  %v5329_v22 = vpop.f32.mrf.mxu1 }
 0x50d   : > { %3719 = vst [vmem:[%s6983_s20 + $0x30] sm:$0xff] %v5628_v45  ;;  %5641 = vtanh.f32 %v3048_v18  ;;  %v3063_v23 = vadd.f32 %v5329_v22, %v5249_v15  ;;  %v5252_v26 = vpop.f32.mrf.mxu0 }
 0x50e   : > { %v5630_v30 = vpop.eup %5629  ;;  %v3057_v33 = vpop.f32.mrf.mxu1 }
 0x50f   : > { %3717 = vst [vmem:[%s6983_s20 + $0x20] sm:$0xff] %v5630_v30  ;;  %5643 = vtanh.f32 %v3063_v23  ;;  %v3058_v31 = vadd.f32 %v3057_v33, %v2832_v41  ;;  %v2842_v5 = vpop.f32.mrf.mxu0 }
 0x510   : > { %v5632_v43 = vpop.eup %5631  ;;  %v5332_v35 = vpop.f32.mrf.mxu1 }
 0x511   : > { %3723 = vst [vmem:[%s6983_s20 + $0x50] sm:$0xff] %v5632_v43  ;;  %5645 = vtanh.f32 %v3058_v31  ;;  %v3073_v55 = vadd.f32 %v5332_v35, %v5252_v26  ;;  %v5255_v38 = vpop.f32.mrf.mxu0 }
 0x512   : > { %v5634_v42 = vpop.eup %5633  ;;  %v3067_v1 = vpop.f32.mrf.mxu1 }
 0x513   : > { %3721 = vst [vmem:[%s6983_s20 + $0x40] sm:$0xff] %v5634_v42  ;;  %5647 = vtanh.f32 %v3073_v55  ;;  %v3068_v7 = vadd.f32 %v3067_v1, %v2842_v5  ;;  %v2852_v51 = vpop.f32.mrf.mxu0 }
 0x514   : > { %v5636_v17 = vpop.eup %5635  ;;  %v5335_v54 = vpop.f32.mrf.mxu1 }
 0x515   : > { %3727 = vst [vmem:[%s6983_s20 + $0x70] sm:$0xff] %v5636_v17  ;;  %5649 = vtanh.f32 %v3068_v7  ;;  %v3083_v9 = vadd.f32 %v5335_v54, %v5255_v38  ;;  %v5258_v12 = vpop.f32.mrf.mxu0 }
 0x516   : > { %v5638_v48 = vpop.eup %5637  ;;  %v3077_v27 = vpop.f32.mrf.mxu1 }
 0x517   : > { %3725 = vst [vmem:[%s6983_s20 + $0x60] sm:$0xff] %v5638_v48  ;;  %5651 = vtanh.f32 %v3083_v9  ;;  %v3078_v37 = vadd.f32 %v3077_v27, %v2852_v51  ;;  %v2862_v14 = vpop.f32.mrf.mxu0 }
 0x518   : > { %v5640_v46 = vpop.eup %5639  ;;  %v5338_v24 = vpop.f32.mrf.mxu1 }
 0x519   : > { %3731 = vst [vmem:[%s6983_s20 + $0x90] sm:$0xff] %v5640_v46  ;;  %5653 = vtanh.f32 %v3078_v37  ;;  %v3093_v49 = vadd.f32 %v5338_v24, %v5258_v12  ;;  %v5261_v58 = vpop.f32.mrf.mxu0 }
 0x51a   : > { %v5642_v59 = vpop.eup %5641  ;;  %v3087_v62 = vpop.f32.mrf.mxu1 }
 0x51b   : > { %3729 = vst [vmem:[%s6983_s20 + $0x80] sm:$0xff] %v5642_v59  ;;  %5655 = vtanh.f32 %v3093_v49  ;;  %v3088_v40 = vadd.f32 %v3087_v62, %v2862_v14  ;;  %v2872_v57 = vpop.f32.mrf.mxu0 }
 0x51c   : > { %v5644_v20 = vpop.eup %5643  ;;  %v5341_v34 = vpop.f32.mrf.mxu1 }
 0x51d   : > { %3735 = vst [vmem:[%s6983_s20 + $0xb0] sm:$0xff] %v5644_v20  ;;  %5657 = vtanh.f32 %v3088_v40  ;;  %v3103_v19 = vadd.f32 %v5341_v34, %v5261_v58  ;;  %v5264_v53 = vpop.f32.mrf.mxu0 }
 0x51e   : > { %v5646_v56 = vpop.eup %5645  ;;  %v3097_v3 = vpop.f32.mrf.mxu1 }
 0x51f   : > { %3733 = vst [vmem:[%s6983_s20 + $0xa0] sm:$0xff] %v5646_v56  ;;  %5659 = vtanh.f32 %v3103_v19  ;;  %v3098_v50 = vadd.f32 %v3097_v3, %v2872_v57  ;;  %v2882_v21 = vpop.f32.mrf.mxu0 }
 0x520   : > { %v5648_v25 = vpop.eup %5647  ;;  %v5344_v29 = vpop.f32.mrf.mxu1 }
 0x521   : > { %3739 = vst [vmem:[%s6983_s20 + $0xd0] sm:$0xff] %v5648_v25  ;;  %5661 = vtanh.f32 %v3098_v50  ;;  %v3113_v28 = vadd.f32 %v5344_v29, %v5264_v53  ;;  %v5267_v0 = vpop.f32.mrf.mxu0 }
 0x522   : > { %v5650_v63 = vpop.eup %5649  ;;  %v3107_v2 = vpop.f32.mrf.mxu1 }
 0x523   : > { %3737 = vst [vmem:[%s6983_s20 + $0xc0] sm:$0xff] %v5650_v63  ;;  %5663 = vtanh.f32 %v3113_v28  ;;  %v3108_v52 = vadd.f32 %v3107_v2, %v2882_v21  ;;  %v2892_v61 = vpop.f32.mrf.mxu0 }
 0x524   : > { %v5652_v4 = vpop.eup %5651  ;;  %v5347_v8 = vpop.f32.mrf.mxu1 }
 0x525   : > { %3743 = vst [vmem:[%s6983_s20 + $0xf0] sm:$0xff] %v5652_v4  ;;  %5665 = vtanh.f32 %v3108_v52  ;;  %v3123_v39 = vadd.f32 %v5347_v8, %v5267_v0  ;;  %v5270_v10 = vpop.f32.mrf.mxu0 }
 0x526   : > { %v5654_v44 = vpop.eup %5653  ;;  %v3117_v32 = vpop.f32.mrf.mxu1 }
 0x527   : > { %3741 = vst [vmem:[%s6983_s20 + $0xe0] sm:$0xff] %v5654_v44  ;;  %5667 = vtanh.f32 %v3123_v39  ;;  %v3118_v36 = vadd.f32 %v3117_v32, %v2892_v61  ;;  %v2902_v11 = vpop.f32.mrf.mxu0 }
 0x528   : > { %v5656_v47 = vpop.eup %5655  ;;  %v5350_v6 = vpop.f32.mrf.mxu1 }
 0x529   : > { %3747 = vst [vmem:[%s6983_s20 + $0x110] sm:$0xff] %v5656_v47  ;;  %5669 = vtanh.f32 %v3118_v36  ;;  %v3133_v13 = vadd.f32 %v5350_v6, %v5270_v10  ;;  %v5273_v15 = vpop.f32.mrf.mxu0 }
 0x52a   : > { %v5658_v60 = vpop.eup %5657  ;;  %v3127_v16 = vpop.f32.mrf.mxu1 }
 0x52b   : > { %3745 = vst [vmem:[%s6983_s20 + $0x100] sm:$0xff] %v5658_v60  ;;  %5671 = vtanh.f32 %v3133_v13  ;;  %v3128_v18 = vadd.f32 %v3127_v16, %v2902_v11  ;;  %v2912_v41 = vpop.f32.mrf.mxu0 }
 0x52c   : > { %v5660_v45 = vpop.eup %5659  ;;  %v5353_v22 = vpop.f32.mrf.mxu1 }
 0x52d   : > { %3751 = vst [vmem:[%s6983_s20 + $0x130] sm:$0xff] %v5660_v45  ;;  %5673 = vtanh.f32 %v3128_v18  ;;  %v3143_v23 = vadd.f32 %v5353_v22, %v5273_v15  ;;  %v5276_v26 = vpop.f32.mrf.mxu0 }
 0x52e   : > { %v5662_v30 = vpop.eup %5661  ;;  %v3137_v33 = vpop.f32.mrf.mxu1 }
 0x52f   : > { %3749 = vst [vmem:[%s6983_s20 + $0x120] sm:$0xff] %v5662_v30  ;;  %5675 = vtanh.f32 %v3143_v23  ;;  %v3138_v31 = vadd.f32 %v3137_v33, %v2912_v41  ;;  %v2922_v5 = vpop.f32.mrf.mxu0 }
 0x530   : > { %v5664_v43 = vpop.eup %5663  ;;  %v5356_v35 = vpop.f32.mrf.mxu1 }
 0x531   : > { %3755 = vst [vmem:[%s6983_s20 + $0x150] sm:$0xff] %v5664_v43  ;;  %5677 = vtanh.f32 %v3138_v31  ;;  %v3153_v55 = vadd.f32 %v5356_v35, %v5276_v26  ;;  %v5279_v38 = vpop.f32.mrf.mxu0 }
 0x532   : > { %v5666_v42 = vpop.eup %5665  ;;  %v3147_v1 = vpop.f32.mrf.mxu1 }
 0x533   : > { %3753 = vst [vmem:[%s6983_s20 + $0x140] sm:$0xff] %v5666_v42  ;;  %5679 = vtanh.f32 %v3153_v55  ;;  %v3148_v7 = vadd.f32 %v3147_v1, %v2922_v5  ;;  %v2932_v51 = vpop.f32.mrf.mxu0 }
 0x534   : > { %v5668_v17 = vpop.eup %5667  ;;  %v5359_v54 = vpop.f32.mrf.mxu1 }
 0x535   : > { %3759 = vst [vmem:[%s6983_s20 + $0x170] sm:$0xff] %v5668_v17  ;;  %5681 = vtanh.f32 %v3148_v7  ;;  %v3163_v9 = vadd.f32 %v5359_v54, %v5279_v38  ;;  %v5394_v12 = vpop.f32.mrf.mxu0 }
 0x536   : > { %v5670_v48 = vpop.eup %5669  ;;  %v3157_v27 = vpop.f32.mrf.mxu1 }
 0x537   : > { %3757 = vst [vmem:[%s6983_s20 + $0x160] sm:$0xff] %v5670_v48  ;;  %5683 = vtanh.f32 %v3163_v9  ;;  %v3158_v37 = vadd.f32 %v3157_v27, %v2932_v51  ;;  %v3265_v14 = vpop.f32.mrf.mxu0 }
 0x538   : > { %v5672_v46 = vpop.eup %5671  ;;  %v5474_v24 = vpop.f32.mrf.mxu1 }
 0x539   : > { %3763 = vst [vmem:[%s6983_s20 + $0x190] sm:$0xff] %v5672_v46  ;;  %5685 = vtanh.f32 %v3158_v37  ;;  %v3496_v49 = vadd.f32 %v5474_v24, %v5394_v12  ;;  %v5397_v58 = vpop.f32.mrf.mxu0 }
 0x53a   : > { %v5674_v59 = vpop.eup %5673  ;;  %v3490_v62 = vpop.f32.mrf.mxu1 }
 0x53b   : > { %3761 = vst [vmem:[%s6983_s20 + $0x180] sm:$0xff] %v5674_v59  ;;  %5687 = vtanh.f32 %v3496_v49  ;;  %v3491_v40 = vadd.f32 %v3490_v62, %v3265_v14  ;;  %v3275_v57 = vpop.f32.mrf.mxu0 }
 0x53c   : > { %v5676_v20 = vpop.eup %5675  ;;  %v5477_v34 = vpop.f32.mrf.mxu1 }
 0x53d   : > { %3767 = vst [vmem:[%s6983_s20 + $0x1b0] sm:$0xff] %v5676_v20  ;;  %5689 = vtanh.f32 %v3491_v40  ;;  %v3506_v19 = vadd.f32 %v5477_v34, %v5397_v58  ;;  %v5400_v53 = vpop.f32.mrf.mxu0 }
 0x53e   : > { %v5678_v56 = vpop.eup %5677  ;;  %v3500_v3 = vpop.f32.mrf.mxu1 }
 0x53f   : > { %3765 = vst [vmem:[%s6983_s20 + $0x1a0] sm:$0xff] %v5678_v56  ;;  %5691 = vtanh.f32 %v3506_v19  ;;  %v3501_v50 = vadd.f32 %v3500_v3, %v3275_v57  ;;  %v3285_v21 = vpop.f32.mrf.mxu0 }
 0x540   : > { %v5680_v25 = vpop.eup %5679  ;;  %v5480_v29 = vpop.f32.mrf.mxu1 }
 0x541   : > { %3771 = vst [vmem:[%s6983_s20 + $0x1d0] sm:$0xff] %v5680_v25  ;;  %5693 = vtanh.f32 %v3501_v50  ;;  %v3516_v28 = vadd.f32 %v5480_v29, %v5400_v53  ;;  %v5403_v0 = vpop.f32.mrf.mxu0 }
 0x542   : > { %v5682_v63 = vpop.eup %5681  ;;  %v3510_v2 = vpop.f32.mrf.mxu1 }
 0x543   : > { %3769 = vst [vmem:[%s6983_s20 + $0x1c0] sm:$0xff] %v5682_v63  ;;  %5695 = vtanh.f32 %v3516_v28  ;;  %v3511_v52 = vadd.f32 %v3510_v2, %v3285_v21  ;;  %v3295_v61 = vpop.f32.mrf.mxu0 }
 0x544   : > { %v5684_v4 = vpop.eup %5683  ;;  %v5483_v8 = vpop.f32.mrf.mxu1 }
 0x545   : > { %3775 = vst [vmem:[%s6983_s20 + $0x1f0] sm:$0xff] %v5684_v4  ;;  %5697 = vtanh.f32 %v3511_v52  ;;  %v3526_v39 = vadd.f32 %v5483_v8, %v5403_v0  ;;  %v5406_v10 = vpop.f32.mrf.mxu0 }
 0x546   : > { %v5686_v44 = vpop.eup %5685  ;;  %v3520_v32 = vpop.f32.mrf.mxu1 }
 0x547   : > { %3773 = vst [vmem:[%s6983_s20 + $0x1e0] sm:$0xff] %v5686_v44  ;;  %5699 = vtanh.f32 %v3526_v39  ;;  %v3521_v36 = vadd.f32 %v3520_v32, %v3295_v61  ;;  %v3305_v11 = vpop.f32.mrf.mxu0 }
 0x548   : > { %v5688_v47 = vpop.eup %5687  ;;  %v5486_v6 = vpop.f32.mrf.mxu1 }
 0x549   : > { %3716 = vst [vmem:[%s6983_s20 + $0x18] sm:$0xff] %v5688_v47  ;;  %5701 = vtanh.f32 %v3521_v36  ;;  %v3536_v13 = vadd.f32 %v5486_v6, %v5406_v10  ;;  %v5409_v15 = vpop.f32.mrf.mxu0 }
 0x54a   : > { %v5690_v60 = vpop.eup %5689  ;;  %v3530_v16 = vpop.f32.mrf.mxu1 }
 0x54b   : > { %3714 = vst [vmem:[%s6983_s20 + $0x8] sm:$0xff] %v5690_v60  ;;  %5703 = vtanh.f32 %v3536_v13  ;;  %v3531_v18 = vadd.f32 %v3530_v16, %v3305_v11  ;;  %v3315_v41 = vpop.f32.mrf.mxu0 }
 0x54c   : > { %v5692_v45 = vpop.eup %5691  ;;  %v5489_v22 = vpop.f32.mrf.mxu1 }
 0x54d   : > { %3720 = vst [vmem:[%s6983_s20 + $0x38] sm:$0xff] %v5692_v45  ;;  %5705 = vtanh.f32 %v3531_v18  ;;  %v3546_v23 = vadd.f32 %v5489_v22, %v5409_v15  ;;  %v5412_v26 = vpop.f32.mrf.mxu0 }
 0x54e   : > { %v5694_v30 = vpop.eup %5693  ;;  %v3540_v33 = vpop.f32.mrf.mxu1 }
 0x54f   : > { %3718 = vst [vmem:[%s6983_s20 + $0x28] sm:$0xff] %v5694_v30  ;;  %5707 = vtanh.f32 %v3546_v23  ;;  %v3541_v31 = vadd.f32 %v3540_v33, %v3315_v41  ;;  %v3325_v5 = vpop.f32.mrf.mxu0 }
 0x550   : > { %v5696_v43 = vpop.eup %5695  ;;  %v5492_v35 = vpop.f32.mrf.mxu1 }
 0x551   : > { %3724 = vst [vmem:[%s6983_s20 + $0x58] sm:$0xff] %v5696_v43  ;;  %5709 = vtanh.f32 %v3541_v31  ;;  %v3556_v55 = vadd.f32 %v5492_v35, %v5412_v26  ;;  %v5415_v38 = vpop.f32.mrf.mxu0 }
 0x552   : > { %v5698_v42 = vpop.eup %5697  ;;  %v3550_v1 = vpop.f32.mrf.mxu1 }
 0x553   : > { %3722 = vst [vmem:[%s6983_s20 + $0x48] sm:$0xff] %v5698_v42  ;;  %5711 = vtanh.f32 %v3556_v55  ;;  %v3551_v7 = vadd.f32 %v3550_v1, %v3325_v5  ;;  %v3335_v51 = vpop.f32.mrf.mxu0 }
 0x554   : > { %v5700_v17 = vpop.eup %5699  ;;  %v5495_v54 = vpop.f32.mrf.mxu1 }
 0x555   : > { %3728 = vst [vmem:[%s6983_s20 + $0x78] sm:$0xff] %v5700_v17  ;;  %5713 = vtanh.f32 %v3551_v7  ;;  %v3566_v9 = vadd.f32 %v5495_v54, %v5415_v38  ;;  %v5418_v12 = vpop.f32.mrf.mxu0 }
 0x556   : > { %v5702_v48 = vpop.eup %5701  ;;  %v3560_v27 = vpop.f32.mrf.mxu1 }
 0x557   : > { %3726 = vst [vmem:[%s6983_s20 + $0x68] sm:$0xff] %v5702_v48  ;;  %5715 = vtanh.f32 %v3566_v9  ;;  %v3561_v37 = vadd.f32 %v3560_v27, %v3335_v51  ;;  %v3345_v14 = vpop.f32.mrf.mxu0 }
 0x558   : > { %v5704_v46 = vpop.eup %5703  ;;  %v5498_v24 = vpop.f32.mrf.mxu1 }
 0x559   : > { %3732 = vst [vmem:[%s6983_s20 + $0x98] sm:$0xff] %v5704_v46  ;;  %5717 = vtanh.f32 %v3561_v37  ;;  %v3576_v49 = vadd.f32 %v5498_v24, %v5418_v12  ;;  %v5421_v58 = vpop.f32.mrf.mxu0 }
 0x55a   : > { %v5706_v59 = vpop.eup %5705  ;;  %v3570_v62 = vpop.f32.mrf.mxu1 }
 0x55b   : > { %3730 = vst [vmem:[%s6983_s20 + $0x88] sm:$0xff] %v5706_v59  ;;  %5719 = vtanh.f32 %v3576_v49  ;;  %v3571_v40 = vadd.f32 %v3570_v62, %v3345_v14  ;;  %v3355_v57 = vpop.f32.mrf.mxu0 }
 0x55c   : > { %v5708_v20 = vpop.eup %5707  ;;  %v5501_v34 = vpop.f32.mrf.mxu1 }
 0x55d   : > { %3736 = vst [vmem:[%s6983_s20 + $0xb8] sm:$0xff] %v5708_v20  ;;  %5721 = vtanh.f32 %v3571_v40  ;;  %v3586_v19 = vadd.f32 %v5501_v34, %v5421_v58  ;;  %v5424_v53 = vpop.f32.mrf.mxu0 }
 0x55e   : > { %v5710_v56 = vpop.eup %5709  ;;  %v3580_v3 = vpop.f32.mrf.mxu1 }
 0x55f   : > { %3734 = vst [vmem:[%s6983_s20 + $0xa8] sm:$0xff] %v5710_v56  ;;  %5723 = vtanh.f32 %v3586_v19  ;;  %v3581_v50 = vadd.f32 %v3580_v3, %v3355_v57  ;;  %v3365_v21 = vpop.f32.mrf.mxu0 }
 0x560   : > { %v5712_v25 = vpop.eup %5711  ;;  %v5504_v29 = vpop.f32.mrf.mxu1 }
 0x561   : > { %3740 = vst [vmem:[%s6983_s20 + $0xd8] sm:$0xff] %v5712_v25  ;;  %5725 = vtanh.f32 %v3581_v50  ;;  %v3596_v28 = vadd.f32 %v5504_v29, %v5424_v53  ;;  %v5427_v0 = vpop.f32.mrf.mxu0 }
 0x562   : > { %v5714_v63 = vpop.eup %5713  ;;  %v3590_v2 = vpop.f32.mrf.mxu1 }
 0x563   : > { %3738 = vst [vmem:[%s6983_s20 + $0xc8] sm:$0xff] %v5714_v63  ;;  %5727 = vtanh.f32 %v3596_v28  ;;  %v3591_v52 = vadd.f32 %v3590_v2, %v3365_v21  ;;  %v3375_v61 = vpop.f32.mrf.mxu0 }
 0x564   : > { %v5716_v4 = vpop.eup %5715  ;;  %v5507_v8 = vpop.f32.mrf.mxu1 }
 0x565   : > { %3744 = vst [vmem:[%s6983_s20 + $0xf8] sm:$0xff] %v5716_v4  ;;  %5729 = vtanh.f32 %v3591_v52  ;;  %v3606_v39 = vadd.f32 %v5507_v8, %v5427_v0  ;;  %v5430_v10 = vpop.f32.mrf.mxu0 }
 0x566   : > { %v5718_v44 = vpop.eup %5717  ;;  %v3600_v32 = vpop.f32.mrf.mxu1 }
 0x567   : > { %3742 = vst [vmem:[%s6983_s20 + $0xe8] sm:$0xff] %v5718_v44  ;;  %5731 = vtanh.f32 %v3606_v39  ;;  %v3601_v36 = vadd.f32 %v3600_v32, %v3375_v61  ;;  %v3385_v11 = vpop.f32.mrf.mxu0 }
 0x568   : > { %v5720_v47 = vpop.eup %5719  ;;  %v5510_v6 = vpop.f32.mrf.mxu1 }
 0x569   : > { %3748 = vst [vmem:[%s6983_s20 + $0x118] sm:$0xff] %v5720_v47  ;;  %5733 = vtanh.f32 %v3601_v36  ;;  %v3616_v13 = vadd.f32 %v5510_v6, %v5430_v10  ;;  %v5433_v15 = vpop.f32.mrf.mxu0 }
 0x56a   : > { %v5722_v60 = vpop.eup %5721  ;;  %v3610_v16 = vpop.f32.mrf.mxu1 }
 0x56b   : > { %3746 = vst [vmem:[%s6983_s20 + $0x108] sm:$0xff] %v5722_v60  ;;  %5735 = vtanh.f32 %v3616_v13  ;;  %v3611_v18 = vadd.f32 %v3610_v16, %v3385_v11  ;;  %v3395_v41 = vpop.f32.mrf.mxu0 }
 0x56c   : > { %v5724_v45 = vpop.eup %5723  ;;  %v5513_v22 = vpop.f32.mrf.mxu1 }
 0x56d   : > { %3752 = vst [vmem:[%s6983_s20 + $0x138] sm:$0xff] %v5724_v45  ;;  %5737 = vtanh.f32 %v3611_v18  ;;  %v3626_v23 = vadd.f32 %v5513_v22, %v5433_v15  ;;  %v5436_v26 = vpop.f32.mrf.mxu0 }
 0x56e   : > { %v5726_v30 = vpop.eup %5725  ;;  %v3620_v33 = vpop.f32.mrf.mxu1 }
 0x56f   : > { %3750 = vst [vmem:[%s6983_s20 + $0x128] sm:$0xff] %v5726_v30  ;;  %5739 = vtanh.f32 %v3626_v23  ;;  %v3621_v31 = vadd.f32 %v3620_v33, %v3395_v41  ;;  %v3405_v5 = vpop.f32.mrf.mxu0 }
 0x570   : > { %v5728_v43 = vpop.eup %5727  ;;  %v5516_v35 = vpop.f32.mrf.mxu1 }
 0x571   : > { %3756 = vst [vmem:[%s6983_s20 + $0x158] sm:$0xff] %v5728_v43  ;;  %5741 = vtanh.f32 %v3621_v31  ;;  %v3636_v55 = vadd.f32 %v5516_v35, %v5436_v26  ;;  %v5439_v42 = vpop.f32.mrf.mxu0 }
 0x572   : > { %v5730_v38 = vpop.eup %5729  ;;  %v3630_v1 = vpop.f32.mrf.mxu1 }
 0x573   : > { %3754 = vst [vmem:[%s6983_s20 + $0x148] sm:$0xff] %v5730_v38  ;;  %5743 = vtanh.f32 %v3636_v55  ;;  %v3631_v7 = vadd.f32 %v3630_v1, %v3405_v5  ;;  %v3415_v12 = vpop.f32.mrf.mxu0 }
 0x574   : > { %v5732_v51 = vpop.eup %5731  ;;  %v5519_v17 = vpop.f32.mrf.mxu1 }
 0x575   : > { %3760 = vst [vmem:[%s6983_s20 + $0x178] sm:$0xff] %v5732_v51  ;;  %5745 = vtanh.f32 %v3631_v7  ;;  %v3646_v54 = vadd.f32 %v5519_v17, %v5439_v42 }
 0x576   : > { %v5734_v9 = vpop.eup %5733  ;;  %v3640_v48 = vpop.f32.mrf.mxu1 }
 0x577   : > { %3758 = vst [vmem:[%s6983_s20 + $0x168] sm:$0xff] %v5734_v9  ;;  %5747 = vtanh.f32 %v3646_v54  ;;  %v3641_v27 = vadd.f32 %v3640_v48, %v3415_v12 }
 0x578   : > { %v5736_v37 = vpop.eup %5735 }
 0x579   : > { %3764 = vst [vmem:[%s6983_s20 + $0x198] sm:$0xff] %v5736_v37  ;;  %5749 = vtanh.f32 %v3641_v27 }
 0x57a   : > { %v5738_v14 = vpop.eup %5737 }
 0x57b   : > { %3762 = vst [vmem:[%s6983_s20 + $0x188] sm:$0xff] %v5738_v14 }
 0x57c   : > { %v5740_v46 = vpop.eup %5739 }
 0x57d   : > { %3768 = vst [vmem:[%s6983_s20 + $0x1b8] sm:$0xff] %v5740_v46 }
 0x57e   : > { %v5742_v24 = vpop.eup %5741 }
 0x57f   : > { %3766 = vst [vmem:[%s6983_s20 + $0x1a8] sm:$0xff] %v5742_v24 }
 0x580   : > { %v5744_v49 = vpop.eup %5743 }
 0x581   : > { %3772 = vst [vmem:[%s6983_s20 + $0x1d8] sm:$0xff] %v5744_v49 }
 0x582   : > { %v5746_v58 = vpop.eup %5745 }
 0x583   : > { %3770 = vst [vmem:[%s6983_s20 + $0x1c8] sm:$0xff] %v5746_v58 }
 0x584   : > { %v5748_v59 = vpop.eup %5747 }
 0x585   : > { %3776 = vst [vmem:[%s6983_s20 + $0x1f8] sm:$0xff] %v5748_v59 }
 0x586   : > { %v5750_v62 = vpop.eup %5749 }
 0x587   : > { %3774 = vst [vmem:[%s6983_s20 + $0x1e8] sm:$0xff] %v5750_v62 }
 0x588   : > { %5922 = shalt.err (!%p5919_p1)
}
 0x589   : > { %s5923_s22 = scalar_lea.hbm %s7052_s27, 8192  ;;  %s5927_s10 = scalar_lea.hbm %s7151_s21, 16384 }
 0x58a   : > { %p5924_p3 = scmp.ne.s32.totalorder %s7052_s27, %s5923_s22  ;;  %p5928_p6 = scmp.lt.s32.totalorder %s7052_s27, %s7151_s21 }
 0x58b   : > { %p5929_p2 = scmp.lt.s32.totalorder %s5927_s10, %s5923_s22 }
 0x58c   : > { %p5925_p4 = pnand %p5924_p3, %p7152_p11 }
 0x58d   : > { %p5930_p7 = por %p5929_p2, %p5928_p6 }
 0x58e   : > { %p5926_p12 = pneg %p5925_p4 }
 0x590   : > { %p5931_p8 = pnand %p5930_p7, %p5926_p12 }
 0x592   : > { %5934 = shalt.err (!%p5931_p8)
}
 0x593   : > { %s5998_s18 = smov 128   ;;  %s5999_s23 = smov 8  }
 0x594   : > { %5542 = dma.vmem_to_hbm [thread:$0]  (%p7152_p11), %s7054_s14, 8192, %s7052_s27, %s3778_s24, %s5998_s18, %s5998_s18, %s5999_s23  }
 0x595 PF: > { %s3806_s4 = sand.u32 1, %s5973_s29   ;;  %p7153_p0 = scmp.ne.s32.totalorder %s7141_s17, 0 }
 0x596   : > { %p7154_p13 = scmp.ge.s32.totalorder %s5985_s16, 2  ;;  %s3807_s19 = scalar_lea.sflag [#allocation4], %s3806_s4 }
 0x598   : > { %p5565_p5 = pnand %p7154_p13, %p7153_p0 }
 0x59a   : > { %p5566_p9 = pneg %p5565_p5 }
 0x59c   : > { %5968 = dma.done.wait (%p5566_p9), %s3807_s19, 8192  }
 0x59d   : > { %5970 = vsyncadd (%p5566_p9), %s3807_s19, 4294959104  ;;  %s7155_s16 = sld [smem:[#allocation20_spill]]  ;;  %s7158_s29 = smov %s5977_s30 }
 0x59e   : > { %s7156_s28 = sld [smem:[#allocation19_spill]] }
 0x59f   : > { %s7157_s15 = sld [smem:[#allocation21_spill]] }
 0x5a3   : > { %p30_p10 = scmp.ge.s32.totalorder %s7155_s16, 4  }
 0x5a4   : > { %s7159_s30 = smov %s7156_s28 }
 0x5a5   :  { %32 = sbr.rel (!%p30_p10) target bundleno = 15 (0xf), region = 156 }
 0x5aa   :  { %3812 = vsyncpa [#allocation3], 1 }
 0x5ab   :  { %3814 = vsyncpa [#allocation3 + $0x1], 1 }
 0x5ac   :  { %3815 = vsyncpa [#allocation6], 1 }
 0x5ad   :  { %3816 = vsyncpa [#allocation9], 1 }
 0x5ae   :  { %3817 = vsyncpa [#allocation12], 1 }
 0x5af   :  { %3818 = vsyncpa [#allocation4], 1 }
 0x5b0   :  { %3820 = vsyncpa [#allocation4 + $0x1], 1 }

</bundles_post_ra>
